<compile_context>
chip_gen: v7x
topology: tpu7x:2x2x1
jax: 0.10.0
libtpu: 0.0.40
codegen_flags: <defaults>
</compile_context>

<pallas_src>
import functools
import math

import jax
import jax.numpy as jnp
from jax.experimental import pallas as pl
from jax.experimental.pallas import tpu as pltpu

N_EMBD = 384
HIDDEN = 4 * N_EMBD  # 1536
# dropout = 0 in the reference module -> identity; nothing to do.


def _gelu_exact_f32(h):
    # torch.nn.GELU() default (erf form), in f32.
    return 0.5 * h * (1.0 + jax.lax.erf(h * (1.0 / math.sqrt(2.0))))


def _gelu_tanh(h):
    # tanh-approx GELU in the dtype of h (bf16 on the fast path): the tanh goes
    # to the EUP slot, the polynomial to the (packed) VPU.
    dt = h.dtype
    c0 = jnp.asarray(math.sqrt(2.0 / math.pi), dt)
    c1 = jnp.asarray(0.044715, dt)
    half = jnp.asarray(0.5, dt)
    one = jnp.asarray(1.0, dt)
    return half * h * (one + jnp.tanh(c0 * (h + c1 * h * h * h)))


def ffn_kernel(x_ref, w1_ref, b1_ref, w2_ref, b2_ref, o_ref, *, exact_gelu):
    # x_ref: (tm, C) f32; w1_ref: (C, H); b1_ref: (1, H) f32;
    # w2_ref: (H, C); b2_ref: (1, C) f32; o_ref: (tm, C)
    cdt = w1_ref.dtype
    x = x_ref[...].astype(cdt)  # cast in-kernel (no extra HBM pass in the wrapper)
    # First linear: MXU matmul with f32 accumulation, bias add in f32.
    h = jnp.dot(x, w1_ref[...], preferred_element_type=jnp.float32) + b1_ref[...]
    if exact_gelu:
        h = _gelu_exact_f32(h).astype(cdt)        # exact erf GELU (f32 path)
    else:
        h = _gelu_tanh(h.astype(cdt))             # bf16 tanh GELU (EUP + bf16 VPU)
    # Second linear (f32 accumulation), bias add in f32.
    o = jnp.dot(h, w2_ref[...], preferred_element_type=jnp.float32) + b2_ref[...]
    # Dropout(p=0) is identity.
    o_ref[...] = o.astype(o_ref.dtype)


def _resident_spec(shape):
    """Grid-invariant operand: constant index_map, single-buffered if supported."""
    kwargs = {}
    if hasattr(pl, "Buffered"):
        kwargs["pipeline_mode"] = pl.Buffered(1)
    return pl.BlockSpec(shape, lambda i: (0, 0), **kwargs)


def prepare_ffn_params(w1, b1, w2, b2, compute_dtype=jnp.bfloat16):
    """Cast the weights ONCE (outside the per-step call); biases stay f32."""
    return (
        w1.astype(compute_dtype),
        b1.reshape(1, -1).astype(jnp.float32),
        w2.astype(compute_dtype),
        b2.reshape(1, -1).astype(jnp.float32),
    )


def feed_forward(x, w1, b1_2d, w2, b2_2d, *, tm=512, out_dtype=None):
    """x: (B, T, C). w1: (C, H), w2: (H, C) in the compute dtype (bf16 or f32);
    b1_2d: (1, H) f32, b2_2d: (1, C) f32. Returns (B, T, C) in out_dtype (default x.dtype)."""
    B, T, C = x.shape
    H = w1.shape[1]
    M = B * T
    out_dtype = x.dtype if out_dtype is None else out_dtype
    compute_dtype = w1.dtype
    exact_gelu = compute_dtype == jnp.float32

    # Adaptive row tile: multiple of 8, capped at `tm`, and sized so the grid has
    # >= 2 steps whenever M >= 16 (dual-TC sharding on v7x, no padding waste).
    tm_eff = max(8, min(int(tm), ((pl.cdiv(M, 2) + 7) // 8) * 8))
    grid = (pl.cdiv(M, tm_eff),)  # uneven tail tile -> masked writes, no pad/slice

    x2 = x.reshape(M, C)  # no pad, no cast here

    kernel = functools.partial(ffn_kernel, exact_gelu=exact_gelu)
    out = pl.pallas_call(
        kernel,
        out_shape=jax.ShapeDtypeStruct((M, C), out_dtype),
        grid_spec=pltpu.PrefetchScalarGridSpec(
            num_scalar_prefetch=0,
            grid=grid,
            in_specs=[
                pl.BlockSpec((tm_eff, C), lambda i: (i, 0)),  # x rows (pipelined)
                _resident_spec((C, H)),                       # w1 (resident)
                _resident_spec((1, H)),                       # b1
                _resident_spec((H, C)),                       # w2 (resident)
                _resident_spec((1, C)),                       # b2
            ],
            out_specs=pl.BlockSpec((tm_eff, C), lambda i: (i, 0)),
        ),
        compiler_params=pltpu.CompilerParams(
            dimension_semantics=("parallel",),
            vmem_limit_bytes=48 * 1024 * 1024,  # v5e default scoped is only 16 MiB
        ),
    )(x2, w1, b1_2d, w2, b2_2d)
    return out.reshape(B, T, C)


def reference_ffn(x, w1, b1, w2, b2):
    hp = jax.lax.Precision.HIGHEST
    h = jnp.dot(x, w1, precision=hp) + b1
    h = 0.5 * h * (1.0 + jax.lax.erf(h / jnp.sqrt(2.0)))
    return jnp.dot(h, w2, precision=hp) + b2


if __name__ == "__main__":
    key = jax.random.PRNGKey(0)
    kx, k1, kb1, k2, kb2 = jax.random.split(key, 5)

    B, T, C = 2, 8, N_EMBD
    H = HIDDEN

    # Deterministic parameter init (PyTorch-style uniform bound 1/sqrt(fan_in))
    bound1 = 1.0 / math.sqrt(C)
    bound2 = 1.0 / math.sqrt(H)
    w1 = jax.random.uniform(k1, (C, H), jnp.float32, -bound1, bound1)
    b1 = jax.random.uniform(kb1, (H,), jnp.float32, -bound1, bound1)
    w2 = jax.random.uniform(k2, (H, C), jnp.float32, -bound2, bound2)
    b2 = jax.random.uniform(kb2, (C,), jnp.float32, -bound2, bound2)

    x = jax.random.normal(kx, (B, T, C), jnp.float32)
    ref = reference_ffn(x, w1, b1, w2, b2)

    # f32 path: exact erf GELU, f32 matmuls.
    p_f32 = prepare_ffn_params(w1, b1, w2, b2, compute_dtype=jnp.float32)
    out_f32 = jax.block_until_ready(feed_forward(x, *p_f32))
    assert out_f32.shape == (B, T, C)
    assert bool(jnp.allclose(out_f32, ref, atol=5e-3, rtol=5e-3)), "f32 path mismatch vs reference"

    # Default fast path: weights pre-cast to bf16 once, bf16 tanh-GELU, f32 accumulation.
    p_bf16 = prepare_ffn_params(w1, b1, w2, b2, compute_dtype=jnp.bfloat16)
    out_fast = jax.block_until_ready(feed_forward(x, *p_bf16))
    assert out_fast.shape == (B, T, C)
    assert bool(jnp.allclose(out_fast.astype(jnp.float32), ref, atol=2e-2, rtol=2e-2)), \
        "bf16 mismatch vs reference"

    # Uneven-row-count case (M not a multiple of the tile): exercises the masked tail tile.
    x_odd = jax.random.normal(kx, (2, 13, C), jnp.float32)
    ref_odd = reference_ffn(x_odd, w1, b1, w2, b2)
    out_odd = jax.block_until_ready(feed_forward(x_odd, *p_bf16))
    assert out_odd.shape == (2, 13, C)
    assert bool(jnp.allclose(out_odd.astype(jnp.float32), ref_odd, atol=2e-2, rtol=2e-2)), \
        "uneven-tail mismatch vs reference"

    print("KERNEL_OK")
</pallas_src>

<mosaic_0001>
module attributes {stable_mosaic.version = 11 : i64} {
  func.func @ffn_kernel(%arg0: i32, %arg1: memref<8x384xf32, #tpu.memory_space<vmem>>, %arg2: memref<384x1536xf32, #tpu.memory_space<vmem>>, %arg3: memref<1x1536xf32, #tpu.memory_space<vmem>>, %arg4: memref<1536x384xf32, #tpu.memory_space<vmem>>, %arg5: memref<1x384xf32, #tpu.memory_space<vmem>>, %arg6: memref<8x384xf32, #tpu.memory_space<vmem>>) attributes {dimension_semantics = [#tpu.dimension_semantics<parallel>], iteration_bounds = array<i64: 2>, scalar_prefetch = 0 : i64, scratch_operands = 0 : i64, tpu.core_type = #tpu.core_type<tc>, window_params = [{transform_indices = @transform_0, window_bounds = array<i64: 8, 384>}, {pipeline_mode = #tpu.pipeline_mode<synchronous>, transform_indices = @transform_1, window_bounds = array<i64: 384, 1536>}, {pipeline_mode = #tpu.pipeline_mode<synchronous>, transform_indices = @transform_2, window_bounds = array<i64: 1, 1536>}, {pipeline_mode = #tpu.pipeline_mode<synchronous>, transform_indices = @transform_3, window_bounds = array<i64: 1536, 384>}, {pipeline_mode = #tpu.pipeline_mode<synchronous>, transform_indices = @transform_4, window_bounds = array<i64: 1, 384>}, {transform_indices = @transform_5, window_bounds = array<i64: 8, 384>}]} {
    %c0 = arith.constant 0 : index
    %c0_0 = arith.constant 0 : index
    %0 = vector.load %arg1[%c0, %c0_0] : memref<8x384xf32, #tpu.memory_space<vmem>>, vector<8x384xf32>
    %c0_1 = arith.constant 0 : index
    %c0_2 = arith.constant 0 : index
    %1 = vector.load %arg2[%c0_1, %c0_2] : memref<384x1536xf32, #tpu.memory_space<vmem>>, vector<384x1536xf32>
    %cst = arith.constant dense<0.000000e+00> : vector<8x1536xf32>
    %2 = tpu.matmul %0, %1, %cst {dimension_numbers = #tpu.dot_dimension_numbers<[1], [0], [0], [1], [0, 0, 1, 1], [], []>} : vector<8x384xf32>, vector<384x1536xf32>, vector<8x1536xf32> -> vector<8x1536xf32>
    %c0_3 = arith.constant 0 : index
    %c0_4 = arith.constant 0 : index
    %3 = vector.load %arg3[%c0_3, %c0_4] : memref<1x1536xf32, #tpu.memory_space<vmem>>, vector<1x1536xf32>
    %4 = vector.broadcast %3 : vector<1x1536xf32> to vector<8x1536xf32>
    %5 = arith.addf %2, %4 : vector<8x1536xf32>
    %cst_5 = arith.constant 5.000000e-01 : f32
    %6 = vector.broadcast %cst_5 : f32 to vector<8x1536xf32>
    %7 = arith.mulf %6, %5 : vector<8x1536xf32>
    %cst_6 = arith.constant 0.707106769 : f32
    %8 = vector.broadcast %cst_6 : f32 to vector<8x1536xf32>
    %9 = arith.mulf %5, %8 : vector<8x1536xf32>
    %10 = math.erf %9 : vector<8x1536xf32>
    %cst_7 = arith.constant 1.000000e+00 : f32
    %11 = vector.broadcast %cst_7 : f32 to vector<8x1536xf32>
    %12 = arith.addf %11, %10 : vector<8x1536xf32>
    %13 = arith.mulf %7, %12 : vector<8x1536xf32>
    %c0_8 = arith.constant 0 : index
    %c0_9 = arith.constant 0 : index
    %14 = vector.load %arg4[%c0_8, %c0_9] : memref<1536x384xf32, #tpu.memory_space<vmem>>, vector<1536x384xf32>
    %cst_10 = arith.constant dense<0.000000e+00> : vector<8x384xf32>
    %15 = tpu.matmul %13, %14, %cst_10 {dimension_numbers = #tpu.dot_dimension_numbers<[1], [0], [0], [1], [0, 0, 1, 1], [], []>} : vector<8x1536xf32>, vector<1536x384xf32>, vector<8x384xf32> -> vector<8x384xf32>
    %c0_11 = arith.constant 0 : index
    %c0_12 = arith.constant 0 : index
    %16 = vector.load %arg5[%c0_11, %c0_12] : memref<1x384xf32, #tpu.memory_space<vmem>>, vector<1x384xf32>
    %17 = vector.broadcast %16 : vector<1x384xf32> to vector<8x384xf32>
    %18 = arith.addf %15, %17 : vector<8x384xf32>
    %c0_13 = arith.constant 0 : index
    %c0_14 = arith.constant 0 : index
    %19 = vector.load %arg6[%c0_13, %c0_14] : memref<8x384xf32, #tpu.memory_space<vmem>>, vector<8x384xf32>
    tpu.vector_store %arg6[%c0_13, %c0_14], %18 {strides = array<i32>} : memref<8x384xf32, #tpu.memory_space<vmem>>, vector<8x384xf32>,
    return
  }
  func.func @transform_0(%arg0: i32) -> (i32, i32) {
    %c0_i32 = arith.constant 0 : i32
    %c0_i32_0 = arith.constant 0 : i32
    return %arg0, %c0_i32 : i32, i32
  }
  func.func @transform_1(%arg0: i32) -> (i32, i32) {
    %c0_i32 = arith.constant 0 : i32
    %c0_i32_0 = arith.constant 0 : i32
    %c0_i32_1 = arith.constant 0 : i32
    return %c0_i32, %c0_i32_0 : i32, i32
  }
  func.func @transform_2(%arg0: i32) -> (i32, i32) {
    %c0_i32 = arith.constant 0 : i32
    %c0_i32_0 = arith.constant 0 : i32
    %c0_i32_1 = arith.constant 0 : i32
    return %c0_i32, %c0_i32_0 : i32, i32
  }
  func.func @transform_3(%arg0: i32) -> (i32, i32) {
    %c0_i32 = arith.constant 0 : i32
    %c0_i32_0 = arith.constant 0 : i32
    %c0_i32_1 = arith.constant 0 : i32
    return %c0_i32, %c0_i32_0 : i32, i32
  }
  func.func @transform_4(%arg0: i32) -> (i32, i32) {
    %c0_i32 = arith.constant 0 : i32
    %c0_i32_0 = arith.constant 0 : i32
    %c0_i32_1 = arith.constant 0 : i32
    return %c0_i32, %c0_i32_0 : i32, i32
  }
  func.func @transform_5(%arg0: i32) -> (i32, i32) {
    %c0_i32 = arith.constant 0 : i32
    %c0_i32_0 = arith.constant 0 : i32
    return %arg0, %c0_i32 : i32, i32
  }
}

</mosaic_0001>

<bundles_post_ra>
// kernel: tpu_custom_call.1
= control target key start
LH: loop header
LB: loop body
LE: loop exit
PB: predicated region body
PF: predicated region fallthrough
CT: control target
= control target key end

     0   :  { %10 = vsyncpa [#allocation3], 0  ;;  %s5645_s0 = inlined_call_operand.hbm [shape: f32[16,384], index: 0, kind: input, shape index: {}]   ;;  %s5646_s1 = inlined_call_operand.hbm [shape: f32[384,1536], index: 1, kind: input, shape index: {}]   ;;  %s5647_s2 = inlined_call_operand.hbm [shape: f32[1,1536], index: 2, kind: input, shape index: {}]   ;;  %s5648_s3 = inlined_call_operand.hbm [shape: f32[1536,384], index: 3, kind: input, shape index: {}]   ;;  %s5649_s4 = inlined_call_operand.hbm [shape: f32[1,384], index: 4, kind: input, shape index: {}]   ;;  %s5650_s5 = inlined_call_operand.hbm [shape: f32[16,384], index: 5, kind: output, shape index: {}]  }
   0x1   :  { %12 = vsyncpa [#allocation3 + $0x1], 0 }
   0x2   :  { %13 = vsyncpa [#allocation6], 0 }
   0x3   :  { %14 = vsyncpa [#allocation9], 0 }
   0x4   :  { %15 = vsyncpa [#allocation4], 0 }
   0x5   :  { %17 = vsyncpa [#allocation4 + $0x1], 0  ;;  %s5212_s18 = smov 0   ;;  %s5214_s19 = smov 0  }
   0x6   :  { %s5216_s20 = smov 0   ;;  %s5218_s21 = smov 0  }
   0x7 LB: > { %s5171_s22 = smov [#allocation5]   ;;  %s5233_s24 = sadd.s32 4294967295, %s5169_s21   ;;  %s5169_s21 = sphi %s5218_s21, %s5673_s21   ;;  %s5165_s20 = sphi %s5216_s20, %s5672_s20   ;;  %s5161_s19 = sphi %s5214_s19, %s5671_s19   ;;  %s5157_s18 = sphi %s5212_s18, %s5670_s18  }
   0x8   : > { %s176_s23 = sshll.u32 %s5171_s22, 4  ;;  %p3416_p0 = scmp.ge.s32.totalorder %s5169_s21, 1  ;;  %s5238_s23 = int_to_ptr.vmem [resolvable:$true] %s176_s23 }
   0x9   : > { %p5651_p1 = scmp.eq.s32.totalorder %s5233_s24, 0  ;;  %p164_p2 = scmp.lt.s32.totalorder %s5169_s21, 3 }
   0xa   : > { %s5172_s26 = smov [#allocation8]   ;;  %s5173_s29 = smov [#allocation7]  }
   0xb   : > { %p5240_p3 = pnand %p3416_p0, %p164_p2  ;;  %s200_s27 = sshll.u32 %s5172_s26, 4  ;;  %s5253_s27 = int_to_ptr.vmem [resolvable:$true] %s200_s27 }
   0xc   : > { %s5255_s30 = sshll.u32 %s5173_s29, 4  ;;  %s4953_s8 = scalar_lea.hbm %s5646_s1, 73728  ;;  %s191_s30 = int_to_ptr.vmem [resolvable:$true] %s5255_s30 }
   0xd   : > { %s5654_s25 = scalar_select %p5240_p3, 1, 0 }
   0xe   : > { %p4853_p5 = pneg %p5240_p3  ;;  %p4954_p7 = scmp.ne.s32.totalorder %s5646_s1, %s4953_s8 }
   0xf   : > { %p4960_p11 = scmp.lt.u32.totalorder %s4953_s8, %s5646_s1 }
  0x10   : > { %p5249_p6 = pnand %p4853_p5, %p5651_p1 }
  0x12   : > { %p5265_p8 = pneg %p5249_p6 }
  0x14   : > { %p4956_p9 = pnand %p5265_p8, %p4954_p7 }
  0x16   : > { %p4957_p10 = pneg %p4956_p9 }
  0x18   : > { %p4962_p12 = pnand %p4960_p11, %p4957_p10 }
  0x1a   : > { %4965 = shalt.err (!%p4962_p12)
}
  0x1b   : > { %s4966_s14 = scalar_lea.vmem %s5238_s23, 73728  ;;  %p4974_p5 = scmp.lt.s32.totalorder %s5238_s23, %s5238_s23 }
  0x1c   : > { %p4967_p13 = scmp.ne.s32.totalorder %s5238_s23, %s4966_s14  ;;  %p4975_p4 = scmp.lt.s32.totalorder %s4966_s14, %s4966_s14 }
  0x1e   : > { %p4969_p0 = pnand %p4967_p13, %p5265_p8  ;;  %p4976_p7 = por %p4975_p4, %p4974_p5 }
  0x20   : > { %p4970_p2 = pneg %p4969_p0 }
  0x22   : > { %p4977_p9 = pnand %p4976_p7, %p4970_p2 }
  0x24   : > { %4980 = shalt.err (!%p4977_p9)
}
  0x25   : > { %s5174_s15 = smov 1536   ;;  %s5175_s16 = smov 96  }
  0x26   : > { %4856 = dma.hbm_to_vmem [thread:$0]  (!%p5249_p6), %s5646_s1, 73728, %s5238_s23, [#allocation6], %s5174_s15, %s5174_s15, %s5175_s16  }
  0x27   : > { %s4981_s6 = scalar_lea.hbm %s5648_s3, 73728 }
  0x28   : > { %p4982_p4 = scmp.ne.s32.totalorder %s5648_s3, %s4981_s6  ;;  %p4988_p12 = scmp.lt.u32.totalorder %s4981_s6, %s5648_s3 }
  0x2a   : > { %p4984_p10 = pnand %p4982_p4, %p5265_p8 }
  0x2c   : > { %p4985_p11 = pneg %p4984_p10 }
  0x2e   : > { %p4990_p13 = pnand %p4988_p12, %p4985_p11 }
  0x30   : > { %4993 = shalt.err (!%p4990_p13)
}
  0x31   : > { %s4994_s23 = scalar_lea.vmem %s5253_s27, 73728  ;;  %p5002_p7 = scmp.lt.s32.totalorder %s5253_s27, %s5253_s27 }
  0x32   : > { %p4995_p0 = scmp.ne.s32.totalorder %s5253_s27, %s4994_s23  ;;  %p5003_p9 = scmp.lt.s32.totalorder %s4994_s23, %s4994_s23 }
  0x34   : > { %p4997_p2 = pnand %p4995_p0, %p5265_p8  ;;  %p5004_p4 = por %p5003_p9, %p5002_p7 }
  0x36   : > { %p4998_p5 = pneg %p4997_p2 }
  0x38   : > { %p5005_p10 = pnand %p5004_p4, %p4998_p5 }
  0x3a   : > { %5008 = shalt.err (!%p5005_p10)
}
  0x3b   : > { %s5176_s12 = smov 384   ;;  %s5177_s13 = smov 24  }
  0x3c   : > { %4862 = dma.hbm_to_vmem [thread:$0]  (!%p5249_p6), %s5648_s3, 73728, %s5253_s27, [#allocation9], %s5176_s12, %s5176_s12, %s5177_s13  }
  0x3d   : > { %s5009_s22 = scalar_lea.hbm %s5647_s2, 192 }
  0x3e   : > { %p5010_p11 = scmp.ne.s32.totalorder %s5647_s2, %s5009_s22  ;;  %p5016_p0 = scmp.lt.u32.totalorder %s5009_s22, %s5647_s2 }
  0x40   : > { %p5012_p12 = pnand %p5010_p11, %p5265_p8 }
  0x42   : > { %p5013_p13 = pneg %p5012_p12 }
  0x44   : > { %p5018_p2 = pnand %p5016_p0, %p5013_p13 }
  0x46   : > { %5021 = shalt.err (!%p5018_p2)
}
  0x47   : > { %s5022_s8 = scalar_lea.vmem %s191_s30, 192  ;;  %p5030_p4 = scmp.lt.s32.totalorder %s191_s30, %s191_s30 }
  0x48   : > { %p5023_p5 = scmp.ne.s32.totalorder %s191_s30, %s5022_s8  ;;  %p5031_p10 = scmp.lt.s32.totalorder %s5022_s8, %s5022_s8 }
  0x4a   : > { %p5025_p7 = pnand %p5023_p5, %p5265_p8  ;;  %p5032_p1 = por %p5031_p10, %p5030_p4 }
  0x4c   : > { %p5026_p9 = pneg %p5025_p7 }
  0x4e   : > { %p5033_p3 = pnand %p5032_p1, %p5026_p9 }
  0x50   : > { %5036 = shalt.err (!%p5033_p3)
}
  0x51   : > { %4859 = dma.hbm_to_vmem [thread:$0]  (!%p5249_p6), %s5647_s2, 192, %s191_s30, [#allocation6]  }
  0x52   : > { %s5178_s10 = smov [#allocation10]   ;;  %s5037_s14 = scalar_lea.hbm %s5649_s4, 48 }
  0x53   : > { %s214_s23 = sshll.u32 %s5178_s10, 4  ;;  %p5038_p11 = scmp.ne.s32.totalorder %s5649_s4, %s5037_s14  ;;  %s215_s23 = int_to_ptr.vmem [resolvable:$true] %s214_s23 }
  0x54   : > { %p5044_p12 = scmp.lt.u32.totalorder %s5037_s14, %s5649_s4 }
  0x55   : > { %p5040_p1 = pnand %p5038_p11, %p5265_p8 }
  0x57   : > { %p5041_p3 = pneg %p5040_p1 }
  0x59   : > { %p5046_p13 = pnand %p5044_p12, %p5041_p3 }
  0x5b   : > { %5049 = shalt.err (!%p5046_p13)
}
  0x5c   : > { %s5050_s30 = scalar_lea.vmem %s215_s23, 48  ;;  %s5057_s26 = scalar_lea.vmem %s215_s23, 64 }
  0x5d   : > { %p5051_p0 = scmp.ne.s32.totalorder %s215_s23, %s5050_s30  ;;  %p5058_p7 = scmp.lt.s32.totalorder %s215_s23, %s215_s23 }
  0x5e   : > { %p5059_p9 = scmp.lt.s32.totalorder %s5057_s26, %s5050_s30 }
  0x5f   : > { %p5053_p2 = pnand %p5051_p0, %p5265_p8 }
  0x60   : > { %p5060_p4 = por %p5059_p9, %p5058_p7 }
  0x61   : > { %p5054_p5 = pneg %p5053_p2 }
  0x63   : > { %p5061_p10 = pnand %p5060_p4, %p5054_p5 }
  0x65   : > { %5064 = shalt.err (!%p5061_p10)
}
  0x66   : > { %4865 = dma.hbm_to_vmem [thread:$0]  (!%p5249_p6), %s5649_s4, 48, %s215_s23, [#allocation9]  }
  0x67   : > { %s3415_s11 = sadd.s32 4294967294, %s5169_s21   ;;  %s5348_s28 = sadd.s32 1, %s5169_s21  }
  0x68   : > { %s27_s7 = ssub.s32 %s5169_s21, %s5348_s28  ;;  %s30_s8 = sadd.s32 1, %s5165_s20 }
  0x69   : > { %p28_p8 = scmp.eq.s32.totalorder %s27_s7, 0  ;;  %p37_p11 = scmp.ne.s32.totalorder %s5165_s20, %s5161_s19 }
  0x6a   : > { %p38_p1 = scmp.eq.s32.totalorder %s5169_s21, 0  ;;  %p43_p3 = scmp.ne.s32.totalorder %s5161_s19, %s5157_s18 }
  0x6b   : > { %s5359_s27 = scalar_select %p28_p8, %s5165_s20, %s30_s8  }
  0x6c   : > { %p39_p12 = por %p38_p1, %p37_p11  ;;  %p5657_p13 = scmp.eq.s32.totalorder %s5233_s24, 0 }
  0x6d   : > { %p151_p6 = scmp.eq.s32.totalorder %s5233_s24, 1  ;;  %p157_p2 = scmp.eq.s32.totalorder %s3415_s11, 1 }
  0x6e   : > { %p5363_p0 = por %p5657_p13, %p43_p3  ;;  %p4878_p5 = scmp.lt.s32.totalorder %s5169_s21, 2 }
  0x6f   : > { %s225_s10 = sand.u32 1, %s5165_s20   ;;  %p5370_p7 = por %p151_p6, %p37_p11 }
  0x70   : > { %p5374_p9 = por %p157_p2, %p43_p3  ;;  %s4829_s13 = smul.u32 24, %s225_s10 }
  0x71   : > { %s5659_s23 = scalar_select %p5370_p7, 1, 0 }
  0x72   : > { %s5660_s12 = scalar_select %p5374_p9, 1, 0 }
  0x73   : > { %s4830_s14 = smul.u32 384, %s5169_s21  ;;  %p5379_p4 = pnand %p4878_p5, %p39_p12 }
  0x74   : > { %s229_s30 = scalar_lea.vmem [#allocation2], %s4829_s13  ;;  %s226_s29 = scalar_lea.sflag [#allocation3], %s225_s10 }
  0x75   : > { %s5386_s22 = scalar_lea.hbm %s5645_s0, %s4830_s14  ;;  %s237_s26 = sshll.u32 %s229_s30, 4  ;;  %s5388_s26 = int_to_ptr.vmem [resolvable:$true] %s237_s26 }
  0x76   : > { %s5065_s6 = scalar_lea.hbm %s5386_s22, 384  ;;  %p5067_p8 = pneg %p5379_p4 }
  0x77   : > { %p5066_p10 = scmp.ne.s32.totalorder %s5386_s22, %s5065_s6  ;;  %s5070_s8 = scalar_lea.hbm %s5645_s0, 768 }
  0x78   : > { %p5071_p3 = scmp.lt.u32.totalorder %s5386_s22, %s5645_s0  ;;  %p5072_p12 = scmp.lt.u32.totalorder %s5070_s8, %s5065_s6 }
  0x79   : > { %p5068_p11 = pnand %p5067_p8, %p5066_p10  ;;  %p5074_p6 = scmp.lt.u32.totalorder %s5065_s6, %s5386_s22 }
  0x7a   : > { %p5073_p13 = por %p5072_p12, %p5071_p3 }
  0x7b   : > { %p5069_p1 = pneg %p5068_p11 }
  0x7c   : > { %p5075_p2 = por %p5074_p6, %p5073_p13 }
  0x7e   : > { %p5076_p5 = pnand %p5075_p2, %p5069_p1 }
  0x80   : > { %5079 = shalt.err (!%p5076_p5)
}
  0x81   : > { %s5080_s10 = scalar_lea.vmem %s5388_s26, 384  ;;  %s5179_s13 = smov [#allocation2]  }
  0x82   : > { %p5081_p10 = scmp.ne.s32.totalorder %s5388_s26, %s5080_s10  ;;  %s5085_s17 = sshll.u32 %s5179_s13, 4  ;;  %s5086_s17 = int_to_ptr.vmem [resolvable:$false] %s5085_s17 }
  0x83   : > { %s5087_s30 = scalar_lea.vmem %s5086_s17, 768  ;;  %p5088_p7 = scmp.lt.s32.totalorder %s5388_s26, %s5086_s17 }
  0x84   : > { %p5083_p11 = pnand %p5081_p10, %p5067_p8  ;;  %p5089_p3 = scmp.lt.s32.totalorder %s5087_s30, %s5080_s10 }
  0x86   : > { %p5084_p9 = pneg %p5083_p11  ;;  %p5090_p12 = por %p5089_p3, %p5088_p7 }
  0x88   : > { %p5091_p13 = pnand %p5090_p12, %p5084_p9 }
  0x8a   : > { %5094 = shalt.err (!%p5091_p13)
}
  0x8b   : > { %4869 = dma.hbm_to_vmem [thread:$0]  (!%p5379_p4), %s5386_s22, 384, %s5388_s26, %s226_s29  }
  0x8c   : > { %p5662_p1 = scmp.ne.s32.totalorder %s5654_s25, 0 }
  0x8d   : > { %s5418_s6 = sand.u32 (!%p5662_p1), 1, %s5161_s19  }
  0x8e   : > { %246 = sbr.rel (%p5662_p1) target bundleno = 1070 (0x42e), region = 40  ;;  %s249_s7 = scalar_lea.sflag (!%p5662_p1), [#allocation3], %s5418_s6 }
  0x8f   : > { %s4831_s11 = smul.u32 (!%p5662_p1), 24, %s5418_s6 }
  0x91   : > { %s5424_s8 = scalar_lea.vmem (!%p5662_p1), [#allocation2], %s4831_s11 }
  0x95   : > { %5140 = dma.done.wait (%p5363_p0), %s249_s7, 384  }
  0x96   : > { %5142 = vsyncadd (%p5363_p0), %s249_s7, 4294966912  ;;  %p5663_p7 = scmp.eq.s32.totalorder %s5233_s24, 0 }
  0x98   : > { %5144 = dma.done.wait (%p5663_p7), [#allocation6], 73920   ;;  %p5664_p9 = pmov %p5663_p7 }
  0x99   : > { %p5665_p4 = pmov %p5663_p7 }
  0x9a   : > { %5146 = vsyncadd (%p5664_p9), [#allocation6], 4294893376 }
  0x9b   : > { %5148 = dma.done.wait (%p5665_p4), [#allocation9], 73776   ;;  %p5666_p8 = pmov %p5665_p4 }
  0x9c   : > { %v299_v0 = vld [vmem:[#allocation5 + $0x8] sm:$0xff]  ;;  %v298_v2 = vld [vmem:[#allocation5] sm:$0xff]  ;;  %v5439_v51 = vld [vmem:[%s5424_s8 + $0x8] sm:$0xff]  ;;  %s294_s25 = scalar_lea.vmem [#allocation11], %s4831_s11  ;;  %s4832_s9 = smul.u32 384, %s5233_s24 }
  0x9d   : > { %5150 = vsyncadd (%p5666_p8), [#allocation9], 4294893520  ;;  %v311_v1 = vld [vmem:[#allocation5 + $0x68] sm:$0xff]  ;;  %v310_v4 = vld [vmem:[#allocation5 + $0x60] sm:$0xff]  ;;  %1002 = vmatprep.mubr.f32.mxu1 %v5439_v51  ;;  %1286 = vmatprep.mubr.f32.mxu0 %v5439_v51  ;;  %s3307_s15 = sshll.u32 %s294_s25, 4  ;;  %s3293_s14 = scalar_lea.sflag [#allocation4], %s5418_s6  ;;  %s5603_s15 = int_to_ptr.vmem [resolvable:$true] %s3307_s15 }
  0x9e   : > { %v3641_v3 = vpack.c.bf16 %v311_v1, %v299_v0  ;;  %v323_v5 = vld [vmem:[#allocation5 + $0xc8] sm:$0xff]  ;;  %v3643_v7 = vpack.c.bf16 %v310_v4, %v298_v2  ;;  %v322_v9 = vld [vmem:[#allocation5 + $0xc0] sm:$0xff]  ;;  %s5601_s29 = scalar_lea.hbm %s5650_s5, %s4832_s9  ;;  %s5095_s16 = scalar_lea.vmem %s5603_s15, 384 }
  0x9f   : > { %v335_v6 = vld [vmem:[#allocation5 + $0x128] sm:$0xff]  ;;  %v334_v10 = vld [vmem:[#allocation5 + $0x120] sm:$0xff]  ;;  %p5096_p0 = scmp.ne.s32.totalorder %s5603_s15, %s5095_s16  ;;  %p5667_p6 = scmp.ne.s32.totalorder %s5659_s23, 0 }
  0xa0   : > { %v3645_v8 = vpack.c.bf16 %v335_v6, %v323_v5  ;;  %v347_v11 = vld [vmem:[#allocation5 + $0x188] sm:$0xff]  ;;  %3642 = vmatprep.subr.bf16.mxu1 %v3641_v3  ;;  %v3647_v13 = vpack.c.bf16 %v334_v10, %v322_v9  ;;  %v346_v15 = vld [vmem:[#allocation5 + $0x180] sm:$0xff]  ;;  %s5181_s24 = smov [#allocation11]  }
  0xa1   : > { %v359_v12 = vld [vmem:[#allocation5 + $0x1e8] sm:$0xff]  ;;  %3644 = vmatpush1.bf16.msra.mxu1 %v3643_v7  ;;  %v358_v16 = vld [vmem:[#allocation5 + $0x1e0] sm:$0xff]  ;;  %p5097_p2 = pnand %p5096_p0, %p5667_p6  ;;  %s5099_s10 = sshll.u32 %s5181_s24, 4  ;;  %s5100_s10 = int_to_ptr.vmem [resolvable:$false] %s5099_s10 }
  0xa2   : > { %3646 = vmatprep.subr.bf16.mxu1 %v3645_v8  ;;  %v3649_v14 = vpack.c.bf16 %v359_v12, %v347_v11  ;;  %v371_v17 = vld [vmem:[#allocation5 + $0x248] sm:$0xff]  ;;  %v3651_v19 = vpack.c.bf16 %v358_v16, %v346_v15  ;;  %v370_v21 = vld [vmem:[#allocation5 + $0x240] sm:$0xff]  ;;  %s5101_s13 = scalar_lea.vmem %s5100_s10, 768  ;;  %p5102_p10 = scmp.lt.s32.totalorder %s5603_s15, %s5100_s10 }
  0xa3   : > { %v383_v18 = vld [vmem:[#allocation5 + $0x2a8] sm:$0xff]  ;;  %v382_v22 = vld [vmem:[#allocation5 + $0x2a0] sm:$0xff]  ;;  %p5098_p5 = pneg %p5097_p2  ;;  %p5103_p11 = scmp.lt.s32.totalorder %s5101_s13, %s5095_s16 }
  0xa4   : > { %v3653_v20 = vpack.c.bf16 %v383_v18, %v371_v17  ;;  %v395_v23 = vld [vmem:[#allocation5 + $0x308] sm:$0xff]  ;;  %v3655_v25 = vpack.c.bf16 %v382_v22, %v370_v21  ;;  %v394_v27 = vld [vmem:[#allocation5 + $0x300] sm:$0xff] }
  0xa5   : > { %3648 = vmatpush1.bf16.msra.mxu1 %v3647_v13  ;;  %v407_v24 = vld [vmem:[#allocation5 + $0x368] sm:$0xff]  ;;  %v406_v28 = vld [vmem:[#allocation5 + $0x360] sm:$0xff]  ;;  %p5104_p3 = por %p5103_p11, %p5102_p10 }
  0xa6   : > { %3650 = vmatprep.subr.bf16.mxu1 %v3649_v14  ;;  %v3657_v26 = vpack.c.bf16 %v407_v24, %v395_v23  ;;  %v419_v29 = vld [vmem:[#allocation5 + $0x3c8] sm:$0xff]  ;;  %v3659_v31 = vpack.c.bf16 %v406_v28, %v394_v27  ;;  %v418_v33 = vld [vmem:[#allocation5 + $0x3c0] sm:$0xff] }
  0xa7   : > { %v431_v30 = vld [vmem:[#allocation5 + $0x428] sm:$0xff]  ;;  %v430_v34 = vld [vmem:[#allocation5 + $0x420] sm:$0xff]  ;;  %p5105_p12 = pnand %p5104_p3, %p5098_p5 }
  0xa8   : > { %v3661_v32 = vpack.c.bf16 %v431_v30, %v419_v29  ;;  %v443_v35 = vld [vmem:[#allocation5 + $0x488] sm:$0xff]  ;;  %v3663_v37 = vpack.c.bf16 %v430_v34, %v418_v33  ;;  %v442_v38 = vld [vmem:[#allocation5 + $0x480] sm:$0xff] }
  0xa9   : > { %3652 = vmatpush1.bf16.msra.mxu1 %v3651_v19  ;;  %v455_v36 = vld [vmem:[#allocation5 + $0x4e8] sm:$0xff]  ;;  %v454_v42 = vld [vmem:[#allocation5 + $0x4e0] sm:$0xff] }
  0xaa   : > { %3654 = vmatprep.subr.bf16.mxu1 %v3653_v20  ;;  %v303_v39 = vld [vmem:[#allocation5 + $0x28] sm:$0xff]  ;;  %v3665_v41 = vpack.c.bf16 %v455_v36, %v443_v35  ;;  %v302_v44 = vld [vmem:[#allocation5 + $0x20] sm:$0xff]  ;;  %v3667_v52 = vpack.c.bf16 %v454_v42, %v442_v38 }
  0xab   : > { %v315_v40 = vld [vmem:[#allocation5 + $0x88] sm:$0xff]  ;;  %v314_v45 = vld [vmem:[#allocation5 + $0x80] sm:$0xff] }
  0xac   : > { %v3833_v43 = vpack.c.bf16 %v315_v40, %v303_v39  ;;  %v467_v46 = vld [vmem:[#allocation5 + $0x548] sm:$0xff]  ;;  %v3835_v48 = vpack.c.bf16 %v314_v45, %v302_v44  ;;  %v326_v54 = vld [vmem:[#allocation5 + $0xe0] sm:$0xff] }
  0xad   : > { %3656 = vmatpush1.bf16.msra.mxu1 %v3655_v25  ;;  %v479_v47 = vld [vmem:[#allocation5 + $0x5a8] sm:$0xff]  ;;  %v338_v55 = vld [vmem:[#allocation5 + $0x140] sm:$0xff] }
  0xae   : > { %3658 = vmatprep.subr.bf16.mxu1 %v3657_v26  ;;  %v327_v49 = vld [vmem:[#allocation5 + $0xe8] sm:$0xff]  ;;  %3834 = vmatprep.subr.bf16.mxu0 %v3833_v43  ;;  %v3669_v56 = vpack.c.bf16 %v479_v47, %v467_v46  ;;  %v466_v57 = vld [vmem:[#allocation5 + $0x540] sm:$0xff]  ;;  %v3839_v60 = vpack.c.bf16 %v338_v55, %v326_v54 }
  0xaf   : > { %v339_v50 = vld [vmem:[#allocation5 + $0x148] sm:$0xff]  ;;  %3836 = vmatpush1.bf16.msra.mxu0 %v3835_v48  ;;  %v478_v58 = vld [vmem:[#allocation5 + $0x5a0] sm:$0xff] }
  0xb0   : > { %v3837_v53 = vpack.c.bf16 %v339_v50, %v327_v49  ;;  %v491_v59 = vld [vmem:[#allocation5 + $0x608] sm:$0xff]  ;;  %v350_v1 = vld [vmem:[#allocation5 + $0x1a0] sm:$0xff]  ;;  %v3671_v3 = vpack.c.bf16 %v478_v58, %v466_v57 }
  0xb1   : > { %3660 = vmatpush1.bf16.msra.mxu1 %v3659_v31  ;;  %v503_v61 = vld [vmem:[#allocation5 + $0x668] sm:$0xff]  ;;  %v362_v2 = vld [vmem:[#allocation5 + $0x200] sm:$0xff] }
  0xb2   : > { %3662 = vmatprep.subr.bf16.mxu1 %v3661_v32  ;;  %3838 = vmatprep.subr.bf16.mxu0 %v3837_v53  ;;  %v351_v62 = vld [vmem:[#allocation5 + $0x1a8] sm:$0xff]  ;;  %v490_v4 = vld [vmem:[#allocation5 + $0x600] sm:$0xff]  ;;  %v3843_v5 = vpack.c.bf16 %v362_v2, %v350_v1  ;;  %v3673_v7 = vpack.c.bf16 %v503_v61, %v491_v59 }
  0xb3   : > { %v363_v63 = vld [vmem:[#allocation5 + $0x208] sm:$0xff]  ;;  %3840 = vmatpush1.bf16.msra.mxu0 %v3839_v60  ;;  %v502_v8 = vld [vmem:[#allocation5 + $0x660] sm:$0xff] }
  0xb4   : > { %v3841_v0 = vpack.c.bf16 %v363_v63, %v351_v62  ;;  %v375_v6 = vld [vmem:[#allocation5 + $0x268] sm:$0xff]  ;;  %v374_v13 = vld [vmem:[#allocation5 + $0x260] sm:$0xff]  ;;  %v3675_v17 = vpack.c.bf16 %v502_v8, %v490_v4 }
  0xb5   : > { %3664 = vmatpush1.bf16.msra.mxu1 %v3663_v37  ;;  %v515_v9 = vld [vmem:[#allocation5 + $0x6c8] sm:$0xff]  ;;  %v386_v14 = vld [vmem:[#allocation5 + $0x2c0] sm:$0xff] }
  0xb6   : > { %3666 = vmatprep.subr.bf16.mxu1 %v3665_v41  ;;  %3842 = vmatprep.subr.bf16.mxu0 %v3841_v0  ;;  %v387_v10 = vld [vmem:[#allocation5 + $0x2c8] sm:$0xff]  ;;  %v514_v18 = vld [vmem:[#allocation5 + $0x6c0] sm:$0xff]  ;;  %v3847_v20 = vpack.c.bf16 %v386_v14, %v374_v13 }
  0xb7   : > { %v527_v11 = vld [vmem:[#allocation5 + $0x728] sm:$0xff]  ;;  %v3845_v12 = vpack.c.bf16 %v387_v10, %v375_v6  ;;  %v526_v19 = vld [vmem:[#allocation5 + $0x720] sm:$0xff]  ;;  %3844 = vmatpush1.bf16.msra.mxu0 %v3843_v5 }
  0xb8   : > { %v399_v15 = vld [vmem:[#allocation5 + $0x328] sm:$0xff]  ;;  %v3677_v21 = vpack.c.bf16 %v527_v11, %v515_v9  ;;  %v398_v24 = vld [vmem:[#allocation5 + $0x320] sm:$0xff]  ;;  %v3679_v29 = vpack.c.bf16 %v526_v19, %v514_v18 }
  0xb9   : > { %3668 = vmatpush1.bf16.msra.mxu1 %v3667_v52  ;;  %v411_v16 = vld [vmem:[#allocation5 + $0x388] sm:$0xff]  ;;  %3846 = vmatprep.subr.bf16.mxu0 %v3845_v12  ;;  %v410_v25 = vld [vmem:[#allocation5 + $0x380] sm:$0xff] }
  0xba   : > { %3670 = vmatprep.subr.bf16.mxu1 %v3669_v56  ;;  %v539_v22 = vld [vmem:[#allocation5 + $0x788] sm:$0xff]  ;;  %v3849_v23 = vpack.c.bf16 %v411_v16, %v399_v15  ;;  %v538_v30 = vld [vmem:[#allocation5 + $0x780] sm:$0xff]  ;;  %v3851_v32 = vpack.c.bf16 %v410_v25, %v398_v24 }
  0xbb   : > { %v551_v26 = vld [vmem:[#allocation5 + $0x7e8] sm:$0xff]  ;;  %v550_v31 = vld [vmem:[#allocation5 + $0x7e0] sm:$0xff]  ;;  %3848 = vmatpush1.bf16.msra.mxu0 %v3847_v20 }
  0xbc   : > { %v423_v27 = vld [vmem:[#allocation5 + $0x3e8] sm:$0xff]  ;;  %v3681_v33 = vpack.c.bf16 %v551_v26, %v539_v22  ;;  %3850 = vmatprep.subr.bf16.mxu0 %v3849_v23  ;;  %v422_v36 = vld [vmem:[#allocation5 + $0x3e0] sm:$0xff]  ;;  %v3683_v41 = vpack.c.bf16 %v550_v31, %v538_v30 }
  0xbd   : > { %3672 = vmatpush1.bf16.msra.mxu1 %v3671_v3  ;;  %v435_v28 = vld [vmem:[#allocation5 + $0x448] sm:$0xff]  ;;  %v434_v37 = vld [vmem:[#allocation5 + $0x440] sm:$0xff] }
  0xbe   : > { %3674 = vmatprep.subr.bf16.mxu1 %v3673_v7  ;;  %v563_v34 = vld [vmem:[#allocation5 + $0x848] sm:$0xff]  ;;  %v3853_v35 = vpack.c.bf16 %v435_v28, %v423_v27  ;;  %v562_v42 = vld [vmem:[#allocation5 + $0x840] sm:$0xff]  ;;  %v3855_v44 = vpack.c.bf16 %v434_v37, %v422_v36 }
  0xbf   : > { %v575_v38 = vld [vmem:[#allocation5 + $0x8a8] sm:$0xff]  ;;  %v574_v43 = vld [vmem:[#allocation5 + $0x8a0] sm:$0xff]  ;;  %3852 = vmatpush1.bf16.msra.mxu0 %v3851_v32 }
  0xc0   : > { %v447_v39 = vld [vmem:[#allocation5 + $0x4a8] sm:$0xff]  ;;  %v3685_v45 = vpack.c.bf16 %v575_v38, %v563_v34  ;;  %3854 = vmatprep.subr.bf16.mxu0 %v3853_v35  ;;  %v446_v48 = vld [vmem:[#allocation5 + $0x4a0] sm:$0xff]  ;;  %v3687_v54 = vpack.c.bf16 %v574_v43, %v562_v42 }
  0xc1   : > { %3676 = vmatpush1.bf16.msra.mxu1 %v3675_v17  ;;  %v459_v40 = vld [vmem:[#allocation5 + $0x508] sm:$0xff]  ;;  %v458_v49 = vld [vmem:[#allocation5 + $0x500] sm:$0xff] }
  0xc2   : > { %3678 = vmatprep.subr.bf16.mxu1 %v3677_v21  ;;  %v587_v46 = vld [vmem:[#allocation5 + $0x908] sm:$0xff]  ;;  %v3857_v47 = vpack.c.bf16 %v459_v40, %v447_v39  ;;  %v586_v55 = vld [vmem:[#allocation5 + $0x900] sm:$0xff]  ;;  %v3859_v57 = vpack.c.bf16 %v458_v49, %v446_v48 }
  0xc3   : > { %v599_v50 = vld [vmem:[#allocation5 + $0x968] sm:$0xff]  ;;  %v598_v56 = vld [vmem:[#allocation5 + $0x960] sm:$0xff]  ;;  %3856 = vmatpush1.bf16.msra.mxu0 %v3855_v44 }
  0xc4   : > { %v471_v52 = vld [vmem:[#allocation5 + $0x568] sm:$0xff]  ;;  %v3689_v58 = vpack.c.bf16 %v599_v50, %v587_v46  ;;  %3858 = vmatprep.subr.bf16.mxu0 %v3857_v47  ;;  %v470_v61 = vld [vmem:[#allocation5 + $0x560] sm:$0xff]  ;;  %v3691_v2 = vpack.c.bf16 %v598_v56, %v586_v55 }
  0xc5   : > { %3680 = vmatpush1.bf16.msra.mxu1 %v3679_v29  ;;  %v483_v53 = vld [vmem:[#allocation5 + $0x5c8] sm:$0xff]  ;;  %v482_v62 = vld [vmem:[#allocation5 + $0x5c0] sm:$0xff] }
  0xc6   : > { %3682 = vmatprep.subr.bf16.mxu1 %v3681_v33  ;;  %v611_v59 = vld [vmem:[#allocation5 + $0x9c8] sm:$0xff]  ;;  %v3861_v60 = vpack.c.bf16 %v483_v53, %v471_v52  ;;  %v610_v3 = vld [vmem:[#allocation5 + $0x9c0] sm:$0xff]  ;;  %v3863_v5 = vpack.c.bf16 %v482_v62, %v470_v61 }
  0xc7   : > { %v623_v63 = vld [vmem:[#allocation5 + $0xa28] sm:$0xff]  ;;  %v622_v4 = vld [vmem:[#allocation5 + $0xa20] sm:$0xff]  ;;  %3860 = vmatpush1.bf16.msra.mxu0 %v3859_v57 }
  0xc8   : > { %v495_v0 = vld [vmem:[#allocation5 + $0x628] sm:$0xff]  ;;  %v3693_v6 = vpack.c.bf16 %v623_v63, %v611_v59  ;;  %3862 = vmatprep.subr.bf16.mxu0 %v3861_v60  ;;  %v494_v9 = vld [vmem:[#allocation5 + $0x620] sm:$0xff]  ;;  %v3695_v14 = vpack.c.bf16 %v622_v4, %v610_v3 }
  0xc9   : > { %3684 = vmatpush1.bf16.msra.mxu1 %v3683_v41  ;;  %v507_v1 = vld [vmem:[#allocation5 + $0x688] sm:$0xff]  ;;  %v506_v10 = vld [vmem:[#allocation5 + $0x680] sm:$0xff] }
  0xca   : > { %3686 = vmatprep.subr.bf16.mxu1 %v3685_v45  ;;  %v635_v7 = vld [vmem:[#allocation5 + $0xa88] sm:$0xff]  ;;  %v3865_v8 = vpack.c.bf16 %v507_v1, %v495_v0  ;;  %v634_v15 = vld [vmem:[#allocation5 + $0xa80] sm:$0xff]  ;;  %v3867_v17 = vpack.c.bf16 %v506_v10, %v494_v9  ;;  %v5180_v1 = vmov 0.0  }
  0xcb   : > { %v647_v11 = vld [vmem:[#allocation5 + $0xae8] sm:$0xff]  ;;  %v646_v16 = vld [vmem:[#allocation5 + $0xae0] sm:$0xff]  ;;  %3864 = vmatpush1.bf16.msra.mxu0 %v3863_v5 }
  0xcc   : > { %v519_v12 = vld [vmem:[#allocation5 + $0x6e8] sm:$0xff]  ;;  %v3697_v18 = vpack.c.bf16 %v647_v11, %v635_v7  ;;  %3866 = vmatprep.subr.bf16.mxu0 %v3865_v8  ;;  %v518_v21 = vld [vmem:[#allocation5 + $0x6e0] sm:$0xff]  ;;  %v3699_v26 = vpack.c.bf16 %v646_v16, %v634_v15 }
  0xcd   : > { %3688 = vmatpush1.bf16.msra.mxu1 %v3687_v54  ;;  %v531_v13 = vld [vmem:[#allocation5 + $0x748] sm:$0xff]  ;;  %v530_v22 = vld [vmem:[#allocation5 + $0x740] sm:$0xff] }
  0xce   : > { %3690 = vmatprep.subr.bf16.mxu1 %v3689_v58  ;;  %v659_v19 = vld [vmem:[#allocation5 + $0xb48] sm:$0xff]  ;;  %v3869_v20 = vpack.c.bf16 %v531_v13, %v519_v12  ;;  %v658_v27 = vld [vmem:[#allocation5 + $0xb40] sm:$0xff]  ;;  %v3871_v29 = vpack.c.bf16 %v530_v22, %v518_v21 }
  0xcf   : > { %v671_v23 = vld [vmem:[#allocation5 + $0xba8] sm:$0xff]  ;;  %v670_v28 = vld [vmem:[#allocation5 + $0xba0] sm:$0xff]  ;;  %3868 = vmatpush1.bf16.msra.mxu0 %v3867_v17 }
  0xd0   : > { %v543_v24 = vld [vmem:[#allocation5 + $0x7a8] sm:$0xff]  ;;  %v3701_v30 = vpack.c.bf16 %v671_v23, %v659_v19  ;;  %3870 = vmatprep.subr.bf16.mxu0 %v3869_v20  ;;  %v542_v33 = vld [vmem:[#allocation5 + $0x7a0] sm:$0xff]  ;;  %v3703_v38 = vpack.c.bf16 %v670_v28, %v658_v27 }
  0xd1   : > { %3692 = vmatpush1.bf16.msra.mxu1 %v3691_v2  ;;  %v555_v25 = vld [vmem:[#allocation5 + $0x808] sm:$0xff]  ;;  %v554_v34 = vld [vmem:[#allocation5 + $0x800] sm:$0xff] }
  0xd2   : > { %3694 = vmatprep.subr.bf16.mxu1 %v3693_v6  ;;  %v683_v31 = vld [vmem:[#allocation5 + $0xc08] sm:$0xff]  ;;  %v3873_v32 = vpack.c.bf16 %v555_v25, %v543_v24  ;;  %v3875_v39 = vpack.c.bf16 %v554_v34, %v542_v33  ;;  %v682_v41 = vld [vmem:[#allocation5 + $0xc00] sm:$0xff] }
  0xd3   : > { %v695_v35 = vld [vmem:[#allocation5 + $0xc68] sm:$0xff]  ;;  %3872 = vmatpush1.bf16.msra.mxu0 %v3871_v29  ;;  %v694_v42 = vld [vmem:[#allocation5 + $0xc60] sm:$0xff] }
  0xd4   : > { %v567_v36 = vld [vmem:[#allocation5 + $0x868] sm:$0xff]  ;;  %v3705_v40 = vpack.c.bf16 %v695_v35, %v683_v31  ;;  %3874 = vmatprep.subr.bf16.mxu0 %v3873_v32  ;;  %v566_v46 = vld [vmem:[#allocation5 + $0x860] sm:$0xff]  ;;  %v3707_v52 = vpack.c.bf16 %v694_v42, %v682_v41 }
  0xd5   : > { %3696 = vmatpush1.bf16.msra.mxu1 %v3695_v14  ;;  %v579_v37 = vld [vmem:[#allocation5 + $0x8c8] sm:$0xff]  ;;  %v578_v47 = vld [vmem:[#allocation5 + $0x8c0] sm:$0xff] }
  0xd6   : > { %3698 = vmatprep.subr.bf16.mxu1 %v3697_v18  ;;  %v707_v43 = vld [vmem:[#allocation5 + $0xcc8] sm:$0xff]  ;;  %v3877_v44 = vpack.c.bf16 %v579_v37, %v567_v36  ;;  %v706_v54 = vld [vmem:[#allocation5 + $0xcc0] sm:$0xff]  ;;  %v3879_v57 = vpack.c.bf16 %v578_v47, %v566_v46 }
  0xd7   : > { %v719_v45 = vld [vmem:[#allocation5 + $0xd28] sm:$0xff]  ;;  %3876 = vmatpush1.bf16.msra.mxu0 %v3875_v39  ;;  %v718_v55 = vld [vmem:[#allocation5 + $0xd20] sm:$0xff] }
  0xd8   : > { %v591_v48 = vld [vmem:[#allocation5 + $0x928] sm:$0xff]  ;;  %v3709_v53 = vpack.c.bf16 %v719_v45, %v707_v43  ;;  %3878 = vmatprep.subr.bf16.mxu0 %v3877_v44  ;;  %v590_v60 = vld [vmem:[#allocation5 + $0x920] sm:$0xff]  ;;  %v3711_v0 = vpack.c.bf16 %v718_v55, %v706_v54 }
  0xd9   : > { %3700 = vmatpush1.bf16.msra.mxu1 %v3699_v26  ;;  %v603_v49 = vld [vmem:[#allocation5 + $0x988] sm:$0xff]  ;;  %v602_v61 = vld [vmem:[#allocation5 + $0x980] sm:$0xff] }
  0xda   : > { %3702 = vmatprep.subr.bf16.mxu1 %v3701_v30  ;;  %v5444_v50 = vld [vmem:[%s5424_s8] sm:$0xff]  ;;  %v3881_v59 = vpack.c.bf16 %v603_v49, %v591_v48  ;;  %v730_v3 = vld [vmem:[#allocation5 + $0xd80] sm:$0xff]  ;;  %v3883_v6 = vpack.c.bf16 %v602_v61, %v590_v60 }
  0xdb   : > { %v731_v56 = vld [vmem:[#allocation5 + $0xd88] sm:$0xff]  ;;  %v742_v4 = vld [vmem:[#allocation5 + $0xde0] sm:$0xff]  ;;  %3880 = vmatpush1.bf16.msra.mxu0 %v3879_v57 }
  0xdc   : > { %v743_v58 = vld [vmem:[#allocation5 + $0xde8] sm:$0xff]  ;;  %3882 = vmatprep.subr.bf16.mxu0 %v3881_v59  ;;  %v614_v9 = vld [vmem:[#allocation5 + $0x9e0] sm:$0xff]  ;;  %v3715_v13 = vpack.c.bf16 %v742_v4, %v730_v3  ;;  %v301_v4 = vld [vmem:[#allocation5 + $0x18] sm:$0xff] }
  0xdd   : > { %3704 = vmatpush1.bf16.msra.mxu1 %v3703_v38  ;;  %v615_v62 = vld [vmem:[#allocation5 + $0x9e8] sm:$0xff]  ;;  %v3713_v2 = vpack.c.bf16 %v743_v58, %v731_v56  ;;  %v626_v10 = vld [vmem:[#allocation5 + $0xa40] sm:$0xff] }
  0xde   : > { %3706 = vmatprep.subr.bf16.mxu1 %v3705_v40  ;;  %v627_v63 = vld [vmem:[#allocation5 + $0xa48] sm:$0xff]  ;;  %v754_v15 = vld [vmem:[#allocation5 + $0xe40] sm:$0xff]  ;;  %v3887_v18 = vpack.c.bf16 %v626_v10, %v614_v9 }
  0xdf   : > { %v755_v5 = vld [vmem:[#allocation5 + $0xe48] sm:$0xff]  ;;  %v3885_v8 = vpack.c.bf16 %v627_v63, %v615_v62  ;;  %v766_v16 = vld [vmem:[#allocation5 + $0xea0] sm:$0xff]  ;;  %3884 = vmatpush1.bf16.msra.mxu0 %v3883_v6  ;;  %v313_v6 = vld [vmem:[#allocation5 + $0x78] sm:$0xff] }
  0xe0   : > { %1003 = vmatmul.mubr.f32.vlgmr.msra.gmra.mrb[0].mxu1 %v5444_v50  ;;  %v767_v7 = vld [vmem:[#allocation5 + $0xea8] sm:$0xff]  ;;  %v638_v21 = vld [vmem:[#allocation5 + $0xaa0] sm:$0xff]  ;;  %v3719_v25 = vpack.c.bf16 %v766_v16, %v754_v15  ;;  %v312_v15 = vld [vmem:[#allocation5 + $0x70] sm:$0xff] }
  0xe1   : > { %3708 = vmatpush1.bf16.msra.mxu1 %v3707_v52  ;;  %1073 = vmatprep.mubr.f32.mxu1 %v5180_v1  ;;  %v639_v11 = vld [vmem:[#allocation5 + $0xaa8] sm:$0xff]  ;;  %v3717_v14 = vpack.c.bf16 %v767_v7, %v755_v5  ;;  %v650_v22 = vld [vmem:[#allocation5 + $0xb00] sm:$0xff]  ;;  %v325_v16 = vld [vmem:[#allocation5 + $0xd8] sm:$0xff] }
  0xe2   : > { %3710 = vmatprep.subr.bf16.mxu1 %v3709_v53  ;;  %v651_v12 = vld [vmem:[#allocation5 + $0xb08] sm:$0xff]  ;;  %3886 = vmatprep.subr.bf16.mxu0 %v3885_v8  ;;  %v778_v27 = vld [vmem:[#allocation5 + $0xf00] sm:$0xff]  ;;  %v3891_v30 = vpack.c.bf16 %v650_v22, %v638_v21 }
  0xe3   : > { %v779_v17 = vld [vmem:[#allocation5 + $0xf08] sm:$0xff]  ;;  %v3889_v20 = vpack.c.bf16 %v651_v12, %v639_v11  ;;  %v790_v28 = vld [vmem:[#allocation5 + $0xf60] sm:$0xff]  ;;  %3888 = vmatpush1.bf16.msra.mxu0 %v3887_v18  ;;  %v337_v18 = vld [vmem:[#allocation5 + $0x138] sm:$0xff] }
  0xe4   : > { %v791_v19 = vld [vmem:[#allocation5 + $0xf68] sm:$0xff]  ;;  %v662_v33 = vld [vmem:[#allocation5 + $0xb60] sm:$0xff]  ;;  %v3723_v37 = vpack.c.bf16 %v790_v28, %v778_v27  ;;  %v324_v27 = vld [vmem:[#allocation5 + $0xd0] sm:$0xff] }
  0xe5   : > { %3712 = vmatpush1.bf16.msra.mxu1 %v3711_v0  ;;  %v663_v23 = vld [vmem:[#allocation5 + $0xb68] sm:$0xff]  ;;  %v3721_v26 = vpack.c.bf16 %v791_v19, %v779_v17  ;;  %3890 = vmatprep.subr.bf16.mxu0 %v3889_v20  ;;  %v674_v34 = vld [vmem:[#allocation5 + $0xbc0] sm:$0xff]  ;;  %v336_v28 = vld [vmem:[#allocation5 + $0x130] sm:$0xff] }
  0xe6   : > { %3714 = vmatprep.subr.bf16.mxu1 %v3713_v2  ;;  %v675_v24 = vld [vmem:[#allocation5 + $0xbc8] sm:$0xff]  ;;  %v802_v39 = vld [vmem:[#allocation5 + $0xfc0] sm:$0xff]  ;;  %v3895_v42 = vpack.c.bf16 %v674_v34, %v662_v33 }
  0xe7   : > { %v803_v29 = vld [vmem:[#allocation5 + $0xfc8] sm:$0xff]  ;;  %v3893_v32 = vpack.c.bf16 %v675_v24, %v663_v23  ;;  %v814_v40 = vld [vmem:[#allocation5 + $0x1020] sm:$0xff]  ;;  %3892 = vmatpush1.bf16.msra.mxu0 %v3891_v30 }
  0xe8   : > { %v815_v31 = vld [vmem:[#allocation5 + $0x1028] sm:$0xff]  ;;  %v686_v45 = vld [vmem:[#allocation5 + $0xc20] sm:$0xff]  ;;  %v3727_v49 = vpack.c.bf16 %v814_v40, %v802_v39  ;;  %v348_v39 = vld [vmem:[#allocation5 + $0x190] sm:$0xff] }
  0xe9   : > { %3716 = vmatpush1.bf16.msra.mxu1 %v3715_v13  ;;  %v687_v35 = vld [vmem:[#allocation5 + $0xc28] sm:$0xff]  ;;  %v3725_v38 = vpack.c.bf16 %v815_v31, %v803_v29  ;;  %3894 = vmatprep.subr.bf16.mxu0 %v3893_v32  ;;  %v698_v46 = vld [vmem:[#allocation5 + $0xc80] sm:$0xff]  ;;  %v3737_v13 = vpack.c.bf16 %v313_v6, %v301_v4  ;;  %v349_v29 = vld [vmem:[#allocation5 + $0x198] sm:$0xff] }
  0xea   : > { %3718 = vmatprep.subr.bf16.mxu1 %v3717_v14  ;;  %v699_v36 = vld [vmem:[#allocation5 + $0xc88] sm:$0xff]  ;;  %v826_v53 = vld [vmem:[#allocation5 + $0x1080] sm:$0xff]  ;;  %v3899_v56 = vpack.c.bf16 %v698_v46, %v686_v45  ;;  %v300_v14 = vld [vmem:[#allocation5 + $0x10] sm:$0xff] }
  0xeb   : > { %v827_v41 = vld [vmem:[#allocation5 + $0x1088] sm:$0xff]  ;;  %v3897_v44 = vpack.c.bf16 %v699_v36, %v687_v35  ;;  %v838_v54 = vld [vmem:[#allocation5 + $0x10e0] sm:$0xff]  ;;  %3896 = vmatpush1.bf16.msra.mxu0 %v3895_v42  ;;  %v361_v31 = vld [vmem:[#allocation5 + $0x1f8] sm:$0xff] }
  0xec   : > { %v839_v43 = vld [vmem:[#allocation5 + $0x10e8] sm:$0xff]  ;;  %v710_v59 = vld [vmem:[#allocation5 + $0xce0] sm:$0xff]  ;;  %v3731_v63 = vpack.c.bf16 %v838_v54, %v826_v53  ;;  %v360_v40 = vld [vmem:[#allocation5 + $0x1f0] sm:$0xff] }
  0xed   : > { %3720 = vmatpush1.bf16.msra.mxu1 %v3719_v25  ;;  %v711_v47 = vld [vmem:[#allocation5 + $0xce8] sm:$0xff]  ;;  %v3729_v52 = vpack.c.bf16 %v839_v43, %v827_v41  ;;  %3898 = vmatprep.subr.bf16.mxu0 %v3897_v44  ;;  %v722_v60 = vld [vmem:[#allocation5 + $0xd40] sm:$0xff]  ;;  %v3739_v25 = vpack.c.bf16 %v312_v15, %v300_v14  ;;  %v373_v41 = vld [vmem:[#allocation5 + $0x258] sm:$0xff] }
  0xee   : > { %3722 = vmatprep.subr.bf16.mxu1 %v3721_v26  ;;  %v723_v48 = vld [vmem:[#allocation5 + $0xd48] sm:$0xff]  ;;  %1287 = vmatmul.mubr.f32.vlgmr.msra.gmra.mrb[0].mxu0 %v5444_v50  ;;  %v850_v2 = vld [vmem:[#allocation5 + $0x1140] sm:$0xff]  ;;  %v3903_v5 = vpack.c.bf16 %v722_v60, %v710_v59  ;;  %v3741_v26 = vpack.c.bf16 %v337_v18, %v325_v16  ;;  %v385_v43 = vld [vmem:[#allocation5 + $0x2b8] sm:$0xff] }
  0xef   : > { %v851_v55 = vld [vmem:[#allocation5 + $0x1148] sm:$0xff]  ;;  %v3901_v58 = vpack.c.bf16 %v723_v48, %v711_v47  ;;  %v862_v3 = vld [vmem:[#allocation5 + $0x11a0] sm:$0xff]  ;;  %3900 = vmatpush1.bf16.msra.mxu0 %v3899_v56  ;;  %1357 = vmatprep.mubr.f32.mxu0 %v5180_v1  ;;  %v372_v53 = vld [vmem:[#allocation5 + $0x250] sm:$0xff] }
  0xf0   : > { %v863_v57 = vld [vmem:[#allocation5 + $0x11a8] sm:$0xff]  ;;  %v734_v8 = vld [vmem:[#allocation5 + $0xda0] sm:$0xff]  ;;  %v3735_v12 = vpack.c.bf16 %v862_v3, %v850_v2  ;;  %v384_v54 = vld [vmem:[#allocation5 + $0x2b0] sm:$0xff] }
  0xf1   : > { %3724 = vmatpush1.bf16.msra.mxu1 %v3723_v37  ;;  %v735_v61 = vld [vmem:[#allocation5 + $0xda8] sm:$0xff]  ;;  %v3733_v0 = vpack.c.bf16 %v863_v57, %v851_v55  ;;  %3902 = vmatprep.subr.bf16.mxu0 %v3901_v58  ;;  %v746_v9 = vld [vmem:[#allocation5 + $0xe00] sm:$0xff]  ;;  %v3743_v37 = vpack.c.bf16 %v336_v28, %v324_v27  ;;  %v397_v55 = vld [vmem:[#allocation5 + $0x318] sm:$0xff] }
  0xf2   : > { %3726 = vmatprep.subr.bf16.mxu1 %v3725_v38  ;;  %v747_v62 = vld [vmem:[#allocation5 + $0xe08] sm:$0xff]  ;;  %v3907_v17 = vpack.c.bf16 %v746_v9, %v734_v8  ;;  %v758_v20 = vld [vmem:[#allocation5 + $0xe60] sm:$0xff]  ;;  %v3745_v38 = vpack.c.bf16 %v361_v31, %v349_v29  ;;  %v409_v57 = vld [vmem:[#allocation5 + $0x378] sm:$0xff] }
  0xf3   : > { %v3905_v7 = vpack.c.bf16 %v747_v62, %v735_v61  ;;  %v759_v10 = vld [vmem:[#allocation5 + $0xe68] sm:$0xff]  ;;  %3904 = vmatpush1.bf16.msra.mxu0 %v3903_v5  ;;  %v770_v21 = vld [vmem:[#allocation5 + $0xec0] sm:$0xff]  ;;  %v396_v2 = vld [vmem:[#allocation5 + $0x310] sm:$0xff] }
  0xf4   : > { %v771_v11 = vld [vmem:[#allocation5 + $0xec8] sm:$0xff]  ;;  %v5451_v24 = vld [vmem:[%s5424_s8 + $0x10] sm:$0xff]  ;;  %v3911_v30 = vpack.c.bf16 %v770_v21, %v758_v20  ;;  %v408_v3 = vld [vmem:[#allocation5 + $0x370] sm:$0xff] }
  0xf5   : > { %3728 = vmatpush1.bf16.msra.mxu1 %v3727_v49  ;;  %3906 = vmatprep.subr.bf16.mxu0 %v3905_v7  ;;  %v3909_v19 = vpack.c.bf16 %v771_v11, %v759_v10  ;;  %v783_v22 = vld [vmem:[#allocation5 + $0xf28] sm:$0xff]  ;;  %v782_v33 = vld [vmem:[#allocation5 + $0xf20] sm:$0xff]  ;;  %v3747_v49 = vpack.c.bf16 %v360_v40, %v348_v39  ;;  %v421_v4 = vld [vmem:[#allocation5 + $0x3d8] sm:$0xff] }
  0xf6   : > { %3730 = vmatprep.subr.bf16.mxu1 %v3729_v52  ;;  %v795_v23 = vld [vmem:[#allocation5 + $0xf88] sm:$0xff]  ;;  %v794_v34 = vld [vmem:[#allocation5 + $0xf80] sm:$0xff]  ;;  %v3749_v52 = vpack.c.bf16 %v385_v43, %v373_v41  ;;  %v433_v6 = vld [vmem:[#allocation5 + $0x438] sm:$0xff] }
  0xf7   : > { %3908 = vmatpush1.bf16.msra.mxu0 %v3907_v17  ;;  %v3913_v32 = vpack.c.bf16 %v795_v23, %v783_v22  ;;  %v807_v35 = vld [vmem:[#allocation5 + $0xfe8] sm:$0xff]  ;;  %v3915_v42 = vpack.c.bf16 %v794_v34, %v782_v33  ;;  %v806_v45 = vld [vmem:[#allocation5 + $0xfe0] sm:$0xff]  ;;  %v420_v14 = vld [vmem:[#allocation5 + $0x3d0] sm:$0xff] }
  0xf8   : > { %3910 = vmatprep.subr.bf16.mxu0 %v3909_v19  ;;  %v819_v36 = vld [vmem:[#allocation5 + $0x1048] sm:$0xff]  ;;  %v818_v46 = vld [vmem:[#allocation5 + $0x1040] sm:$0xff]  ;;  %v432_v15 = vld [vmem:[#allocation5 + $0x430] sm:$0xff] }
  0xf9   : > { %3732 = vmatpush1.bf16.msra.mxu1 %v3731_v63  ;;  %v3917_v44 = vpack.c.bf16 %v819_v36, %v807_v35  ;;  %v831_v47 = vld [vmem:[#allocation5 + $0x10a8] sm:$0xff]  ;;  %v3919_v56 = vpack.c.bf16 %v818_v46, %v806_v45  ;;  %v830_v59 = vld [vmem:[#allocation5 + $0x10a0] sm:$0xff]  ;;  %v3751_v63 = vpack.c.bf16 %v384_v54, %v372_v53  ;;  %v445_v16 = vld [vmem:[#allocation5 + $0x498] sm:$0xff] }
  0xfa   : > { %3734 = vmatprep.subr.bf16.mxu1 %v3733_v0  ;;  %v843_v48 = vld [vmem:[#allocation5 + $0x1108] sm:$0xff]  ;;  %v842_v60 = vld [vmem:[#allocation5 + $0x1100] sm:$0xff]  ;;  %v3753_v0 = vpack.c.bf16 %v409_v57, %v397_v55  ;;  %v457_v18 = vld [vmem:[#allocation5 + $0x4f8] sm:$0xff] }
  0xfb   : > { %3912 = vmatpush1.bf16.msra.mxu0 %v3911_v30  ;;  %v3921_v58 = vpack.c.bf16 %v843_v48, %v831_v47  ;;  %v855_v61 = vld [vmem:[#allocation5 + $0x1168] sm:$0xff]  ;;  %v3923_v5 = vpack.c.bf16 %v842_v60, %v830_v59  ;;  %v854_v8 = vld [vmem:[#allocation5 + $0x1160] sm:$0xff]  ;;  %v444_v27 = vld [vmem:[#allocation5 + $0x490] sm:$0xff] }
  0xfc   : > { %3914 = vmatprep.subr.bf16.mxu0 %v3913_v32  ;;  %v867_v62 = vld [vmem:[#allocation5 + $0x11c8] sm:$0xff]  ;;  %v866_v9 = vld [vmem:[#allocation5 + $0x11c0] sm:$0xff]  ;;  %v456_v28 = vld [vmem:[#allocation5 + $0x4f0] sm:$0xff] }
  0xfd   : > { %3736 = vmatpush1.bf16.msra.mxu1 %v3735_v12  ;;  %v3925_v7 = vpack.c.bf16 %v867_v62, %v855_v61  ;;  %v307_v10 = vld [vmem:[#allocation5 + $0x48] sm:$0xff]  ;;  %v3755_v12 = vpack.c.bf16 %v408_v3, %v396_v2  ;;  %v3927_v17 = vpack.c.bf16 %v866_v9, %v854_v8  ;;  %v306_v20 = vld [vmem:[#allocation5 + $0x40] sm:$0xff]  ;;  %v469_v29 = vld [vmem:[#allocation5 + $0x558] sm:$0xff] }
  0xfe   : > { %3738 = vmatprep.subr.bf16.mxu1 %v3737_v13  ;;  %v319_v11 = vld [vmem:[#allocation5 + $0xa8] sm:$0xff]  ;;  %v3757_v13 = vpack.c.bf16 %v433_v6, %v421_v4  ;;  %v318_v21 = vld [vmem:[#allocation5 + $0xa0] sm:$0xff]  ;;  %v481_v31 = vld [vmem:[#allocation5 + $0x5b8] sm:$0xff] }
  0xff   : > { %3916 = vmatpush1.bf16.msra.mxu0 %v3915_v42  ;;  %v4025_v19 = vpack.c.bf16 %v319_v11, %v307_v10  ;;  %v331_v22 = vld [vmem:[#allocation5 + $0x108] sm:$0xff]  ;;  %v4027_v30 = vpack.c.bf16 %v318_v21, %v306_v20  ;;  %v330_v33 = vld [vmem:[#allocation5 + $0x100] sm:$0xff]  ;;  %v468_v39 = vld [vmem:[#allocation5 + $0x550] sm:$0xff] }
 0x100   : > { %1074 = vmatmul.mubr.f32.vlgmr.msra.gmra.mrb[0].mxu1 %v5451_v24  ;;  %3918 = vmatprep.subr.bf16.mxu0 %v3917_v44  ;;  %v343_v23 = vld [vmem:[#allocation5 + $0x168] sm:$0xff]  ;;  %v342_v34 = vld [vmem:[#allocation5 + $0x160] sm:$0xff]  ;;  %v480_v40 = vld [vmem:[#allocation5 + $0x5b0] sm:$0xff] }
 0x101   : > { %3740 = vmatpush1.bf16.msra.mxu1 %v3739_v25  ;;  %1144 = vmatprep.mubr.f32.mxu1 %v5439_v51  ;;  %v3759_v25 = vpack.c.bf16 %v432_v15, %v420_v14  ;;  %v4029_v32 = vpack.c.bf16 %v343_v23, %v331_v22  ;;  %v355_v35 = vld [vmem:[#allocation5 + $0x1c8] sm:$0xff]  ;;  %v493_v41 = vld [vmem:[#allocation5 + $0x618] sm:$0xff]  ;;  %v4031_v42 = vpack.c.bf16 %v342_v34, %v330_v33  ;;  %v354_v45 = vld [vmem:[#allocation5 + $0x1c0] sm:$0xff] }
 0x102   : > { %3742 = vmatprep.subr.bf16.mxu1 %v3741_v26  ;;  %v3761_v26 = vpack.c.bf16 %v457_v18, %v445_v16  ;;  %v367_v36 = vld [vmem:[#allocation5 + $0x228] sm:$0xff]  ;;  %v505_v43 = vld [vmem:[#allocation5 + $0x678] sm:$0xff]  ;;  %v366_v46 = vld [vmem:[#allocation5 + $0x220] sm:$0xff] }
 0x103   : > { %3920 = vmatpush1.bf16.msra.mxu0 %v3919_v56  ;;  %v4033_v44 = vpack.c.bf16 %v367_v36, %v355_v35  ;;  %v379_v47 = vld [vmem:[#allocation5 + $0x288] sm:$0xff]  ;;  %v492_v53 = vld [vmem:[#allocation5 + $0x610] sm:$0xff]  ;;  %v517_v55 = vld [vmem:[#allocation5 + $0x6d8] sm:$0xff]  ;;  %v4035_v56 = vpack.c.bf16 %v366_v46, %v354_v45 }
 0x104   : > { %3922 = vmatprep.subr.bf16.mxu0 %v3921_v58  ;;  %v391_v48 = vld [vmem:[#allocation5 + $0x2e8] sm:$0xff]  ;;  %v504_v54 = vld [vmem:[#allocation5 + $0x670] sm:$0xff]  ;;  %v529_v57 = vld [vmem:[#allocation5 + $0x738] sm:$0xff] }
 0x105   : > { %3744 = vmatpush1.bf16.msra.mxu1 %v3743_v37  ;;  %v3763_v37 = vpack.c.bf16 %v456_v28, %v444_v27  ;;  %v4037_v58 = vpack.c.bf16 %v391_v48, %v379_v47  ;;  %v378_v59 = vld [vmem:[#allocation5 + $0x280] sm:$0xff]  ;;  %v403_v61 = vld [vmem:[#allocation5 + $0x348] sm:$0xff]  ;;  %v528_v2 = vld [vmem:[#allocation5 + $0x730] sm:$0xff] }
 0x106   : > { %3746 = vmatprep.subr.bf16.mxu1 %v3745_v38  ;;  %v3765_v38 = vpack.c.bf16 %v481_v31, %v469_v29  ;;  %v390_v60 = vld [vmem:[#allocation5 + $0x2e0] sm:$0xff]  ;;  %v415_v62 = vld [vmem:[#allocation5 + $0x3a8] sm:$0xff]  ;;  %v541_v3 = vld [vmem:[#allocation5 + $0x798] sm:$0xff] }
 0x107   : > { %3924 = vmatpush1.bf16.msra.mxu0 %v3923_v5  ;;  %v4039_v4 = vpack.c.bf16 %v390_v60, %v378_v59  ;;  %v553_v5 = vld [vmem:[#allocation5 + $0x7f8] sm:$0xff]  ;;  %v4041_v6 = vpack.c.bf16 %v415_v62, %v403_v61  ;;  %v414_v8 = vld [vmem:[#allocation5 + $0x3a0] sm:$0xff]  ;;  %v427_v9 = vld [vmem:[#allocation5 + $0x408] sm:$0xff] }
 0x108   : > { %3926 = vmatprep.subr.bf16.mxu0 %v3925_v7  ;;  %v402_v7 = vld [vmem:[#allocation5 + $0x340] sm:$0xff]  ;;  %v439_v10 = vld [vmem:[#allocation5 + $0x468] sm:$0xff]  ;;  %v552_v14 = vld [vmem:[#allocation5 + $0x7f0] sm:$0xff] }
 0x109   : > { %3748 = vmatpush1.bf16.msra.mxu1 %v3747_v49  ;;  %v3767_v49 = vpack.c.bf16 %v480_v40, %v468_v39  ;;  %v565_v15 = vld [vmem:[#allocation5 + $0x858] sm:$0xff]  ;;  %v4043_v16 = vpack.c.bf16 %v414_v8, %v402_v7  ;;  %v4045_v18 = vpack.c.bf16 %v439_v10, %v427_v9  ;;  %v438_v20 = vld [vmem:[#allocation5 + $0x460] sm:$0xff]  ;;  %v451_v21 = vld [vmem:[#allocation5 + $0x4c8] sm:$0xff] }
 0x10a   : > { %3750 = vmatprep.subr.bf16.mxu1 %v3749_v52  ;;  %v3769_v52 = vpack.c.bf16 %v505_v43, %v493_v41  ;;  %v463_v22 = vld [vmem:[#allocation5 + $0x528] sm:$0xff]  ;;  %v576_v27 = vld [vmem:[#allocation5 + $0x8b0] sm:$0xff]  ;;  %v589_v28 = vld [vmem:[#allocation5 + $0x918] sm:$0xff] }
 0x10b   : > { %3928 = vmatpush1.bf16.msra.mxu0 %v3927_v17  ;;  %v577_v17 = vld [vmem:[#allocation5 + $0x8b8] sm:$0xff]  ;;  %v4049_v31 = vpack.c.bf16 %v463_v22, %v451_v21  ;;  %v462_v33 = vld [vmem:[#allocation5 + $0x520] sm:$0xff]  ;;  %v475_v34 = vld [vmem:[#allocation5 + $0x588] sm:$0xff] }
 0x10c   : > { %4026 = vmatprep.subr.bf16.mxu0 %v4025_v19  ;;  %v426_v19 = vld [vmem:[#allocation5 + $0x400] sm:$0xff]  ;;  %v487_v35 = vld [vmem:[#allocation5 + $0x5e8] sm:$0xff]  ;;  %v600_v39 = vld [vmem:[#allocation5 + $0x970] sm:$0xff] }
 0x10d   : > { %3752 = vmatpush1.bf16.msra.mxu1 %v3751_v63  ;;  %v3773_v63 = vpack.c.bf16 %v529_v57, %v517_v55  ;;  %v4047_v29 = vpack.c.bf16 %v438_v20, %v426_v19  ;;  %v613_v40 = vld [vmem:[#allocation5 + $0x9d8] sm:$0xff]  ;;  %v4053_v43 = vpack.c.bf16 %v487_v35, %v475_v34  ;;  %v486_v45 = vld [vmem:[#allocation5 + $0x5e0] sm:$0xff]  ;;  %v499_v46 = vld [vmem:[#allocation5 + $0x648] sm:$0xff] }
 0x10e   : > { %3754 = vmatprep.subr.bf16.mxu1 %v3753_v0  ;;  %1358 = vmatmul.mubr.f32.vlgmr.msra.gmra.mrb[0].mxu0 %v5451_v24  ;;  %v516_v0 = vld [vmem:[#allocation5 + $0x6d0] sm:$0xff]  ;;  %v511_v47 = vld [vmem:[#allocation5 + $0x6a8] sm:$0xff]  ;;  %v510_v59 = vld [vmem:[#allocation5 + $0x6a0] sm:$0xff] }
 0x10f   : > { %4028 = vmatpush1.bf16.msra.mxu0 %v4027_v30  ;;  %1570 = vmatprep.mubr.f32.mxu0 %v5439_v51  ;;  %v3771_v51 = vpack.c.bf16 %v504_v54, %v492_v53  ;;  %v3775_v11 = vpack.c.bf16 %v528_v2, %v516_v0  ;;  %v601_v30 = vld [vmem:[#allocation5 + $0x978] sm:$0xff]  ;;  %v624_v53 = vld [vmem:[#allocation5 + $0xa30] sm:$0xff]  ;;  %v4057_v57 = vpack.c.bf16 %v511_v47, %v499_v46  ;;  %v523_v60 = vld [vmem:[#allocation5 + $0x708] sm:$0xff] }
 0x110   : > { %4030 = vmatprep.subr.bf16.mxu0 %v4029_v32  ;;  %v450_v32 = vld [vmem:[#allocation5 + $0x4c0] sm:$0xff]  ;;  %v637_v54 = vld [vmem:[#allocation5 + $0xa98] sm:$0xff]  ;;  %v535_v61 = vld [vmem:[#allocation5 + $0x768] sm:$0xff] }
 0x111   : > { %3756 = vmatpush1.bf16.msra.mxu1 %v3755_v12  ;;  %v3777_v12 = vpack.c.bf16 %v553_v5, %v541_v3  ;;  %v4051_v41 = vpack.c.bf16 %v462_v33, %v450_v32  ;;  %v648_v0 = vld [vmem:[#allocation5 + $0xaf0] sm:$0xff]  ;;  %v661_v2 = vld [vmem:[#allocation5 + $0xb58] sm:$0xff]  ;;  %v4061_v5 = vpack.c.bf16 %v535_v61, %v523_v60  ;;  %v534_v7 = vld [vmem:[#allocation5 + $0x760] sm:$0xff] }
 0x112   : > { %3758 = vmatprep.subr.bf16.mxu1 %v3757_v13  ;;  %v540_v13 = vld [vmem:[#allocation5 + $0x790] sm:$0xff]  ;;  %v547_v8 = vld [vmem:[#allocation5 + $0x7c8] sm:$0xff]  ;;  %v558_v19 = vld [vmem:[#allocation5 + $0x820] sm:$0xff] }
 0x113   : > { %4032 = vmatpush1.bf16.msra.mxu0 %v4031_v42  ;;  %v3779_v23 = vpack.c.bf16 %v552_v14, %v540_v13  ;;  %v625_v42 = vld [vmem:[#allocation5 + $0xa38] sm:$0xff]  ;;  %v559_v9 = vld [vmem:[#allocation5 + $0x828] sm:$0xff]  ;;  %v672_v13 = vld [vmem:[#allocation5 + $0xbb0] sm:$0xff] }
 0x114   : > { %4034 = vmatprep.subr.bf16.mxu0 %v4033_v44  ;;  %v474_v44 = vld [vmem:[#allocation5 + $0x580] sm:$0xff]  ;;  %v685_v14 = vld [vmem:[#allocation5 + $0xc18] sm:$0xff]  ;;  %v571_v20 = vld [vmem:[#allocation5 + $0x888] sm:$0xff] }
 0x115   : > { %3760 = vmatpush1.bf16.msra.mxu1 %v3759_v25  ;;  %v3781_v25 = vpack.c.bf16 %v577_v17, %v565_v15  ;;  %v4055_v55 = vpack.c.bf16 %v486_v45, %v474_v44  ;;  %v4065_v17 = vpack.c.bf16 %v559_v9, %v547_v8  ;;  %v583_v21 = vld [vmem:[#allocation5 + $0x8e8] sm:$0xff]  ;;  %v582_v32 = vld [vmem:[#allocation5 + $0x8e0] sm:$0xff] }
 0x116   : > { %3762 = vmatprep.subr.bf16.mxu1 %v3761_v26  ;;  %v564_v26 = vld [vmem:[#allocation5 + $0x850] sm:$0xff]  ;;  %v595_v33 = vld [vmem:[#allocation5 + $0x948] sm:$0xff]  ;;  %v606_v44 = vld [vmem:[#allocation5 + $0x9a0] sm:$0xff] }
 0x117   : > { %4036 = vmatpush1.bf16.msra.mxu0 %v4035_v56  ;;  %v3783_v36 = vpack.c.bf16 %v576_v27, %v564_v26  ;;  %v649_v56 = vld [vmem:[#allocation5 + $0xaf8] sm:$0xff]  ;;  %v696_v26 = vld [vmem:[#allocation5 + $0xc70] sm:$0xff]  ;;  %v607_v34 = vld [vmem:[#allocation5 + $0x9a8] sm:$0xff] }
 0x118   : > { %4038 = vmatprep.subr.bf16.mxu0 %v4037_v58  ;;  %v498_v58 = vld [vmem:[#allocation5 + $0x640] sm:$0xff]  ;;  %v709_v27 = vld [vmem:[#allocation5 + $0xcd8] sm:$0xff]  ;;  %v619_v45 = vld [vmem:[#allocation5 + $0xa08] sm:$0xff] }
 0x119   : > { %3764 = vmatpush1.bf16.msra.mxu1 %v3763_v37  ;;  %v3785_v37 = vpack.c.bf16 %v601_v30, %v589_v28  ;;  %v4059_v3 = vpack.c.bf16 %v510_v59, %v498_v58  ;;  %v4069_v30 = vpack.c.bf16 %v583_v21, %v571_v20  ;;  %v631_v46 = vld [vmem:[#allocation5 + $0xa68] sm:$0xff]  ;;  %v630_v58 = vld [vmem:[#allocation5 + $0xa60] sm:$0xff] }
 0x11a   : > { %3766 = vmatprep.subr.bf16.mxu1 %v3765_v38  ;;  %v588_v38 = vld [vmem:[#allocation5 + $0x910] sm:$0xff]  ;;  %v643_v59 = vld [vmem:[#allocation5 + $0xac8] sm:$0xff] }
 0x11b   : > { %4040 = vmatpush1.bf16.msra.mxu0 %v4039_v4  ;;  %v3787_v48 = vpack.c.bf16 %v600_v39, %v588_v38  ;;  %v673_v4 = vld [vmem:[#allocation5 + $0xbb8] sm:$0xff]  ;;  %v720_v38 = vld [vmem:[#allocation5 + $0xd30] sm:$0xff]  ;;  %v655_v60 = vld [vmem:[#allocation5 + $0xb28] sm:$0xff] }
 0x11c   : > { %4042 = vmatprep.subr.bf16.mxu0 %v4041_v6  ;;  %v522_v6 = vld [vmem:[#allocation5 + $0x700] sm:$0xff]  ;;  %v733_v39 = vld [vmem:[#allocation5 + $0xd98] sm:$0xff]  ;;  %v679_v8 = vld [vmem:[#allocation5 + $0xbe8] sm:$0xff] }
 0x11d   : > { %3768 = vmatpush1.bf16.msra.mxu1 %v3767_v49  ;;  %v3789_v49 = vpack.c.bf16 %v625_v42, %v613_v40  ;;  %v4063_v15 = vpack.c.bf16 %v534_v7, %v522_v6  ;;  %v4073_v42 = vpack.c.bf16 %v607_v34, %v595_v33  ;;  %v654_v6 = vld [vmem:[#allocation5 + $0xb20] sm:$0xff]  ;;  %v667_v7 = vld [vmem:[#allocation5 + $0xb88] sm:$0xff] }
 0x11e   : > { %3770 = vmatprep.subr.bf16.mxu1 %v3769_v52  ;;  %v612_v52 = vld [vmem:[#allocation5 + $0x9d0] sm:$0xff]  ;;  %v703_v20 = vld [vmem:[#allocation5 + $0xca8] sm:$0xff] }
 0x11f   : > { %4044 = vmatpush1.bf16.msra.mxu0 %v4043_v16  ;;  %v3791_v62 = vpack.c.bf16 %v624_v53, %v612_v52  ;;  %v697_v16 = vld [vmem:[#allocation5 + $0xc78] sm:$0xff]  ;;  %v744_v52 = vld [vmem:[#allocation5 + $0xdf0] sm:$0xff]  ;;  %v727_v33 = vld [vmem:[#allocation5 + $0xd68] sm:$0xff] }
 0x120   : > { %4046 = vmatprep.subr.bf16.mxu0 %v4045_v18  ;;  %v546_v18 = vld [vmem:[#allocation5 + $0x7c0] sm:$0xff]  ;;  %v757_v53 = vld [vmem:[#allocation5 + $0xe58] sm:$0xff] }
 0x121   : > { %3772 = vmatpush1.bf16.msra.mxu1 %v3771_v51  ;;  %v3793_v51 = vpack.c.bf16 %v649_v56, %v637_v54  ;;  %v4067_v28 = vpack.c.bf16 %v558_v19, %v546_v18  ;;  %v4077_v56 = vpack.c.bf16 %v631_v46, %v619_v45  ;;  %v678_v18 = vld [vmem:[#allocation5 + $0xbe0] sm:$0xff]  ;;  %v691_v19 = vld [vmem:[#allocation5 + $0xc48] sm:$0xff] }
 0x122   : > { %3774 = vmatprep.subr.bf16.mxu1 %v3773_v63  ;;  %v636_v63 = vld [vmem:[#allocation5 + $0xa90] sm:$0xff]  ;;  %v751_v45 = vld [vmem:[#allocation5 + $0xe28] sm:$0xff] }
 0x123   : > { %4048 = vmatpush1.bf16.msra.mxu0 %v4047_v29  ;;  %v3795_v10 = vpack.c.bf16 %v648_v0, %v636_v63  ;;  %v721_v29 = vld [vmem:[#allocation5 + $0xd38] sm:$0xff]  ;;  %v768_v63 = vld [vmem:[#allocation5 + $0xeb0] sm:$0xff] }
 0x124   : > { %4050 = vmatprep.subr.bf16.mxu0 %v4049_v31  ;;  %v570_v31 = vld [vmem:[#allocation5 + $0x880] sm:$0xff]  ;;  %v781_v0 = vld [vmem:[#allocation5 + $0xf18] sm:$0xff] }
 0x125   : > { %3776 = vmatpush1.bf16.msra.mxu1 %v3775_v11  ;;  %v3797_v11 = vpack.c.bf16 %v673_v4, %v661_v2  ;;  %v4071_v40 = vpack.c.bf16 %v582_v32, %v570_v31  ;;  %v4081_v4 = vpack.c.bf16 %v655_v60, %v643_v59  ;;  %v702_v31 = vld [vmem:[#allocation5 + $0xca0] sm:$0xff]  ;;  %v715_v32 = vld [vmem:[#allocation5 + $0xd08] sm:$0xff] }
 0x126   : > { %3778 = vmatprep.subr.bf16.mxu1 %v3777_v12  ;;  %v660_v12 = vld [vmem:[#allocation5 + $0xb50] sm:$0xff]  ;;  %v775_v59 = vld [vmem:[#allocation5 + $0xee8] sm:$0xff] }
 0x127   : > { %4052 = vmatpush1.bf16.msra.mxu0 %v4051_v41  ;;  %v3799_v22 = vpack.c.bf16 %v672_v13, %v660_v12  ;;  %v745_v41 = vld [vmem:[#allocation5 + $0xdf8] sm:$0xff]  ;;  %v792_v12 = vld [vmem:[#allocation5 + $0xf70] sm:$0xff] }
 0x128   : > { %4054 = vmatprep.subr.bf16.mxu0 %v4053_v43  ;;  %v594_v43 = vld [vmem:[#allocation5 + $0x940] sm:$0xff]  ;;  %v805_v13 = vld [vmem:[#allocation5 + $0xfd8] sm:$0xff] }
 0x129   : > { %3780 = vmatpush1.bf16.msra.mxu1 %v3779_v23  ;;  %v3801_v23 = vpack.c.bf16 %v697_v16, %v685_v14  ;;  %v4075_v54 = vpack.c.bf16 %v606_v44, %v594_v43  ;;  %v4085_v16 = vpack.c.bf16 %v679_v8, %v667_v7  ;;  %v726_v43 = vld [vmem:[#allocation5 + $0xd60] sm:$0xff]  ;;  %v739_v44 = vld [vmem:[#allocation5 + $0xdc8] sm:$0xff] }
 0x12a   : > { %3782 = vmatprep.subr.bf16.mxu1 %v3781_v25  ;;  %v684_v25 = vld [vmem:[#allocation5 + $0xc10] sm:$0xff] }
 0x12b   : > { %4056 = vmatpush1.bf16.msra.mxu0 %v4055_v55  ;;  %v3803_v35 = vpack.c.bf16 %v696_v26, %v684_v25  ;;  %v769_v55 = vld [vmem:[#allocation5 + $0xeb8] sm:$0xff]  ;;  %v816_v25 = vld [vmem:[#allocation5 + $0x1030] sm:$0xff] }
 0x12c   : > { %4058 = vmatprep.subr.bf16.mxu0 %v4057_v57  ;;  %v618_v57 = vld [vmem:[#allocation5 + $0xa00] sm:$0xff]  ;;  %v829_v26 = vld [vmem:[#allocation5 + $0x1098] sm:$0xff] }
 0x12d   : > { %3784 = vmatpush1.bf16.msra.mxu1 %v3783_v36  ;;  %v3805_v36 = vpack.c.bf16 %v721_v29, %v709_v27  ;;  %v4079_v2 = vpack.c.bf16 %v630_v58, %v618_v57  ;;  %v4089_v29 = vpack.c.bf16 %v703_v20, %v691_v19  ;;  %v750_v57 = vld [vmem:[#allocation5 + $0xe20] sm:$0xff]  ;;  %v763_v58 = vld [vmem:[#allocation5 + $0xe88] sm:$0xff]  ;;  %v5463_v20 = vld [vmem:[%s5424_s8 + $0x8] sm:$0xff] }
 0x12e   : > { %3786 = vmatprep.subr.bf16.mxu1 %v3785_v37  ;;  %v708_v37 = vld [vmem:[#allocation5 + $0xcd0] sm:$0xff] }
 0x12f   : > { %4060 = vmatpush1.bf16.msra.mxu0 %v4059_v3  ;;  %v3807_v47 = vpack.c.bf16 %v720_v38, %v708_v37  ;;  %v793_v3 = vld [vmem:[#allocation5 + $0xf78] sm:$0xff]  ;;  %v840_v37 = vld [vmem:[#allocation5 + $0x10f0] sm:$0xff] }
 0x130   : > { %4062 = vmatprep.subr.bf16.mxu0 %v4061_v5  ;;  %v642_v5 = vld [vmem:[#allocation5 + $0xac0] sm:$0xff]  ;;  %v853_v38 = vld [vmem:[#allocation5 + $0x1158] sm:$0xff] }
 0x131   : > { %3788 = vmatpush1.bf16.msra.mxu1 %v3787_v48  ;;  %v3809_v48 = vpack.c.bf16 %v745_v41, %v733_v39  ;;  %v4083_v14 = vpack.c.bf16 %v654_v6, %v642_v5  ;;  %v4093_v41 = vpack.c.bf16 %v727_v33, %v715_v32  ;;  %v787_v5 = vld [vmem:[#allocation5 + $0xf48] sm:$0xff] }
 0x132   : > { %3790 = vmatprep.subr.bf16.mxu1 %v3789_v49  ;;  %v732_v49 = vld [vmem:[#allocation5 + $0xd90] sm:$0xff]  ;;  %v799_v6 = vld [vmem:[#allocation5 + $0xfa8] sm:$0xff] }
 0x133   : > { %4064 = vmatpush1.bf16.msra.mxu0 %v4063_v15  ;;  %v3811_v61 = vpack.c.bf16 %v744_v52, %v732_v49  ;;  %v817_v15 = vld [vmem:[#allocation5 + $0x1038] sm:$0xff]  ;;  %v864_v49 = vld [vmem:[#allocation5 + $0x11b0] sm:$0xff]  ;;  %v847_v32 = vld [vmem:[#allocation5 + $0x1128] sm:$0xff] }
 0x134   : > { %4066 = vmatprep.subr.bf16.mxu0 %v4065_v17  ;;  %v666_v17 = vld [vmem:[#allocation5 + $0xb80] sm:$0xff]  ;;  %v305_v52 = vld [vmem:[#allocation5 + $0x38] sm:$0xff] }
 0x135   : > { %3792 = vmatpush1.bf16.msra.mxu1 %v3791_v62  ;;  %v3813_v62 = vpack.c.bf16 %v769_v55, %v757_v53  ;;  %v4087_v27 = vpack.c.bf16 %v678_v18, %v666_v17  ;;  %v4097_v55 = vpack.c.bf16 %v751_v45, %v739_v44  ;;  %v811_v17 = vld [vmem:[#allocation5 + $0x1008] sm:$0xff] }
 0x136   : > { %3794 = vmatprep.subr.bf16.mxu1 %v3793_v51  ;;  %v756_v51 = vld [vmem:[#allocation5 + $0xe50] sm:$0xff]  ;;  %v823_v18 = vld [vmem:[#allocation5 + $0x1068] sm:$0xff] }
 0x137   : > { %4068 = vmatpush1.bf16.msra.mxu0 %v4067_v28  ;;  %v3815_v9 = vpack.c.bf16 %v768_v63, %v756_v51  ;;  %v841_v28 = vld [vmem:[#allocation5 + $0x10f8] sm:$0xff]  ;;  %v871_v44 = vld [vmem:[#allocation5 + $0x11e8] sm:$0xff] }
 0x138   : > { %4070 = vmatprep.subr.bf16.mxu0 %v4069_v30  ;;  %v690_v30 = vld [vmem:[#allocation5 + $0xc40] sm:$0xff]  ;;  %v329_v51 = vld [vmem:[#allocation5 + $0xf8] sm:$0xff] }
 0x139   : > { %3796 = vmatpush1.bf16.msra.mxu1 %v3795_v10  ;;  %v3817_v10 = vpack.c.bf16 %v793_v3, %v781_v0  ;;  %v4091_v39 = vpack.c.bf16 %v702_v31, %v690_v30  ;;  %v341_v0 = vld [vmem:[#allocation5 + $0x158] sm:$0xff]  ;;  %v762_v3 = vld [vmem:[#allocation5 + $0xe80] sm:$0xff]  ;;  %v835_v31 = vld [vmem:[#allocation5 + $0x10c8] sm:$0xff] }
 0x13a   : > { %3798 = vmatprep.subr.bf16.mxu1 %v3797_v11  ;;  %v780_v11 = vld [vmem:[#allocation5 + $0xf10] sm:$0xff]  ;;  %v3933_v8 = vpack.c.bf16 %v341_v0, %v329_v51  ;;  %v822_v30 = vld [vmem:[#allocation5 + $0x1060] sm:$0xff] }
 0x13b   : > { %4072 = vmatpush1.bf16.msra.mxu0 %v4071_v40  ;;  %v3819_v21 = vpack.c.bf16 %v792_v12, %v780_v11  ;;  %v865_v40 = vld [vmem:[#allocation5 + $0x11b8] sm:$0xff] }
 0x13c   : > { %4074 = vmatprep.subr.bf16.mxu0 %v4073_v42  ;;  %v714_v42 = vld [vmem:[#allocation5 + $0xd00] sm:$0xff]  ;;  %v353_v11 = vld [vmem:[#allocation5 + $0x1b8] sm:$0xff] }
 0x13d   : > { %3800 = vmatpush1.bf16.msra.mxu1 %v3799_v22  ;;  %v3821_v22 = vpack.c.bf16 %v817_v15, %v805_v13  ;;  %v4095_v53 = vpack.c.bf16 %v726_v43, %v714_v42  ;;  %v365_v13 = vld [vmem:[#allocation5 + $0x218] sm:$0xff]  ;;  %v786_v15 = vld [vmem:[#allocation5 + $0xf40] sm:$0xff]  ;;  %v859_v43 = vld [vmem:[#allocation5 + $0x1188] sm:$0xff] }
 0x13e   : > { %3802 = vmatprep.subr.bf16.mxu1 %v3801_v23  ;;  %v804_v23 = vld [vmem:[#allocation5 + $0xfd0] sm:$0xff]  ;;  %v846_v42 = vld [vmem:[#allocation5 + $0x1120] sm:$0xff] }
 0x13f   : > { %4076 = vmatpush1.bf16.msra.mxu0 %v4075_v54  ;;  %v3823_v34 = vpack.c.bf16 %v816_v25, %v804_v23  ;;  %v317_v54 = vld [vmem:[#allocation5 + $0x98] sm:$0xff]  ;;  %v364_v23 = vld [vmem:[#allocation5 + $0x210] sm:$0xff] }
 0x140   : > { %1145 = vmatmul.mubr.f32.vlgmr.msra.gmra.mrb[2].mxu1 %v5444_v50  ;;  %4078 = vmatprep.subr.bf16.mxu0 %v4077_v56  ;;  %v738_v56 = vld [vmem:[#allocation5 + $0xdc0] sm:$0xff]  ;;  %v377_v25 = vld [vmem:[#allocation5 + $0x278] sm:$0xff] }
 0x141   : > { %3804 = vmatpush1.bf16.msra.mxu1 %v3803_v35  ;;  %1215 = vmatprep.mubr.f32.mxu1 %v5180_v1  ;;  %v3825_v35 = vpack.c.bf16 %v841_v28, %v829_v26  ;;  %v4099_v63 = vpack.c.bf16 %v750_v57, %v738_v56  ;;  %v4109_v28 = vpack.c.bf16 %v823_v18, %v811_v17  ;;  %v870_v56 = vld [vmem:[#allocation5 + $0x11e0] sm:$0xff]  ;;  %v1851_v57 = vld [vmem:[#allocation8 + $0x8] sm:$0xff]  ;;  %v1866_v17 = vld [vmem:[#allocation8 + $0x80] sm:$0xff] }
 0x142   : > { %3806 = vmatprep.subr.bf16.mxu1 %v3805_v36  ;;  %v828_v36 = vld [vmem:[#allocation5 + $0x1090] sm:$0xff] }
 0x143   : > { %4080 = vmatpush1.bf16.msra.mxu0 %v4079_v2  ;;  %v3827_v46 = vpack.c.bf16 %v840_v37, %v828_v36  ;;  %v4101_v2 = vpack.c.bf16 %v775_v59, %v763_v58  ;;  %v388_v36 = vld [vmem:[#allocation5 + $0x2d0] sm:$0xff]  ;;  %v401_v37 = vld [vmem:[#allocation5 + $0x338] sm:$0xff] }
 0x144   : > { %4082 = vmatprep.subr.bf16.mxu0 %v4081_v4  ;;  %v774_v4 = vld [vmem:[#allocation5 + $0xee0] sm:$0xff]  ;;  %v1854_v58 = vld [vmem:[#allocation8 + $0x20] sm:$0xff] }
 0x145   : > { %3808 = vmatpush1.bf16.msra.mxu1 %v3807_v47  ;;  %v3829_v47 = vpack.c.bf16 %v865_v40, %v853_v38  ;;  %v4103_v12 = vpack.c.bf16 %v774_v4, %v762_v3  ;;  %v4113_v40 = vpack.c.bf16 %v847_v32, %v835_v31  ;;  %v4217_v0 = vpack.c.bf16 %v1854_v58, %v1851_v57  ;;  %v1853_v3 = vld [vmem:[#allocation8 + $0x18] sm:$0xff]  ;;  %v1872_v31 = vld [vmem:[#allocation8 + $0xb0] sm:$0xff] }
 0x146   : > { %3810 = vmatprep.subr.bf16.mxu1 %v3809_v48  ;;  %v852_v48 = vld [vmem:[#allocation5 + $0x1150] sm:$0xff]  ;;  %v1857_v4 = vld [vmem:[#allocation8 + $0x38] sm:$0xff] }
 0x147   : > { %4084 = vmatpush1.bf16.msra.mxu0 %v4083_v14  ;;  %v3831_v60 = vpack.c.bf16 %v864_v49, %v852_v48  ;;  %v4105_v14 = vpack.c.bf16 %v799_v6, %v787_v5  ;;  %v412_v48 = vld [vmem:[#allocation5 + $0x390] sm:$0xff]  ;;  %v425_v49 = vld [vmem:[#allocation5 + $0x3f8] sm:$0xff] }
 0x148   : > { %4086 = vmatprep.subr.bf16.mxu0 %v4085_v16  ;;  %v798_v16 = vld [vmem:[#allocation5 + $0xfa0] sm:$0xff] }
 0x149   : > { %3812 = vmatpush1.bf16.msra.mxu1 %v3811_v61  ;;  %v304_v61 = vld [vmem:[#allocation5 + $0x30] sm:$0xff]  ;;  %v4107_v26 = vpack.c.bf16 %v798_v16, %v786_v15  ;;  %v1860_v5 = vld [vmem:[#allocation8 + $0x50] sm:$0xff] }
 0x14a   : > { %3814 = vmatprep.subr.bf16.mxu1 %v3813_v62  ;;  %v316_v62 = vld [vmem:[#allocation5 + $0x90] sm:$0xff] }
 0x14b   : > { %4088 = vmatpush1.bf16.msra.mxu0 %v4087_v27  ;;  %v3931_v7 = vpack.c.bf16 %v316_v62, %v304_v61  ;;  %v389_v27 = vld [vmem:[#allocation5 + $0x2d8] sm:$0xff]  ;;  %v436_v61 = vld [vmem:[#allocation5 + $0x450] sm:$0xff] }
 0x14c   : > { %4090 = vmatprep.subr.bf16.mxu0 %v4089_v29  ;;  %v810_v29 = vld [vmem:[#allocation5 + $0x1000] sm:$0xff]  ;;  %v449_v62 = vld [vmem:[#allocation5 + $0x4b8] sm:$0xff] }
 0x14d   : > { %3816 = vmatpush1.bf16.msra.mxu1 %v3815_v9  ;;  %v328_v9 = vld [vmem:[#allocation5 + $0xf0] sm:$0xff]  ;;  %v4111_v38 = vpack.c.bf16 %v822_v30, %v810_v29  ;;  %v1865_v29 = vld [vmem:[#allocation8 + $0x78] sm:$0xff] }
 0x14e   : > { %3818 = vmatprep.subr.bf16.mxu1 %v3817_v10  ;;  %1571 = vmatmul.mubr.f32.vlgmr.msra.gmra.mrb[2].mxu0 %v5444_v50  ;;  %v3929_v50 = vpack.c.bf16 %v317_v54, %v305_v52  ;;  %v340_v10 = vld [vmem:[#allocation5 + $0x150] sm:$0xff]  ;;  %v4117_v54 = vpack.c.bf16 %v871_v44, %v859_v43  ;;  %v1869_v30 = vld [vmem:[#allocation8 + $0x98] sm:$0xff] }
 0x14f   : > { %4092 = vmatpush1.bf16.msra.mxu0 %v4091_v39  ;;  %1641 = vmatprep.mubr.f32.mxu0 %v5180_v1  ;;  %v3935_v19 = vpack.c.bf16 %v340_v10, %v328_v9  ;;  %v413_v39 = vld [vmem:[#allocation5 + $0x398] sm:$0xff]  ;;  %v460_v9 = vld [vmem:[#allocation5 + $0x510] sm:$0xff] }
 0x150   : > { %4094 = vmatprep.subr.bf16.mxu0 %v4093_v41  ;;  %v834_v41 = vld [vmem:[#allocation5 + $0x10c0] sm:$0xff]  ;;  %v473_v10 = vld [vmem:[#allocation5 + $0x578] sm:$0xff] }
 0x151   : > { %3820 = vmatpush1.bf16.msra.mxu1 %v3819_v21  ;;  %v3937_v21 = vpack.c.bf16 %v365_v13, %v353_v11  ;;  %v4115_v52 = vpack.c.bf16 %v846_v42, %v834_v41  ;;  %v4221_v13 = vpack.c.bf16 %v1860_v5, %v1857_v4  ;;  %v1859_v15 = vld [vmem:[#allocation8 + $0x48] sm:$0xff]  ;;  %v1878_v42 = vld [vmem:[#allocation8 + $0xe0] sm:$0xff] }
 0x152   : > { %3822 = vmatprep.subr.bf16.mxu1 %v3821_v22  ;;  %v352_v22 = vld [vmem:[#allocation5 + $0x1b0] sm:$0xff] }
 0x153   : > { %4096 = vmatpush1.bf16.msra.mxu0 %v4095_v53  ;;  %v3939_v33 = vpack.c.bf16 %v364_v23, %v352_v22  ;;  %v437_v53 = vld [vmem:[#allocation5 + $0x458] sm:$0xff]  ;;  %v484_v22 = vld [vmem:[#allocation5 + $0x5d0] sm:$0xff] }
 0x154   : > { %4098 = vmatprep.subr.bf16.mxu0 %v4097_v55  ;;  %v858_v55 = vld [vmem:[#allocation5 + $0x1180] sm:$0xff]  ;;  %v1863_v16 = vld [vmem:[#allocation8 + $0x68] sm:$0xff] }
 0x155   : > { %3824 = vmatpush1.bf16.msra.mxu1 %v3823_v34  ;;  %v3941_v34 = vpack.c.bf16 %v389_v27, %v377_v25  ;;  %v4119_v51 = vpack.c.bf16 %v870_v56, %v858_v55  ;;  %v497_v23 = vld [vmem:[#allocation5 + $0x638] sm:$0xff]  ;;  %v4225_v27 = vpack.c.bf16 %v1866_v17, %v1863_v16  ;;  %v1881_v55 = vld [vmem:[#allocation8 + $0xf8] sm:$0xff] }
 0x156   : > { %3826 = vmatprep.subr.bf16.mxu1 %v3825_v35  ;;  %v376_v35 = vld [vmem:[#allocation5 + $0x270] sm:$0xff]  ;;  %v1884_v56 = vld [vmem:[#allocation8 + $0x110] sm:$0xff] }
 0x157   : > { %4100 = vmatpush1.bf16.msra.mxu0 %v4099_v63  ;;  %v3943_v45 = vpack.c.bf16 %v388_v36, %v376_v35  ;;  %v461_v63 = vld [vmem:[#allocation5 + $0x518] sm:$0xff] }
 0x158   : > { %4102 = vmatprep.subr.bf16.mxu0 %v4101_v2  ;;  %v1850_v2 = vld [vmem:[#allocation8] sm:$0xff]  ;;  %v521_v35 = vld [vmem:[#allocation5 + $0x6f8] sm:$0xff] }
 0x159   : > { %3828 = vmatpush1.bf16.msra.mxu1 %v3827_v46  ;;  %v3945_v46 = vpack.c.bf16 %v413_v39, %v401_v37  ;;  %v4219_v11 = vpack.c.bf16 %v1853_v3, %v1850_v2  ;;  %v533_v37 = vld [vmem:[#allocation5 + $0x758] sm:$0xff]  ;;  %v1890_v3 = vld [vmem:[#allocation8 + $0x140] sm:$0xff] }
 0x15a   : > { %3830 = vmatprep.subr.bf16.mxu1 %v3829_v47  ;;  %v400_v47 = vld [vmem:[#allocation5 + $0x330] sm:$0xff]  ;;  %v1868_v39 = vld [vmem:[#allocation8 + $0x90] sm:$0xff]  ;;  %v3965_v44 = vpack.c.bf16 %v533_v37, %v521_v35 }
 0x15b   : > { %4104 = vmatpush1.bf16.msra.mxu0 %v4103_v12  ;;  %v3947_v59 = vpack.c.bf16 %v412_v48, %v400_v47  ;;  %v485_v12 = vld [vmem:[#allocation5 + $0x5d8] sm:$0xff]  ;;  %v1898_v37 = vld [vmem:[#allocation8 + $0x180] sm:$0xff] }
 0x15c   : > { %4106 = vmatprep.subr.bf16.mxu0 %v4105_v14  ;;  %v1856_v14 = vld [vmem:[#allocation8 + $0x30] sm:$0xff]  ;;  %v1875_v41 = vld [vmem:[#allocation8 + $0xc8] sm:$0xff] }
 0x15d   : > { %3832 = vmatpush1.bf16.msra.mxu1 %v3831_v60  ;;  %v3949_v60 = vpack.c.bf16 %v437_v53, %v425_v49  ;;  %v4223_v25 = vpack.c.bf16 %v1859_v15, %v1856_v14  ;;  %v545_v47 = vld [vmem:[#allocation5 + $0x7b8] sm:$0xff]  ;;  %v1874_v53 = vld [vmem:[#allocation8 + $0xc0] sm:$0xff]  ;;  %v1893_v14 = vld [vmem:[#allocation8 + $0x158] sm:$0xff] }
 0x15e   : > { %3930 = vmatprep.subr.bf16.mxu1 %v3929_v50  ;;  %v424_v50 = vld [vmem:[#allocation5 + $0x3f0] sm:$0xff]  ;;  %v557_v49 = vld [vmem:[#allocation5 + $0x818] sm:$0xff] }
 0x15f   : > { %4108 = vmatpush1.bf16.msra.mxu0 %v4107_v26  ;;  %v3951_v6 = vpack.c.bf16 %v436_v61, %v424_v50  ;;  %v509_v26 = vld [vmem:[#allocation5 + $0x698] sm:$0xff]  ;;  %v3969_v58 = vpack.c.bf16 %v557_v49, %v545_v47 }
 0x160   : > { %1216 = vmatmul.mubr.f32.vlgmr.msra.gmra.mrb[2].mxu1 %v5451_v24  ;;  %4110 = vmatprep.subr.bf16.mxu0 %v4109_v28  ;;  %v1862_v28 = vld [vmem:[#allocation8 + $0x60] sm:$0xff]  ;;  %v569_v50 = vld [vmem:[#allocation5 + $0x878] sm:$0xff] }
 0x161   : > { %3932 = vmatpush1.bf16.msra.mxu1 %v3931_v7  ;;  %1428 = vmatprep.mubr.f32.mxu1 %v5463_v20  ;;  %v3953_v7 = vpack.c.bf16 %v461_v63, %v449_v62  ;;  %v4227_v36 = vpack.c.bf16 %v1865_v29, %v1862_v28  ;;  %v581_v62 = vld [vmem:[#allocation5 + $0x8d8] sm:$0xff]  ;;  %v1902_v29 = vld [vmem:[#allocation8 + $0x1a0] sm:$0xff] }
 0x162   : > { %3934 = vmatprep.subr.bf16.mxu1 %v3933_v8  ;;  %v448_v8 = vld [vmem:[#allocation5 + $0x4b0] sm:$0xff]  ;;  %v1880_v63 = vld [vmem:[#allocation8 + $0xf0] sm:$0xff]  ;;  %v3973_v5 = vpack.c.bf16 %v581_v62, %v569_v50 }
 0x163   : > { %4112 = vmatpush1.bf16.msra.mxu0 %v4111_v38  ;;  %v3955_v18 = vpack.c.bf16 %v460_v9, %v448_v8  ;;  %v4229_v38 = vpack.c.bf16 %v1872_v31, %v1869_v30  ;;  %v1887_v2 = vld [vmem:[#allocation8 + $0x128] sm:$0xff]  ;;  %v1896_v15 = vld [vmem:[#allocation8 + $0x170] sm:$0xff]  ;;  %v1910_v62 = vld [vmem:[#allocation8 + $0x1e0] sm:$0xff] }
 0x164   : > { %4114 = vmatprep.subr.bf16.mxu0 %v4113_v40  ;;  %v1871_v40 = vld [vmem:[#allocation8 + $0xa8] sm:$0xff]  ;;  %v1904_v49 = vld [vmem:[#allocation8 + $0x1b0] sm:$0xff] }
 0x165   : > { %3936 = vmatpush1.bf16.msra.mxu1 %v3935_v19  ;;  %v3957_v19 = vpack.c.bf16 %v485_v12, %v473_v10  ;;  %v4231_v48 = vpack.c.bf16 %v1871_v40, %v1868_v39  ;;  %v593_v8 = vld [vmem:[#allocation5 + $0x938] sm:$0xff]  ;;  %v1886_v12 = vld [vmem:[#allocation8 + $0x120] sm:$0xff]  ;;  %v1905_v39 = vld [vmem:[#allocation8 + $0x1b8] sm:$0xff] }
 0x166   : > { %3938 = vmatprep.subr.bf16.mxu1 %v3937_v21  ;;  %v472_v21 = vld [vmem:[#allocation5 + $0x570] sm:$0xff]  ;;  %v605_v10 = vld [vmem:[#allocation5 + $0x998] sm:$0xff] }
 0x167   : > { %4116 = vmatpush1.bf16.msra.mxu0 %v4115_v52  ;;  %v3959_v32 = vpack.c.bf16 %v484_v22, %v472_v21  ;;  %v4233_v52 = vpack.c.bf16 %v1878_v42, %v1875_v41  ;;  %v3977_v17 = vpack.c.bf16 %v605_v10, %v593_v8  ;;  %v617_v21 = vld [vmem:[#allocation5 + $0x9f8] sm:$0xff] }
 0x168   : > { %4118 = vmatprep.subr.bf16.mxu0 %v4117_v54  ;;  %v1877_v54 = vld [vmem:[#allocation8 + $0xd8] sm:$0xff]  ;;  %v1899_v28 = vld [vmem:[#allocation8 + $0x188] sm:$0xff]  ;;  %v1908_v40 = vld [vmem:[#allocation8 + $0x1d0] sm:$0xff] }
 0x169   : > { %3940 = vmatpush1.bf16.msra.mxu1 %v3939_v33  ;;  %v3961_v33 = vpack.c.bf16 %v509_v26, %v497_v23  ;;  %v4235_v61 = vpack.c.bf16 %v1877_v54, %v1874_v53  ;;  %v629_v23 = vld [vmem:[#allocation5 + $0xa58] sm:$0xff]  ;;  %v1914_v54 = vld [vmem:[#allocation8 + $0x200] sm:$0xff] }
 0x16a   : > { %3942 = vmatprep.subr.bf16.mxu1 %v3941_v34  ;;  %v496_v34 = vld [vmem:[#allocation5 + $0x630] sm:$0xff]  ;;  %v1892_v26 = vld [vmem:[#allocation8 + $0x150] sm:$0xff]  ;;  %v3981_v31 = vpack.c.bf16 %v629_v23, %v617_v21 }
 0x16b   : > { %4120 = vmatpush1.bf16.msra.mxu0 %v4119_v51  ;;  %v4237_v51 = vpack.c.bf16 %v1884_v56, %v1881_v55  ;;  %v653_v35 = vld [vmem:[#allocation5 + $0xb18] sm:$0xff]  ;;  %v1922_v23 = vld [vmem:[#allocation8 + $0x240] sm:$0xff] }
 0x16c   : > { %4218 = vmatprep.subr.bf16.mxu0 %v4217_v0  ;;  %v1883_v0 = vld [vmem:[#allocation8 + $0x108] sm:$0xff]  ;;  %v1916_v10 = vld [vmem:[#allocation8 + $0x210] sm:$0xff] }
 0x16d   : > { %3944 = vmatpush1.bf16.msra.mxu1 %v3943_v45  ;;  %v520_v45 = vld [vmem:[#allocation5 + $0x6f0] sm:$0xff]  ;;  %v4239_v9 = vpack.c.bf16 %v1883_v0, %v1880_v63  ;;  %v677_v47 = vld [vmem:[#allocation5 + $0xbd8] sm:$0xff]  ;;  %v1917_v63 = vld [vmem:[#allocation8 + $0x218] sm:$0xff] }
 0x16e   : > { %3946 = vmatprep.subr.bf16.mxu1 %v3945_v46  ;;  %1642 = vmatmul.mubr.f32.vlgmr.msra.gmra.mrb[2].mxu0 %v5451_v24  ;;  %v508_v24 = vld [vmem:[#allocation5 + $0x690] sm:$0xff]  ;;  %v701_v50 = vld [vmem:[#allocation5 + $0xc98] sm:$0xff] }
 0x16f   : > { %4220 = vmatpush1.bf16.msra.mxu0 %v4219_v11  ;;  %v3963_v43 = vpack.c.bf16 %v508_v24, %v496_v34  ;;  %v532_v46 = vld [vmem:[#allocation5 + $0x750] sm:$0xff]  ;;  %v4241_v11 = vpack.c.bf16 %v1890_v3, %v1887_v2  ;;  %v641_v34 = vld [vmem:[#allocation5 + $0xab8] sm:$0xff] }
 0x170   : > { %4222 = vmatprep.subr.bf16.mxu0 %v4221_v13  ;;  %v3967_v57 = vpack.c.bf16 %v532_v46, %v520_v45  ;;  %v1889_v13 = vld [vmem:[#allocation8 + $0x138] sm:$0xff]  ;;  %v3985_v42 = vpack.c.bf16 %v653_v35, %v641_v34  ;;  %v665_v45 = vld [vmem:[#allocation5 + $0xb78] sm:$0xff] }
 0x171   : > { %3948 = vmatpush1.bf16.msra.mxu1 %v3947_v59  ;;  %v544_v59 = vld [vmem:[#allocation5 + $0x7b0] sm:$0xff]  ;;  %v4243_v22 = vpack.c.bf16 %v1889_v13, %v1886_v12  ;;  %v3989_v56 = vpack.c.bf16 %v677_v47, %v665_v45  ;;  %v1920_v0 = vld [vmem:[#allocation8 + $0x230] sm:$0xff] }
 0x172   : > { %3950 = vmatprep.subr.bf16.mxu1 %v3949_v60  ;;  %v556_v60 = vld [vmem:[#allocation5 + $0x810] sm:$0xff]  ;;  %v725_v8 = vld [vmem:[#allocation5 + $0xd58] sm:$0xff] }
 0x173   : > { %4224 = vmatpush1.bf16.msra.mxu0 %v4223_v25  ;;  %v3971_v4 = vpack.c.bf16 %v556_v60, %v544_v59  ;;  %v4245_v25 = vpack.c.bf16 %v1896_v15, %v1893_v14  ;;  %v1911_v53 = vld [vmem:[#allocation8 + $0x1e8] sm:$0xff]  ;;  %v1926_v13 = vld [vmem:[#allocation8 + $0x260] sm:$0xff] }
 0x174   : > { %4226 = vmatprep.subr.bf16.mxu0 %v4225_v27  ;;  %v1895_v27 = vld [vmem:[#allocation8 + $0x168] sm:$0xff] }
 0x175   : > { %3952 = vmatpush1.bf16.msra.mxu1 %v3951_v6  ;;  %v568_v6 = vld [vmem:[#allocation5 + $0x870] sm:$0xff]  ;;  %v4247_v24 = vpack.c.bf16 %v1895_v27, %v1892_v26  ;;  %v689_v59 = vld [vmem:[#allocation5 + $0xc38] sm:$0xff]  ;;  %v1929_v27 = vld [vmem:[#allocation8 + $0x278] sm:$0xff] }
 0x176   : > { %3954 = vmatprep.subr.bf16.mxu1 %v3953_v7  ;;  %v580_v7 = vld [vmem:[#allocation5 + $0x8d0] sm:$0xff]  ;;  %v3993_v3 = vpack.c.bf16 %v701_v50, %v689_v59  ;;  %v749_v21 = vld [vmem:[#allocation5 + $0xe18] sm:$0xff] }
 0x177   : > { %4228 = vmatpush1.bf16.msra.mxu0 %v4227_v36  ;;  %v3975_v16 = vpack.c.bf16 %v580_v7, %v568_v6  ;;  %v4249_v36 = vpack.c.bf16 %v1902_v29, %v1899_v28  ;;  %v713_v6 = vld [vmem:[#allocation5 + $0xcf8] sm:$0xff]  ;;  %v5468_v26 = vld [vmem:[%s5424_s8] sm:$0xff] }
 0x178   : > { %4230 = vmatprep.subr.bf16.mxu0 %v4229_v38  ;;  %v1901_v38 = vld [vmem:[#allocation8 + $0x198] sm:$0xff]  ;;  %v1923_v12 = vld [vmem:[#allocation8 + $0x248] sm:$0xff]  ;;  %v3997_v15 = vpack.c.bf16 %v725_v8, %v713_v6  ;;  %v1932_v28 = vld [vmem:[#allocation8 + $0x290] sm:$0xff] }
 0x179   : > { %3956 = vmatpush1.bf16.msra.mxu1 %v3955_v18  ;;  %v592_v18 = vld [vmem:[#allocation5 + $0x930] sm:$0xff]  ;;  %v4251_v46 = vpack.c.bf16 %v1901_v38, %v1898_v37  ;;  %v4269_v35 = vpack.c.bf16 %v1932_v28, %v1929_v27  ;;  %v833_v6 = vld [vmem:[#allocation5 + $0x10b8] sm:$0xff] }
 0x17a   : > { %3958 = vmatprep.subr.bf16.mxu1 %v3957_v19  ;;  %v604_v19 = vld [vmem:[#allocation5 + $0x990] sm:$0xff]  ;;  %v333_v28 = vld [vmem:[#allocation5 + $0x118] sm:$0xff] }
 0x17b   : > { %4232 = vmatpush1.bf16.msra.mxu0 %v4231_v48  ;;  %v3979_v30 = vpack.c.bf16 %v604_v19, %v592_v18  ;;  %v4253_v48 = vpack.c.bf16 %v1908_v40, %v1905_v39  ;;  %v737_v18 = vld [vmem:[#allocation5 + $0xdb8] sm:$0xff]  ;;  %v1938_v39 = vld [vmem:[#allocation8 + $0x2c0] sm:$0xff] }
 0x17c   : > { %4234 = vmatprep.subr.bf16.mxu0 %v4233_v52  ;;  %v1907_v52 = vld [vmem:[#allocation8 + $0x1c8] sm:$0xff] }
 0x17d   : > { %3960 = vmatpush1.bf16.msra.mxu1 %v3959_v32  ;;  %v616_v32 = vld [vmem:[#allocation5 + $0x9f0] sm:$0xff]  ;;  %v4255_v60 = vpack.c.bf16 %v1907_v52, %v1904_v49  ;;  %v1937_v49 = vld [vmem:[#allocation8 + $0x2b8] sm:$0xff] }
 0x17e   : > { %3962 = vmatprep.subr.bf16.mxu1 %v3961_v33  ;;  %v628_v33 = vld [vmem:[#allocation5 + $0xa50] sm:$0xff]  ;;  %v1941_v52 = vld [vmem:[#allocation8 + $0x2d8] sm:$0xff] }
 0x17f   : > { %4236 = vmatpush1.bf16.msra.mxu0 %v4235_v61  ;;  %v3983_v41 = vpack.c.bf16 %v628_v33, %v616_v32  ;;  %v4257_v61 = vpack.c.bf16 %v1914_v54, %v1911_v53  ;;  %v748_v32 = vld [vmem:[#allocation5 + $0xe10] sm:$0xff]  ;;  %v761_v33 = vld [vmem:[#allocation5 + $0xe78] sm:$0xff] }
 0x180   : > { %4238 = vmatprep.subr.bf16.mxu0 %v4237_v51  ;;  %v1913_v51 = vld [vmem:[#allocation8 + $0x1f8] sm:$0xff]  ;;  %v1931_v37 = vld [vmem:[#allocation8 + $0x288] sm:$0xff]  ;;  %v1944_v53 = vld [vmem:[#allocation8 + $0x2f0] sm:$0xff] }
 0x181   : > { %3964 = vmatpush1.bf16.msra.mxu1 %v3963_v43  ;;  %v640_v43 = vld [vmem:[#allocation5 + $0xab0] sm:$0xff]  ;;  %v4259_v7 = vpack.c.bf16 %v1913_v51, %v1910_v62  ;;  %v4277_v50 = vpack.c.bf16 %v1944_v53, %v1941_v52 }
 0x182   : > { %3966 = vmatprep.subr.bf16.mxu1 %v3965_v44  ;;  %v652_v44 = vld [vmem:[#allocation5 + $0xb10] sm:$0xff] }
 0x183   : > { %4240 = vmatpush1.bf16.msra.mxu0 %v4239_v9  ;;  %v3987_v55 = vpack.c.bf16 %v652_v44, %v640_v43  ;;  %v4261_v9 = vpack.c.bf16 %v1920_v0, %v1917_v63  ;;  %v1935_v38 = vld [vmem:[#allocation8 + $0x2a8] sm:$0xff]  ;;  %v1950_v63 = vld [vmem:[#allocation8 + $0x320] sm:$0xff] }
 0x184   : > { %4242 = vmatprep.subr.bf16.mxu0 %v4241_v11  ;;  %v1919_v11 = vld [vmem:[#allocation8 + $0x228] sm:$0xff]  ;;  %v4273_v47 = vpack.c.bf16 %v1938_v39, %v1935_v38 }
 0x185   : > { %3968 = vmatpush1.bf16.msra.mxu1 %v3967_v57  ;;  %v664_v57 = vld [vmem:[#allocation5 + $0xb70] sm:$0xff]  ;;  %v4263_v19 = vpack.c.bf16 %v1919_v11, %v1916_v10  ;;  %v785_v44 = vld [vmem:[#allocation5 + $0xf38] sm:$0xff] }
 0x186   : > { %3970 = vmatprep.subr.bf16.mxu1 %v3969_v58  ;;  %v676_v58 = vld [vmem:[#allocation5 + $0xbd0] sm:$0xff] }
 0x187   : > { %4244 = vmatpush1.bf16.msra.mxu0 %v4243_v22  ;;  %v3991_v2 = vpack.c.bf16 %v676_v58, %v664_v57  ;;  %v4265_v22 = vpack.c.bf16 %v1926_v13, %v1923_v12  ;;  %v772_v43 = vld [vmem:[#allocation5 + $0xed0] sm:$0xff]  ;;  %v809_v58 = vld [vmem:[#allocation5 + $0xff8] sm:$0xff] }
 0x188   : > { %4246 = vmatprep.subr.bf16.mxu0 %v4245_v25  ;;  %v1925_v25 = vld [vmem:[#allocation8 + $0x258] sm:$0xff]  ;;  %v796_v57 = vld [vmem:[#allocation5 + $0xf90] sm:$0xff]  ;;  %v857_v13 = vld [vmem:[#allocation5 + $0x1178] sm:$0xff] }
 0x189   : > { %3972 = vmatpush1.bf16.msra.mxu1 %v3971_v4  ;;  %v688_v4 = vld [vmem:[#allocation5 + $0xc30] sm:$0xff]  ;;  %v4267_v34 = vpack.c.bf16 %v1925_v25, %v1922_v23 }
 0x18a   : > { %3974 = vmatprep.subr.bf16.mxu1 %v3973_v5  ;;  %v700_v5 = vld [vmem:[#allocation5 + $0xc90] sm:$0xff] }
 0x18b   : > { %4248 = vmatpush1.bf16.msra.mxu0 %v4247_v24  ;;  %v3995_v14 = vpack.c.bf16 %v700_v5, %v688_v4  ;;  %v773_v24 = vld [vmem:[#allocation5 + $0xed8] sm:$0xff]  ;;  %v820_v4 = vld [vmem:[#allocation5 + $0x1050] sm:$0xff] }
 0x18c   : > { %4250 = vmatprep.subr.bf16.mxu0 %v4249_v36  ;;  %v1928_v36 = vld [vmem:[#allocation8 + $0x270] sm:$0xff]  ;;  %v1943_v62 = vld [vmem:[#allocation8 + $0x2e8] sm:$0xff] }
 0x18d   : > { %3976 = vmatpush1.bf16.msra.mxu1 %v3975_v16  ;;  %v712_v16 = vld [vmem:[#allocation5 + $0xcf0] sm:$0xff]  ;;  %v4271_v45 = vpack.c.bf16 %v1931_v37, %v1928_v36 }
 0x18e   : > { %3978 = vmatprep.subr.bf16.mxu1 %v3977_v17  ;;  %v724_v17 = vld [vmem:[#allocation5 + $0xd50] sm:$0xff] }
 0x18f   : > { %4252 = vmatpush1.bf16.msra.mxu0 %v4251_v46  ;;  %v3999_v29 = vpack.c.bf16 %v724_v17, %v712_v16  ;;  %v797_v46 = vld [vmem:[#allocation5 + $0xf98] sm:$0xff]  ;;  %v832_v11 = vld [vmem:[#allocation5 + $0x10b0] sm:$0xff] }
 0x190   : > { %4254 = vmatprep.subr.bf16.mxu0 %v4253_v48  ;;  %v1934_v48 = vld [vmem:[#allocation8 + $0x2a0] sm:$0xff]  ;;  %v1947_v51 = vld [vmem:[#allocation8 + $0x308] sm:$0xff] }
 0x191   : > { %3980 = vmatpush1.bf16.msra.mxu1 %v3979_v30  ;;  %v4001_v30 = vpack.c.bf16 %v749_v21, %v737_v18  ;;  %v4275_v59 = vpack.c.bf16 %v1937_v49, %v1934_v48  ;;  %v4281_v8 = vpack.c.bf16 %v1950_v63, %v1947_v51  ;;  %v844_v12 = vld [vmem:[#allocation5 + $0x1110] sm:$0xff]  ;;  %v321_v21 = vld [vmem:[#allocation5 + $0xb8] sm:$0xff] }
 0x192   : > { %3982 = vmatprep.subr.bf16.mxu1 %v3981_v31  ;;  %v736_v31 = vld [vmem:[#allocation5 + $0xdb0] sm:$0xff]  ;;  %v417_v48 = vld [vmem:[#allocation5 + $0x3b8] sm:$0xff] }
 0x193   : > { %4256 = vmatpush1.bf16.msra.mxu0 %v4255_v60  ;;  %v4003_v40 = vpack.c.bf16 %v748_v32, %v736_v31  ;;  %v821_v60 = vld [vmem:[#allocation5 + $0x1058] sm:$0xff]  ;;  %v856_v17 = vld [vmem:[#allocation5 + $0x1170] sm:$0xff] }
 0x194   : > { %4258 = vmatprep.subr.bf16.mxu0 %v4257_v61  ;;  %v1940_v61 = vld [vmem:[#allocation8 + $0x2d0] sm:$0xff]  ;;  %v868_v18 = vld [vmem:[#allocation5 + $0x11d0] sm:$0xff] }
 0x195   : > { %3984 = vmatpush1.bf16.msra.mxu1 %v3983_v41  ;;  %v4005_v41 = vpack.c.bf16 %v773_v24, %v761_v33  ;;  %v4279_v5 = vpack.c.bf16 %v1943_v62, %v1940_v61  ;;  %v308_v25 = vld [vmem:[#allocation5 + $0x50] sm:$0xff]  ;;  %v369_v24 = vld [vmem:[#allocation5 + $0x238] sm:$0xff] }
 0x196   : > { %3986 = vmatprep.subr.bf16.mxu1 %v3985_v42  ;;  %v760_v42 = vld [vmem:[#allocation5 + $0xe70] sm:$0xff]  ;;  %v453_v51 = vld [vmem:[#allocation5 + $0x4d8] sm:$0xff] }
 0x197   : > { %4260 = vmatpush1.bf16.msra.mxu0 %v4259_v7  ;;  %v4007_v54 = vpack.c.bf16 %v772_v43, %v760_v42  ;;  %v845_v7 = vld [vmem:[#allocation5 + $0x1118] sm:$0xff]  ;;  %v320_v27 = vld [vmem:[#allocation5 + $0xb0] sm:$0xff]  ;;  %v878_v42 = vlaneseq }
 0x198   : > { %4262 = vmatprep.subr.bf16.mxu0 %v4261_v9  ;;  %v4017_v10 = vpack.c.bf16 %v845_v7, %v833_v6  ;;  %v332_v32 = vld [vmem:[#allocation5 + $0x110] sm:$0xff]  ;;  %v465_v63 = vld [vmem:[#allocation5 + $0x538] sm:$0xff] }
 0x199   : > { %3988 = vmatpush1.bf16.msra.mxu1 %v3987_v55  ;;  %v4009_v55 = vpack.c.bf16 %v797_v46, %v785_v44  ;;  %v344_v33 = vld [vmem:[#allocation5 + $0x170] sm:$0xff]  ;;  %v5477_v49 = vshrl.u32 %v878_v42, 7 }
 0x19a   : > { %3990 = vmatprep.subr.bf16.mxu1 %v3989_v56  ;;  %v784_v56 = vld [vmem:[#allocation5 + $0xf30] sm:$0xff]  ;;  %v4127_v36 = vpack.c.bf16 %v344_v33, %v332_v32 }
 0x19b   : > { %4264 = vmatpush1.bf16.msra.mxu0 %v4263_v19  ;;  %v4011_v0 = vpack.c.bf16 %v796_v57, %v784_v56  ;;  %v309_v19 = vld [vmem:[#allocation5 + $0x58] sm:$0xff]  ;;  %v356_v38 = vld [vmem:[#allocation5 + $0x1d0] sm:$0xff]  ;;  %v5480_v57 = vsub.s32 0, %v5477_v49 }
 0x19c   : > { %4266 = vmatprep.subr.bf16.mxu0 %v4265_v22  ;;  %v4023_v22 = vpack.c.bf16 %v868_v18, %v856_v17  ;;  %v4121_v23 = vpack.c.bf16 %v321_v21, %v309_v19  ;;  %v368_v39 = vld [vmem:[#allocation5 + $0x230] sm:$0xff]  ;;  %v441_v56 = vld [vmem:[#allocation5 + $0x478] sm:$0xff] }
 0x19d   : > { %3992 = vmatpush1.bf16.msra.mxu1 %v3991_v2  ;;  %v4013_v2 = vpack.c.bf16 %v821_v60, %v809_v58  ;;  %v4131_v43 = vpack.c.bf16 %v368_v39, %v356_v38  ;;  %v392_v46 = vld [vmem:[#allocation5 + $0x2f0] sm:$0xff]  ;;  %v5485_v60 = vsub.s32 1, %v5477_v49  ;;  %v501_v19 = vld [vmem:[#allocation5 + $0x658] sm:$0xff] }
 0x19e   : > { %3994 = vmatprep.subr.bf16.mxu1 %v3993_v3  ;;  %v808_v3 = vld [vmem:[#allocation5 + $0xff0] sm:$0xff]  ;;  %v513_v21 = vld [vmem:[#allocation5 + $0x6b8] sm:$0xff] }
 0x19f   : > { %4268 = vmatpush1.bf16.msra.mxu0 %v4267_v34  ;;  %v4015_v9 = vpack.c.bf16 %v820_v4, %v808_v3  ;;  %v357_v34 = vld [vmem:[#allocation5 + $0x1d8] sm:$0xff]  ;;  %v404_v53 = vld [vmem:[#allocation5 + $0x350] sm:$0xff]  ;;  %v4145_v4 = vpack.c.bf16 %v465_v63, %v453_v51 }
 0x1a0   : > { %1429 = vmatmul.mubr.f32.vlgmr.msra.gmra.mrb[4].mxu1 %v5468_v26  ;;  %4270 = vmatprep.subr.bf16.mxu0 %v4269_v35  ;;  %v5473_v35 = vld [vmem:[%s5424_s8 + $0x10] sm:$0xff]  ;;  %v4129_v37 = vpack.c.bf16 %v369_v24, %v357_v34  ;;  %v428_v61 = vld [vmem:[#allocation5 + $0x410] sm:$0xff] }
 0x1a1   : > { %3996 = vmatpush1.bf16.msra.mxu1 %v3995_v14  ;;  %1499 = vmatprep.mubr.f32.mxu1 %v5180_v1  ;;  %v869_v14 = vld [vmem:[#allocation5 + $0x11d8] sm:$0xff]  ;;  %v440_v62 = vld [vmem:[#allocation5 + $0x470] sm:$0xff] }
 0x1a2   : > { %3998 = vmatprep.subr.bf16.mxu1 %v3997_v15  ;;  %v4019_v15 = vpack.c.bf16 %v844_v12, %v832_v11  ;;  %v4021_v16 = vpack.c.bf16 %v869_v14, %v857_v13  ;;  %v4143_v3 = vpack.c.bf16 %v440_v62, %v428_v61  ;;  %v464_v6 = vld [vmem:[#allocation5 + $0x530] sm:$0xff]  ;;  %v549_v34 = vld [vmem:[#allocation5 + $0x7d8] sm:$0xff] }
 0x1a3   : > { %4272 = vmatpush1.bf16.msra.mxu0 %v4271_v45  ;;  %v380_v45 = vld [vmem:[#allocation5 + $0x290] sm:$0xff]  ;;  %v561_v24 = vld [vmem:[#allocation5 + $0x838] sm:$0xff] }
 0x1a4   : > { %4274 = vmatprep.subr.bf16.mxu0 %v4273_v47  ;;  %v405_v47 = vld [vmem:[#allocation5 + $0x358] sm:$0xff]  ;;  %v4135_v52 = vpack.c.bf16 %v392_v46, %v380_v45  ;;  %v488_v17 = vld [vmem:[#allocation5 + $0x5f0] sm:$0xff]  ;;  %v4161_v38 = vpack.c.bf16 %v561_v24, %v549_v34  ;;  %v1949_v46 = vld [vmem:[#allocation8 + $0x318] sm:$0xff] }
 0x1a5   : > { %4000 = vmatpush1.bf16.msra.mxu1 %v3999_v29  ;;  %v345_v29 = vld [vmem:[#allocation5 + $0x178] sm:$0xff]  ;;  %v524_v32 = vld [vmem:[#allocation5 + $0x710] sm:$0xff] }
 0x1a6   : > { %4002 = vmatprep.subr.bf16.mxu1 %v4001_v30  ;;  %v4123_v30 = vpack.c.bf16 %v320_v27, %v308_v25  ;;  %v4125_v31 = vpack.c.bf16 %v345_v29, %v333_v28  ;;  %v500_v25 = vld [vmem:[#allocation5 + $0x650] sm:$0xff]  ;;  %v525_v28 = vld [vmem:[#allocation5 + $0x718] sm:$0xff] }
 0x1a7   : > { %4276 = vmatpush1.bf16.msra.mxu0 %v4275_v59  ;;  %v5482_v59 = vld [vmem:[#allocation7] sm:$0xff]  ;;  %v512_v27 = vld [vmem:[#allocation5 + $0x6b0] sm:$0xff]  ;;  %v537_v29 = vld [vmem:[#allocation5 + $0x778] sm:$0xff] }
 0x1a8   : > { %4278 = vmatprep.subr.bf16.mxu0 %v4277_v50  ;;  %v536_v33 = vld [vmem:[#allocation5 + $0x770] sm:$0xff]  ;;  %v597_v61 = vld [vmem:[#allocation5 + $0x958] sm:$0xff] }
 0x1a9   : > { %4004 = vmatpush1.bf16.msra.mxu1 %v4003_v40  ;;  %v381_v40 = vld [vmem:[#allocation5 + $0x298] sm:$0xff]  ;;  %v548_v39 = vld [vmem:[#allocation5 + $0x7d0] sm:$0xff] }
 0x1aa   : > { %4006 = vmatprep.subr.bf16.mxu1 %v4005_v41  ;;  %v393_v41 = vld [vmem:[#allocation5 + $0x2f8] sm:$0xff]  ;;  %v1946_v45 = vld [vmem:[#allocation8 + $0x300] sm:$0xff] }
 0x1ab   : > { %4280 = vmatpush1.bf16.msra.mxu0 %v4279_v5  ;;  %v4133_v44 = vpack.c.bf16 %v393_v41, %v381_v40  ;;  %v452_v5 = vld [vmem:[#allocation5 + $0x4d0] sm:$0xff]  ;;  %v573_v41 = vld [vmem:[#allocation5 + $0x898] sm:$0xff]  ;;  %v4283_v62 = vpack.c.bf16 %v1949_v46, %v1946_v45  ;;  %v1977_v45 = vld [vmem:[#allocation8 + $0x3f8] sm:$0xff] }
 0x1ac   : > { %4282 = vmatprep.subr.bf16.mxu0 %v4281_v8  ;;  %v477_v8 = vld [vmem:[#allocation5 + $0x598] sm:$0xff]  ;;  %v4147_v13 = vpack.c.bf16 %v464_v6, %v452_v5  ;;  %v560_v40 = vld [vmem:[#allocation5 + $0x830] sm:$0xff] }
 0x1ad   : > { %4008 = vmatpush1.bf16.msra.mxu1 %v4007_v54  ;;  %v416_v54 = vld [vmem:[#allocation5 + $0x3b0] sm:$0xff]  ;;  %v609_v63 = vld [vmem:[#allocation5 + $0x9b8] sm:$0xff] }
 0x1ae   : > { %4010 = vmatprep.subr.bf16.mxu1 %v4009_v55  ;;  %v429_v55 = vld [vmem:[#allocation5 + $0x418] sm:$0xff]  ;;  %v4139_v58 = vpack.c.bf16 %v416_v54, %v404_v53  ;;  %v4163_v54 = vpack.c.bf16 %v560_v40, %v548_v39  ;;  %v1962_v6 = vld [vmem:[#allocation8 + $0x380] sm:$0xff] }
 0x1af   : > { %v4141_v50 = vpack.c.bf16 %v441_v56, %v429_v55  ;;  %v1959_v5 = vld [vmem:[#allocation8 + $0x368] sm:$0xff]  ;;  %v1974_v34 = vld [vmem:[#allocation8 + $0x3e0] sm:$0xff]  ;;  %v1980_v46 = vld [vmem:[#allocation8 + $0x410] sm:$0xff] }
 0x1b0   : > { %v669_v39 = vld [vmem:[#allocation5 + $0xb98] sm:$0xff] }
 0x1b1   : > { %4012 = vmatpush1.bf16.msra.mxu1 %v4011_v0  ;;  %v881_v0 = vrot.slane %v5482_v59, %v5480_v57 }
 0x1b2   : > { %4014 = vmatprep.subr.bf16.mxu1 %v4013_v2  ;;  %v885_v2 = vrot.slane %v5482_v59, %v5485_v60 }
 0x1b5   : > { %4016 = vmatpush1.bf16.msra.mxu1 %v4015_v9  ;;  %v489_v9 = vld [vmem:[#allocation5 + $0x5f8] sm:$0xff] }
 0x1b6   : > { %4018 = vmatprep.subr.bf16.mxu1 %v4017_v10 }
 0x1b9   : > { %4020 = vmatpush1.bf16.msra.mxu1 %v4019_v15  ;;  %v4149_v15 = vpack.c.bf16 %v489_v9, %v477_v8  ;;  %v4169_v9 = vpack.c.bf16 %v609_v63, %v597_v61  ;;  %v1979_v61 = vld [vmem:[#allocation8 + $0x408] sm:$0xff]  ;;  %v1986_v63 = vld [vmem:[#allocation8 + $0x440] sm:$0xff] }
 0x1ba   : > { %4022 = vmatprep.subr.bf16.mxu1 %v4021_v16  ;;  %v476_v16 = vld [vmem:[#allocation5 + $0x590] sm:$0xff] }
 0x1bd   : > { %4024 = vmatpush1.bf16.msra.mxu1 %v4023_v22  ;;  %v4151_v22 = vpack.c.bf16 %v488_v17, %v476_v16  ;;  %v1958_v16 = vld [vmem:[#allocation8 + $0x360] sm:$0xff]  ;;  %v1961_v17 = vld [vmem:[#allocation8 + $0x378] sm:$0xff] }
 0x1be   : > { %4122 = vmatprep.subr.bf16.mxu1 %v4121_v23  ;;  %v4153_v23 = vpack.c.bf16 %v513_v21, %v501_v19  ;;  %v1968_v19 = vld [vmem:[#allocation8 + $0x3b0] sm:$0xff] }
 0x1c0   : > { %1500 = vmatmul.mubr.f32.vlgmr.msra.gmra.mrb[4].mxu1 %v5473_v35 }
 0x1c1   : > { %4124 = vmatpush1.bf16.msra.mxu1 %v4123_v30  ;;  %1712 = vmatprep.mubr.f32.mxu1 %v5463_v20  ;;  %v4137_v20 = vpack.c.bf16 %v417_v48, %v405_v47  ;;  %v4155_v30 = vpack.c.bf16 %v512_v27, %v500_v25  ;;  %v632_v25 = vld [vmem:[#allocation5 + $0xa70] sm:$0xff]  ;;  %v645_v27 = vld [vmem:[#allocation5 + $0xad8] sm:$0xff] }
 0x1c2   : > { %4126 = vmatprep.subr.bf16.mxu1 %v4125_v31  ;;  %v4157_v31 = vpack.c.bf16 %v537_v29, %v525_v28  ;;  %v4291_v28 = vpack.c.bf16 %v1961_v17, %v1958_v16  ;;  %v657_v29 = vld [vmem:[#allocation5 + $0xb38] sm:$0xff]  ;;  %v716_v17 = vld [vmem:[#allocation5 + $0xd10] sm:$0xff] }
 0x1c5   : > { %4128 = vmatpush1.bf16.msra.mxu1 %v4127_v36  ;;  %v4159_v36 = vpack.c.bf16 %v536_v33, %v524_v32  ;;  %v1967_v32 = vld [vmem:[#allocation8 + $0x3a8] sm:$0xff] }
 0x1c6   : > { %4130 = vmatprep.subr.bf16.mxu1 %v4129_v37  ;;  %v1971_v33 = vld [vmem:[#allocation8 + $0x3c8] sm:$0xff] }
 0x1c9   : > { %4132 = vmatpush1.bf16.msra.mxu1 %v4131_v43 }
 0x1ca   : > { %4134 = vmatprep.subr.bf16.mxu1 %v4133_v44  ;;  %v585_v44 = vld [vmem:[#allocation5 + $0x8f8] sm:$0xff] }
 0x1cb   : > { %v4165_v56 = vpack.c.bf16 %v585_v44, %v573_v41  ;;  %v681_v41 = vld [vmem:[#allocation5 + $0xbf8] sm:$0xff]  ;;  %v1973_v44 = vld [vmem:[#allocation8 + $0x3d8] sm:$0xff] }
 0x1cd   : > { %4136 = vmatpush1.bf16.msra.mxu1 %v4135_v52  ;;  %v1953_v52 = vld [vmem:[#allocation8 + $0x338] sm:$0xff] }
 0x1ce   : > { %4138 = vmatprep.subr.bf16.mxu1 %v4137_v20  ;;  %v1956_v20 = vld [vmem:[#allocation8 + $0x350] sm:$0xff] }
 0x1d1   : > { %4140 = vmatpush1.bf16.msra.mxu1 %v4139_v58  ;;  %v572_v58 = vld [vmem:[#allocation5 + $0x890] sm:$0xff] }
 0x1d2   : > { %4142 = vmatprep.subr.bf16.mxu1 %v4141_v50  ;;  %v584_v50 = vld [vmem:[#allocation5 + $0x8f0] sm:$0xff] }
 0x1d3   : > { %v1075_v7 = vpop.f32.mrb[0].mxu1 }
 0x1d4   : > { %v4793_v10 = vadd.f32 %v1075_v7, %v881_v0  ;;  %v1077_v11 = vpop.f32.mrb[1].mxu1  ;;  %v4285_v0 = vpack.c.bf16 %v1956_v20, %v1953_v52  ;;  %v4167_v7 = vpack.c.bf16 %v584_v50, %v572_v58  ;;  %v668_v52 = vld [vmem:[#allocation5 + $0xb90] sm:$0xff]  ;;  %v4301_v58 = vpack.c.bf16 %v1980_v46, %v1977_v45  ;;  %v1976_v50 = vld [vmem:[#allocation8 + $0x3f0] sm:$0xff] }
 0x1d5   : > { %v4794_v12 = vadd.f32 %v1077_v11, %v885_v2  ;;  %4144 = vmatpush1.bf16.msra.mxu1 %v4143_v3  ;;  %v1952_v2 = vld [vmem:[#allocation8 + $0x330] sm:$0xff]  ;;  %v1955_v3 = vld [vmem:[#allocation8 + $0x348] sm:$0xff] }
 0x1d6   : > { %v1802_v14 = vmul.f32 0.70710677, %v4793_v10  ;;  %4146 = vmatprep.subr.bf16.mxu1 %v4145_v4  ;;  %v1790_v53 = vmul.f32 0.5, %v4793_v10  ;;  %v596_v10 = vld [vmem:[#allocation5 + $0x950] sm:$0xff]  ;;  %v801_v46 = vld [vmem:[#allocation5 + $0xfb8] sm:$0xff] }
 0x1d7   : > { %v1803_v18 = vmul.f32 0.70710677, %v4794_v12  ;;  %v1791_v47 = vmul.f32 0.5, %v4794_v12  ;;  %v608_v11 = vld [vmem:[#allocation5 + $0x9b0] sm:$0xff]  ;;  %v621_v12 = vld [vmem:[#allocation5 + $0xa18] sm:$0xff] }
 0x1d8   : > { %4925 = verf.f32 %v1802_v14  ;;  %v633_v14 = vld [vmem:[#allocation5 + $0xa78] sm:$0xff]  ;;  %v4171_v21 = vpack.c.bf16 %v608_v11, %v596_v10  ;;  %v680_v20 = vld [vmem:[#allocation5 + $0xbf0] sm:$0xff] }
 0x1d9   : > { %4927 = verf.f32 %v1803_v18  ;;  %4148 = vmatpush1.bf16.msra.mxu1 %v4147_v13  ;;  %v4287_v13 = vpack.c.bf16 %v1955_v3, %v1952_v2  ;;  %v1965_v18 = vld [vmem:[#allocation8 + $0x398] sm:$0xff]  ;;  %v692_v3 = vld [vmem:[#allocation5 + $0xc50] sm:$0xff] }
 0x1da   : > { %4150 = vmatprep.subr.bf16.mxu1 %v4149_v15  ;;  %v4289_v15 = vpack.c.bf16 %v1962_v6, %v1959_v5  ;;  %v704_v5 = vld [vmem:[#allocation5 + $0xcb0] sm:$0xff]  ;;  %v717_v6 = vld [vmem:[#allocation5 + $0xd18] sm:$0xff] }
 0x1db   : > { %v1982_v11 = vld [vmem:[#allocation8 + $0x420] sm:$0xff] }
 0x1dd   : > { %4152 = vmatpush1.bf16.msra.mxu1 %v4151_v22  ;;  %v4173_v22 = vpack.c.bf16 %v633_v14, %v621_v12  ;;  %v1985_v12 = vld [vmem:[#allocation8 + $0x438] sm:$0xff]  ;;  %v1992_v14 = vld [vmem:[#allocation8 + $0x470] sm:$0xff] }
 0x1de   : > { %4154 = vmatprep.subr.bf16.mxu1 %v4153_v23  ;;  %v620_v23 = vld [vmem:[#allocation5 + $0xa10] sm:$0xff] }
 0x1df   : > { %v4175_v24 = vpack.c.bf16 %v632_v25, %v620_v23  ;;  %v1988_v25 = vld [vmem:[#allocation8 + $0x450] sm:$0xff] }
 0x1e1   : > { %4156 = vmatpush1.bf16.msra.mxu1 %v4155_v30  ;;  %v5496_v4 = vpop.f32.mrb[0].mxu0  ;;  %v4293_v30 = vpack.c.bf16 %v1968_v19, %v1965_v18  ;;  %v728_v18 = vld [vmem:[#allocation5 + $0xd70] sm:$0xff]  ;;  %v741_v19 = vld [vmem:[#allocation5 + $0xdd8] sm:$0xff] }
 0x1e2   : > { %v4926_v37 = vpop.eup %4925  ;;  %4158 = vmatprep.subr.bf16.mxu1 %v4157_v31  ;;  %v5499_v8 = vpop.f32.mrb[1].mxu0  ;;  %v1964_v31 = vld [vmem:[#allocation8 + $0x390] sm:$0xff] }
 0x1e3   : > { %v4928_v42 = vpop.eup %4927  ;;  %v1826_v43 = vadd.f32 1.0, %v4926_v37  ;;  %v644_v37 = vld [vmem:[#allocation5 + $0xad0] sm:$0xff]  ;;  %v4295_v40 = vpack.c.bf16 %v1967_v32, %v1964_v31 }
 0x1e4   : > { %v1827_v48 = vadd.f32 1.0, %v4928_v42  ;;  %v4297_v42 = vpack.c.bf16 %v1974_v34, %v1971_v33  ;;  %v740_v32 = vld [vmem:[#allocation5 + $0xdd0] sm:$0xff]  ;;  %v765_v34 = vld [vmem:[#allocation5 + $0xe98] sm:$0xff] }
 0x1e5   : > { %4160 = vmatpush1.bf16.msra.mxu1 %v4159_v36  ;;  %v5493_v51 = vmul.f32 %v1826_v43, %v1790_v53  ;;  %v4177_v36 = vpack.c.bf16 %v657_v29, %v645_v27  ;;  %v1970_v43 = vld [vmem:[#allocation8 + $0x3c0] sm:$0xff]  ;;  %v693_v53 = vld [vmem:[#allocation5 + $0xc58] sm:$0xff] }
 0x1e6   : > { %4162 = vmatprep.subr.bf16.mxu1 %v4161_v38  ;;  %v5491_v55 = vmul.f32 %v1827_v48, %v1791_v47  ;;  %v656_v38 = vld [vmem:[#allocation5 + $0xb30] sm:$0xff]  ;;  %v4181_v48 = vpack.c.bf16 %v681_v41, %v669_v39  ;;  %v1997_v39 = vld [vmem:[#allocation8 + $0x498] sm:$0xff] }
 0x1e7   : > { %v4179_v47 = vpack.c.bf16 %v656_v38, %v644_v37  ;;  %v1991_v27 = vld [vmem:[#allocation8 + $0x468] sm:$0xff]  ;;  %v1998_v29 = vld [vmem:[#allocation8 + $0x4a0] sm:$0xff] }
 0x1e8   : > { %2507 = vmatprep.mubr.f32.mxu0 %v5491_v55  ;;  %v752_v33 = vld [vmem:[#allocation5 + $0xe30] sm:$0xff] }
 0x1e9   : > { %4164 = vmatpush1.bf16.msra.mxu1 %v4163_v54  ;;  %2508 = vmatmul.mubr.f32.vlgmr.msra.gmra.mrb[4].mxu0 %v5493_v51  ;;  %v4299_v54 = vpack.c.bf16 %v1973_v44, %v1970_v43  ;;  %v1994_v38 = vld [vmem:[#allocation8 + $0x480] sm:$0xff]  ;;  %v4195_v41 = vpack.c.bf16 %v752_v33, %v740_v32  ;;  %v789_v44 = vld [vmem:[#allocation5 + $0xf58] sm:$0xff]  ;;  %v2021_v32 = vld [vmem:[#allocation8 + $0x558] sm:$0xff] }
 0x1ea   : > { %4166 = vmatprep.subr.bf16.mxu1 %v4165_v56  ;;  %4284 = vmatpush1.bf16.msra.mxu0 %v4283_v62  ;;  %v705_v56 = vld [vmem:[#allocation5 + $0xcb8] sm:$0xff]  ;;  %v764_v43 = vld [vmem:[#allocation5 + $0xe90] sm:$0xff]  ;;  %v4315_v45 = vpack.c.bf16 %v1997_v39, %v1994_v38  ;;  %v2025_v33 = vld [vmem:[#allocation8 + $0x578] sm:$0xff] }
 0x1eb   : > { %4286 = vmatprep.subr.bf16.mxu0 %v4285_v0  ;;  %v1983_v62 = vld [vmem:[#allocation8 + $0x428] sm:$0xff]  ;;  %v4183_v0 = vpack.c.bf16 %v680_v20, %v668_v52  ;;  %v4185_v2 = vpack.c.bf16 %v705_v56, %v693_v53  ;;  %v2010_v53 = vld [vmem:[#allocation8 + $0x500] sm:$0xff]  ;;  %v4201_v56 = vpack.c.bf16 %v801_v46, %v789_v44  ;;  %v1900_v39 = vld [vmem:[#allocation8 + $0x190] sm:$0xff] }
 0x1ec   : > { %v4305_v10 = vpack.c.bf16 %v1986_v63, %v1983_v62  ;;  %v2003_v52 = vld [vmem:[#allocation8 + $0x4c8] sm:$0xff]  ;;  %v2034_v44 = vld [vmem:[#allocation8 + $0x5c0] sm:$0xff] }
 0x1ed   : > { %4168 = vmatpush1.bf16.msra.mxu1 %v4167_v7  ;;  %v4303_v7 = vpack.c.bf16 %v1979_v61, %v1976_v50  ;;  %v2007_v20 = vld [vmem:[#allocation8 + $0x4e8] sm:$0xff] }
 0x1ee   : > { %4170 = vmatprep.subr.bf16.mxu1 %v4169_v9  ;;  %4288 = vmatpush1.bf16.msra.mxu0 %v4287_v13  ;;  %v729_v9 = vld [vmem:[#allocation5 + $0xd78] sm:$0xff]  ;;  %v1989_v13 = vld [vmem:[#allocation8 + $0x458] sm:$0xff]  ;;  %v800_v50 = vld [vmem:[#allocation5 + $0xfb0] sm:$0xff] }
 0x1ef   : > { %4290 = vmatprep.subr.bf16.mxu0 %v4289_v15  ;;  %v4187_v15 = vpack.c.bf16 %v704_v5, %v692_v3  ;;  %v4189_v16 = vpack.c.bf16 %v729_v9, %v717_v6  ;;  %v4309_v23 = vpack.c.bf16 %v1992_v14, %v1989_v13  ;;  %v813_v61 = vld [vmem:[#allocation5 + $0x1018] sm:$0xff]  ;;  %v2009_v3 = vld [vmem:[#allocation8 + $0x4f8] sm:$0xff]  ;;  %v872_v38 = vld [vmem:[#allocation5 + $0x11f0] sm:$0xff] }
 0x1f0   : > { %v825_v63 = vld [vmem:[#allocation5 + $0x1078] sm:$0xff]  ;;  %v2013_v5 = vld [vmem:[#allocation8 + $0x518] sm:$0xff] }
 0x1f1   : > { %4172 = vmatpush1.bf16.msra.mxu1 %v4171_v21  ;;  %v4307_v21 = vpack.c.bf16 %v1985_v12, %v1982_v11  ;;  %v2016_v6 = vld [vmem:[#allocation8 + $0x530] sm:$0xff]  ;;  %v4205_v9 = vpack.c.bf16 %v825_v63, %v813_v61  ;;  %v824_v11 = vld [vmem:[#allocation5 + $0x1070] sm:$0xff] }
 0x1f2   : > { %4174 = vmatprep.subr.bf16.mxu1 %v4173_v22  ;;  %4292 = vmatpush1.bf16.msra.mxu0 %v4291_v28  ;;  %v753_v22 = vld [vmem:[#allocation5 + $0xe38] sm:$0xff] }
 0x1f3   : > { %4294 = vmatprep.subr.bf16.mxu0 %v4293_v30  ;;  %v1995_v28 = vld [vmem:[#allocation8 + $0x488] sm:$0xff]  ;;  %v4191_v30 = vpack.c.bf16 %v728_v18, %v716_v17  ;;  %v4193_v31 = vpack.c.bf16 %v753_v22, %v741_v19  ;;  %v2022_v19 = vld [vmem:[#allocation8 + $0x560] sm:$0xff]  ;;  %v2040_v61 = vld [vmem:[#allocation8 + $0x5f0] sm:$0xff] }
 0x1f4   : > { %v4313_v37 = vpack.c.bf16 %v1998_v29, %v1995_v28  ;;  %v837_v12 = vld [vmem:[#allocation5 + $0x10d8] sm:$0xff] }
 0x1f5   : > { %4176 = vmatpush1.bf16.msra.mxu1 %v4175_v24  ;;  %v4311_v24 = vpack.c.bf16 %v1991_v27, %v1988_v25  ;;  %v849_v14 = vld [vmem:[#allocation5 + $0x1138] sm:$0xff]  ;;  %v848_v25 = vld [vmem:[#allocation5 + $0x1130] sm:$0xff] }
 0x1f6   : > { %4178 = vmatprep.subr.bf16.mxu1 %v4177_v36  ;;  %4296 = vmatpush1.bf16.msra.mxu0 %v4295_v40  ;;  %v777_v36 = vld [vmem:[#allocation5 + $0xef8] sm:$0xff]  ;;  %v2001_v40 = vld [vmem:[#allocation8 + $0x4b8] sm:$0xff]  ;;  %v4209_v22 = vpack.c.bf16 %v849_v14, %v837_v12  ;;  %v2046_v12 = vld [vmem:[#allocation8 + $0x620] sm:$0xff] }
 0x1f7   : > { %4298 = vmatprep.subr.bf16.mxu0 %v4297_v42  ;;  %v4197_v42 = vpack.c.bf16 %v777_v36, %v765_v34  ;;  %v2015_v17 = vld [vmem:[#allocation8 + $0x528] sm:$0xff]  ;;  %v2028_v34 = vld [vmem:[#allocation8 + $0x590] sm:$0xff] }
 0x1f8   : > { %v2019_v18 = vld [vmem:[#allocation8 + $0x548] sm:$0xff] }
 0x1f9   : > { %4180 = vmatpush1.bf16.msra.mxu1 %v4179_v47  ;;  %v861_v27 = vld [vmem:[#allocation5 + $0x1198] sm:$0xff] }
 0x1fa   : > { %4182 = vmatprep.subr.bf16.mxu1 %v4181_v48  ;;  %4300 = vmatpush1.bf16.msra.mxu0 %v4299_v54  ;;  %v2000_v48 = vld [vmem:[#allocation8 + $0x4b0] sm:$0xff] }
 0x1fb   : > { %4302 = vmatprep.subr.bf16.mxu0 %v4301_v58  ;;  %v788_v58 = vld [vmem:[#allocation5 + $0xf50] sm:$0xff]  ;;  %v4319_v62 = vpack.c.bf16 %v2003_v52, %v2000_v48  ;;  %v873_v29 = vld [vmem:[#allocation5 + $0x11f8] sm:$0xff] }
 0x1fc   : > { %v4213_v36 = vpack.c.bf16 %v873_v29, %v861_v27  ;;  %v1855_v48 = vld [vmem:[#allocation8 + $0x28] sm:$0xff]  ;;  %v1906_v52 = vld [vmem:[#allocation8 + $0x1c0] sm:$0xff]  ;;  %v1924_v27 = vld [vmem:[#allocation8 + $0x250] sm:$0xff] }
 0x1fd   : > { %4184 = vmatpush1.bf16.msra.mxu1 %v4183_v0  ;;  %v4321_v0 = vpack.c.bf16 %v2010_v53, %v2007_v20  ;;  %v1909_v53 = vld [vmem:[#allocation8 + $0x1d8] sm:$0xff] }
 0x1fe   : > { %4186 = vmatprep.subr.bf16.mxu1 %v4185_v2  ;;  %4304 = vmatpush1.bf16.msra.mxu0 %v4303_v7  ;;  %v2006_v2 = vld [vmem:[#allocation8 + $0x4e0] sm:$0xff]  ;;  %v4203_v7 = vpack.c.bf16 %v800_v50, %v788_v58  ;;  %v2033_v58 = vld [vmem:[#allocation8 + $0x5b8] sm:$0xff]  ;;  %v4605_v63 = vpack.c.bf16 %v1909_v53, %v1906_v52 }
 0x1ff   : > { %4306 = vmatprep.subr.bf16.mxu0 %v4305_v10  ;;  %v812_v10 = vld [vmem:[#allocation5 + $0x1010] sm:$0xff]  ;;  %v4323_v13 = vpack.c.bf16 %v2009_v3, %v2006_v2  ;;  %v2037_v50 = vld [vmem:[#allocation8 + $0x5d8] sm:$0xff]  ;;  %v1912_v3 = vld [vmem:[#allocation8 + $0x1f0] sm:$0xff] }
 0x200   : > { %1713 = vmatmul.mubr.f32.vlgmr.msra.gmra.mrb[6].mxu1 %v5468_v26  ;;  %v2004_v26 = vld [vmem:[#allocation8 + $0x4d0] sm:$0xff]  ;;  %v1861_v2 = vld [vmem:[#allocation8 + $0x58] sm:$0xff]  ;;  %v1942_v53 = vld [vmem:[#allocation8 + $0x2e0] sm:$0xff] }
 0x201   : > { %4188 = vmatpush1.bf16.msra.mxu1 %v4187_v15  ;;  %1783 = vmatprep.mubr.f32.mxu1 %v5180_v1  ;;  %v776_v1 = vld [vmem:[#allocation5 + $0xef0] sm:$0xff]  ;;  %v4317_v47 = vpack.c.bf16 %v2004_v26, %v2001_v40  ;;  %v4325_v15 = vpack.c.bf16 %v2016_v6, %v2013_v5 }
 0x202   : > { %4190 = vmatprep.subr.bf16.mxu1 %v4189_v16  ;;  %4308 = vmatpush1.bf16.msra.mxu0 %v4307_v21  ;;  %v4199_v54 = vpack.c.bf16 %v776_v1, %v764_v43  ;;  %v2012_v16 = vld [vmem:[#allocation8 + $0x510] sm:$0xff]  ;;  %v4207_v21 = vpack.c.bf16 %v824_v11, %v812_v10  ;;  %v1903_v26 = vld [vmem:[#allocation8 + $0x1a8] sm:$0xff] }
 0x203   : > { %4310 = vmatprep.subr.bf16.mxu0 %v4309_v23  ;;  %v836_v23 = vld [vmem:[#allocation5 + $0x10d0] sm:$0xff]  ;;  %v4327_v28 = vpack.c.bf16 %v2015_v17, %v2012_v16  ;;  %v4601_v46 = vpack.c.bf16 %v1903_v26, %v1900_v39  ;;  %v1885_v26 = vld [vmem:[#allocation8 + $0x118] sm:$0xff] }
 0x204   : > { %v2027_v43 = vld [vmem:[#allocation8 + $0x588] sm:$0xff] }
 0x205   : > { %4192 = vmatpush1.bf16.msra.mxu1 %v4191_v30  ;;  %v4329_v30 = vpack.c.bf16 %v2022_v19, %v2019_v18  ;;  %v2031_v1 = vld [vmem:[#allocation8 + $0x5a8] sm:$0xff]  ;;  %v1918_v18 = vld [vmem:[#allocation8 + $0x220] sm:$0xff]  ;;  %v1921_v19 = vld [vmem:[#allocation8 + $0x238] sm:$0xff] }
 0x206   : > { %4194 = vmatprep.subr.bf16.mxu1 %v4193_v31  ;;  %4312 = vmatpush1.bf16.msra.mxu0 %v4311_v24  ;;  %v2018_v31 = vld [vmem:[#allocation8 + $0x540] sm:$0xff]  ;;  %v4211_v24 = vpack.c.bf16 %v848_v25, %v836_v23  ;;  %v1915_v6 = vld [vmem:[#allocation8 + $0x208] sm:$0xff]  ;;  %v1873_v25 = vld [vmem:[#allocation8 + $0xb8] sm:$0xff] }
 0x207   : > { %4314 = vmatprep.subr.bf16.mxu0 %v4313_v37  ;;  %v860_v37 = vld [vmem:[#allocation5 + $0x1190] sm:$0xff]  ;;  %v4331_v40 = vpack.c.bf16 %v2021_v32, %v2018_v31  ;;  %v4609_v14 = vpack.c.bf16 %v1915_v6, %v1912_v3  ;;  %v1876_v31 = vld [vmem:[#allocation8 + $0xd0] sm:$0xff] }
 0x208   : > { %v2039_v10 = vld [vmem:[#allocation8 + $0x5e8] sm:$0xff]  ;;  %v1870_v23 = vld [vmem:[#allocation8 + $0xa0] sm:$0xff] }
 0x209   : > { %4196 = vmatpush1.bf16.msra.mxu1 %v4195_v41  ;;  %v4333_v41 = vpack.c.bf16 %v2028_v34, %v2025_v33  ;;  %v2043_v11 = vld [vmem:[#allocation8 + $0x608] sm:$0xff]  ;;  %v4615_v29 = vpack.c.bf16 %v1873_v25, %v1870_v23  ;;  %v1930_v34 = vld [vmem:[#allocation8 + $0x280] sm:$0xff]  ;;  %v1960_v23 = vld [vmem:[#allocation8 + $0x370] sm:$0xff] }
 0x20a   : > { %4198 = vmatprep.subr.bf16.mxu1 %v4197_v42  ;;  %4316 = vmatpush1.bf16.msra.mxu0 %v4315_v45  ;;  %v2024_v42 = vld [vmem:[#allocation8 + $0x570] sm:$0xff]  ;;  %v4215_v45 = vpack.c.bf16 %v872_v38, %v860_v37  ;;  %v1867_v16 = vld [vmem:[#allocation8 + $0x88] sm:$0xff]  ;;  %v892_v38 = vsub.s32 3, %v5477_v49 }
 0x20b   : > { %4318 = vmatprep.subr.bf16.mxu0 %v4317_v47  ;;  %v1852_v47 = vld [vmem:[#allocation8 + $0x10] sm:$0xff]  ;;  %v4335_v20 = vpack.c.bf16 %v2027_v43, %v2024_v42  ;;  %v1879_v32 = vld [vmem:[#allocation8 + $0xe8] sm:$0xff] }
 0x20c   : > { %v4619_v37 = vpack.c.bf16 %v1879_v32, %v1876_v31  ;;  %v1936_v42 = vld [vmem:[#allocation8 + $0x2b0] sm:$0xff]  ;;  %v1939_v43 = vld [vmem:[#allocation8 + $0x2c8] sm:$0xff] }
 0x20d   : > { %4200 = vmatpush1.bf16.msra.mxu1 %v4199_v54  ;;  %v4337_v54 = vpack.c.bf16 %v2034_v44, %v2031_v1  ;;  %v893_v44 = vrot.slane %v5482_v59, %v892_v38  ;;  %v1999_v3 = vld [vmem:[#allocation8 + $0x4a8] sm:$0xff] }
 0x20e   : > { %4202 = vmatprep.subr.bf16.mxu1 %v4201_v56  ;;  %4320 = vmatpush1.bf16.msra.mxu0 %v4319_v62  ;;  %v2030_v56 = vld [vmem:[#allocation8 + $0x5a0] sm:$0xff]  ;;  %v4603_v62 = vpack.c.bf16 %v1855_v48, %v1852_v47  ;;  %v1888_v47 = vld [vmem:[#allocation8 + $0x130] sm:$0xff]  ;;  %v1891_v48 = vld [vmem:[#allocation8 + $0x148] sm:$0xff] }
 0x20f   : > { %4322 = vmatprep.subr.bf16.mxu0 %v4321_v0  ;;  %v1858_v0 = vld [vmem:[#allocation8 + $0x40] sm:$0xff]  ;;  %v4339_v5 = vpack.c.bf16 %v2033_v58, %v2030_v56  ;;  %v1963_v25 = vld [vmem:[#allocation8 + $0x388] sm:$0xff] }
 0x211   : > { %4204 = vmatpush1.bf16.msra.mxu1 %v4203_v7  ;;  %v4341_v7 = vpack.c.bf16 %v2040_v61, %v2037_v50  ;;  %v4627_v50 = vpack.c.bf16 %v1891_v48, %v1888_v47  ;;  %v2051_v47 = vld [vmem:[#allocation8 + $0x648] sm:$0xff] }
 0x212   : > { %4206 = vmatprep.subr.bf16.mxu1 %v4205_v9  ;;  %4324 = vmatpush1.bf16.msra.mxu0 %v4323_v13  ;;  %v2036_v9 = vld [vmem:[#allocation8 + $0x5d0] sm:$0xff]  ;;  %v4607_v13 = vpack.c.bf16 %v1861_v2, %v1858_v0  ;;  %v1897_v0 = vld [vmem:[#allocation8 + $0x178] sm:$0xff]  ;;  %v2023_v48 = vld [vmem:[#allocation8 + $0x568] sm:$0xff] }
 0x213   : > { %4326 = vmatprep.subr.bf16.mxu0 %v4325_v15  ;;  %v1864_v15 = vld [vmem:[#allocation8 + $0x70] sm:$0xff]  ;;  %v4343_v17 = vpack.c.bf16 %v2039_v10, %v2036_v9  ;;  %v1951_v9 = vld [vmem:[#allocation8 + $0x328] sm:$0xff]  ;;  %v2002_v10 = vld [vmem:[#allocation8 + $0x4c0] sm:$0xff] }
 0x214   : > { %v1996_v2 = vld [vmem:[#allocation8 + $0x490] sm:$0xff] }
 0x215   : > { %4208 = vmatpush1.bf16.msra.mxu1 %v4207_v21  ;;  %v4345_v21 = vpack.c.bf16 %v2046_v12, %v2043_v11  ;;  %v4633_v6 = vpack.c.bf16 %v1999_v3, %v1996_v2  ;;  %v2005_v11 = vld [vmem:[#allocation8 + $0x4d8] sm:$0xff]  ;;  %v2026_v2 = vld [vmem:[#allocation8 + $0x580] sm:$0xff] }
 0x216   : > { %4210 = vmatprep.subr.bf16.mxu1 %v4209_v22  ;;  %4328 = vmatpush1.bf16.msra.mxu0 %v4327_v28  ;;  %v4611_v22 = vpack.c.bf16 %v1867_v16, %v1864_v15  ;;  %v1927_v28 = vld [vmem:[#allocation8 + $0x268] sm:$0xff]  ;;  %v1957_v15 = vld [vmem:[#allocation8 + $0x358] sm:$0xff]  ;;  %v2008_v16 = vld [vmem:[#allocation8 + $0x4f0] sm:$0xff] }
 0x217   : > { %4330 = vmatprep.subr.bf16.mxu0 %v4329_v30  ;;  %v4617_v30 = vpack.c.bf16 %v1927_v28, %v1924_v27  ;;  %v2045_v28 = vld [vmem:[#allocation8 + $0x618] sm:$0xff] }
 0x218   : > { %v2029_v3 = vld [vmem:[#allocation8 + $0x598] sm:$0xff] }
 0x219   : > { %4212 = vmatpush1.bf16.msra.mxu1 %v4211_v24  ;;  %v1933_v24 = vld [vmem:[#allocation8 + $0x298] sm:$0xff] }
 0x21a   : > { %4214 = vmatprep.subr.bf16.mxu1 %v4213_v36  ;;  %4332 = vmatpush1.bf16.msra.mxu0 %v4331_v40  ;;  %v5508_v36 = vsub.s32 2, %v5477_v49  ;;  %v4621_v39 = vpack.c.bf16 %v1933_v24, %v1930_v34  ;;  %v1882_v40 = vld [vmem:[#allocation8 + $0x100] sm:$0xff] }
 0x21b   : > { %4334 = vmatprep.subr.bf16.mxu0 %v4333_v41  ;;  %v2014_v24 = vld [vmem:[#allocation8 + $0x520] sm:$0xff] }
 0x21c   : > { %v889_v1 = vrot.slane %v5482_v59, %v5508_v36 }
 0x21d   : > { %4216 = vmatpush1.bf16.msra.mxu1 %v4215_v45  ;;  %v4623_v45 = vpack.c.bf16 %v1885_v26, %v1882_v40 }
 0x21e   : > { %4602 = vmatprep.subr.bf16.mxu1 %v4601_v46  ;;  %4336 = vmatpush1.bf16.msra.mxu0 %v4335_v20  ;;  %v4625_v46 = vpack.c.bf16 %v1939_v43, %v1936_v42  ;;  %v2048_v42 = vld [vmem:[#allocation8 + $0x630] sm:$0xff]  ;;  %v1966_v43 = vld [vmem:[#allocation8 + $0x3a0] sm:$0xff] }
 0x21f   : > { %4338 = vmatprep.subr.bf16.mxu0 %v4337_v54  ;;  %v1945_v54 = vld [vmem:[#allocation8 + $0x2f8] sm:$0xff] }
 0x220   : > { %1784 = vmatmul.mubr.f32.vlgmr.msra.gmra.mrb[6].mxu1 %v5473_v35  ;;  %v4613_v35 = vpack.c.bf16 %v1921_v19, %v1918_v18 }
 0x221   : > { %4604 = vmatpush3.bf16.msra.mxu1 %v4603_v62  ;;  %2933 = vmatprep.mubr.f32.mxu1 %v5491_v55  ;;  %v900_v55 = vsub.s32 5, %v5477_v49  ;;  %v4629_v62 = vpack.c.bf16 %v1945_v54, %v1942_v53  ;;  %v2058_v53 = vld [vmem:[#allocation8 + $0x680] sm:$0xff] }
 0x222   : > { %4606 = vmatprep.subr.bf16.mxu1 %v4605_v63  ;;  %4340 = vmatpush1.bf16.msra.mxu0 %v4339_v5  ;;  %v1894_v63 = vld [vmem:[#allocation8 + $0x160] sm:$0xff] }
 0x223   : > { %4342 = vmatprep.subr.bf16.mxu0 %v4341_v7  ;;  %v901_v33 = vrot.slane %v5482_v59, %v900_v55  ;;  %v4631_v5 = vpack.c.bf16 %v1897_v0, %v1894_v63  ;;  %v1948_v7 = vld [vmem:[#allocation8 + $0x310] sm:$0xff]  ;;  %v1975_v63 = vld [vmem:[#allocation8 + $0x3e8] sm:$0xff] }
 0x224   : > { %v4635_v12 = vpack.c.bf16 %v1951_v9, %v1948_v7 }
 0x225   : > { %4608 = vmatpush3.bf16.msra.mxu1 %v4607_v13  ;;  %v4798_v41 = vadd.f32 %v5499_v8, %v901_v33  ;;  %v4637_v13 = vpack.c.bf16 %v2005_v11, %v2002_v10  ;;  %v4653_v10 = vpack.c.bf16 %v2029_v3, %v2026_v2  ;;  %v2060_v11 = vld [vmem:[#allocation8 + $0x690] sm:$0xff] }
 0x226   : > { %4610 = vmatprep.subr.bf16.mxu1 %v4609_v14  ;;  %4344 = vmatpush1.bf16.msra.mxu0 %v4343_v17  ;;  %v1954_v14 = vld [vmem:[#allocation8 + $0x340] sm:$0xff]  ;;  %v2011_v17 = vld [vmem:[#allocation8 + $0x508] sm:$0xff] }
 0x227   : > { %4346 = vmatprep.subr.bf16.mxu0 %v4345_v21  ;;  %v1807_v52 = vmul.f32 0.70710677, %v4798_v41  ;;  %v4639_v19 = vpack.c.bf16 %v1957_v15, %v1954_v14  ;;  %v1795_v31 = vmul.f32 0.5, %v4798_v41  ;;  %v2020_v41 = vld [vmem:[#allocation8 + $0x550] sm:$0xff]  ;;  %v2063_v15 = vld [vmem:[#allocation8 + $0x6a8] sm:$0xff] }
 0x229   : > { %4612 = vmatpush3.bf16.msra.mxu1 %v4611_v22  ;;  %4929 = verf.f32 %v1807_v52  ;;  %v4641_v22 = vpack.c.bf16 %v2011_v17, %v2008_v16  ;;  %v2032_v16 = vld [vmem:[#allocation8 + $0x5b0] sm:$0xff]  ;;  %v2035_v17 = vld [vmem:[#allocation8 + $0x5c8] sm:$0xff] }
 0x22a   : > { %4614 = vmatprep.subr.bf16.mxu1 %v4613_v35  ;;  %v2042_v35 = vld [vmem:[#allocation8 + $0x600] sm:$0xff] }
 0x22b   : > { %v4347_v26 = vpack.c.bf16 %v2045_v28, %v2042_v35  ;;  %v4657_v35 = vpack.c.bf16 %v2035_v17, %v2032_v16  ;;  %v2069_v28 = vld [vmem:[#allocation8 + $0x6d8] sm:$0xff] }
 0x22d   : > { %4616 = vmatpush3.bf16.msra.mxu1 %v4615_v29  ;;  %v2049_v29 = vld [vmem:[#allocation8 + $0x638] sm:$0xff] }
 0x22e   : > { %4618 = vmatprep.subr.bf16.mxu1 %v4617_v30  ;;  %v2052_v30 = vld [vmem:[#allocation8 + $0x650] sm:$0xff] }
 0x231   : > { %4620 = vmatpush3.bf16.msra.mxu1 %v4619_v37 }
 0x232   : > { %4622 = vmatprep.subr.bf16.mxu1 %v4621_v39  ;;  %v4643_v39 = vpack.c.bf16 %v1963_v25, %v1960_v23  ;;  %v2066_v23 = vld [vmem:[#allocation8 + $0x6c0] sm:$0xff]  ;;  %v1984_v25 = vld [vmem:[#allocation8 + $0x430] sm:$0xff] }
 0x233   : > { %v1217_v20 = vpop.f32.mrb[2].mxu1  ;;  %v4930_v18 = vpop.eup %4929 }
 0x234   : > { %v4795_v8 = vadd.f32 %v1217_v20, %v889_v1  ;;  %v1219_v56 = vpop.f32.mrb[3].mxu1  ;;  %v1831_v32 = vadd.f32 1.0, %v4930_v18  ;;  %v1969_v1 = vld [vmem:[#allocation8 + $0x3b8] sm:$0xff]  ;;  %v2055_v20 = vld [vmem:[#allocation8 + $0x668] sm:$0xff] }
 0x235   : > { %v4796_v58 = vadd.f32 %v1219_v56, %v893_v44  ;;  %4624 = vmatpush3.bf16.msra.mxu1 %v4623_v45  ;;  %v4349_v45 = vpack.c.bf16 %v2052_v30, %v2049_v29  ;;  %v4353_v0 = vpack.c.bf16 %v2058_v53, %v2055_v20  ;;  %v2067_v18 = vld [vmem:[#allocation8 + $0x6c8] sm:$0xff]  ;;  %v2038_v29 = vld [vmem:[#allocation8 + $0x5e0] sm:$0xff]  ;;  %v2041_v30 = vld [vmem:[#allocation8 + $0x5f8] sm:$0xff] }
 0x236   : > { %v1804_v61 = vmul.f32 0.70710677, %v4795_v8  ;;  %4626 = vmatprep.subr.bf16.mxu1 %v4625_v46  ;;  %v1792_v37 = vmul.f32 0.5, %v4795_v8  ;;  %v5520_v52 = vmul.f32 %v1831_v32, %v1795_v31  ;;  %v4647_v8 = vpack.c.bf16 %v1969_v1, %v1966_v43  ;;  %v2073_v31 = vld [vmem:[#allocation8 + $0x6f8] sm:$0xff]  ;;  %v2076_v32 = vld [vmem:[#allocation8 + $0x710] sm:$0xff]  ;;  %v2095_v43 = vld [vmem:[#allocation8 + $0x7a8] sm:$0xff] }
 0x237   : > { %v1805_v59 = vmul.f32 0.70710677, %v4796_v58  ;;  %v1793_v33 = vmul.f32 0.5, %v4796_v58  ;;  %v4351_v58 = vpack.c.bf16 %v2051_v47, %v2048_v42  ;;  %v2092_v42 = vld [vmem:[#allocation8 + $0x790] sm:$0xff]  ;;  %v2079_v1 = vld [vmem:[#allocation8 + $0x728] sm:$0xff] }
 0x238   : > { %4931 = verf.f32 %v1804_v61  ;;  %v2054_v61 = vld [vmem:[#allocation8 + $0x660] sm:$0xff]  ;;  %v2044_v20 = vld [vmem:[#allocation8 + $0x610] sm:$0xff]  ;;  %v2047_v53 = vld [vmem:[#allocation8 + $0x628] sm:$0xff] }
 0x239   : > { %4933 = verf.f32 %v1805_v59  ;;  %4628 = vmatpush3.bf16.msra.mxu1 %v4627_v50  ;;  %v4649_v50 = vpack.c.bf16 %v2023_v48, %v2020_v41  ;;  %v2057_v59 = vld [vmem:[#allocation8 + $0x678] sm:$0xff]  ;;  %v4665_v41 = vpack.c.bf16 %v2095_v43, %v2092_v42  ;;  %v2078_v48 = vld [vmem:[#allocation8 + $0x720] sm:$0xff] }
 0x23a   : > { %4630 = vmatprep.subr.bf16.mxu1 %v4629_v62  ;;  %v1972_v62 = vld [vmem:[#allocation8 + $0x3d0] sm:$0xff]  ;;  %v4355_v9 = vpack.c.bf16 %v2057_v59, %v2054_v61  ;;  %v2101_v61 = vld [vmem:[#allocation8 + $0x7d8] sm:$0xff]  ;;  %v4667_v59 = vpack.c.bf16 %v2047_v53, %v2044_v20  ;;  %v2122_v20 = vld [vmem:[#allocation8 + $0x880] sm:$0xff] }
 0x23b   : > { %v4651_v7 = vpack.c.bf16 %v1975_v63, %v1972_v62  ;;  %v2085_v62 = vld [vmem:[#allocation8 + $0x758] sm:$0xff]  ;;  %v2088_v63 = vld [vmem:[#allocation8 + $0x770] sm:$0xff] }
 0x23c   : > { %v2125_v53 = vld [vmem:[#allocation8 + $0x898] sm:$0xff] }
 0x23d   : > { %4632 = vmatpush3.bf16.msra.mxu1 %v4631_v5  ;;  %v2061_v5 = vld [vmem:[#allocation8 + $0x698] sm:$0xff] }
 0x23e   : > { %4634 = vmatprep.subr.bf16.mxu1 %v4633_v6  ;;  %v2064_v6 = vld [vmem:[#allocation8 + $0x6b0] sm:$0xff] }
 0x23f   : > { %v4357_v14 = vpack.c.bf16 %v2064_v6, %v2061_v5  ;;  %v2084_v5 = vld [vmem:[#allocation8 + $0x750] sm:$0xff]  ;;  %v2050_v6 = vld [vmem:[#allocation8 + $0x640] sm:$0xff] }
 0x240   : > { %2934 = vmatmul.mubr.f32.vlgmr.msra.gmra.mrb[8].mxu1 %v5493_v51  ;;  %v2017_v51 = vld [vmem:[#allocation8 + $0x538] sm:$0xff] }
 0x241   : > { %4636 = vmatpush3.bf16.msra.mxu1 %v4635_v12  ;;  %v4645_v46 = vpack.c.bf16 %v2017_v51, %v2014_v24  ;;  %v5522_v54 = vpop.f32.mrb[2].mxu0  ;;  %v1978_v12 = vld [vmem:[#allocation8 + $0x400] sm:$0xff]  ;;  %v4661_v24 = vpack.c.bf16 %v2041_v30, %v2038_v29  ;;  %v2072_v51 = vld [vmem:[#allocation8 + $0x6f0] sm:$0xff] }
 0x242   : > { %v4932_v21 = vpop.eup %4931  ;;  %4638 = vmatprep.subr.bf16.mxu1 %v4637_v13  ;;  %v5525_v56 = vpop.f32.mrb[3].mxu0  ;;  %v1981_v13 = vld [vmem:[#allocation8 + $0x418] sm:$0xff] }
 0x243   : > { %v4934_v55 = vpop.eup %4933  ;;  %v1828_v27 = vadd.f32 1.0, %v4932_v21  ;;  %v4655_v21 = vpack.c.bf16 %v1981_v13, %v1978_v12  ;;  %v2107_v12 = vld [vmem:[#allocation8 + $0x808] sm:$0xff] }
 0x244   : > { %v1829_v34 = vadd.f32 1.0, %v4934_v55  ;;  %v1987_v55 = vld [vmem:[#allocation8 + $0x448] sm:$0xff] }
 0x245   : > { %4640 = vmatpush3.bf16.msra.mxu1 %v4639_v19  ;;  %v5518_v44 = vmul.f32 %v1828_v27, %v1792_v37  ;;  %v2070_v19 = vld [vmem:[#allocation8 + $0x6e0] sm:$0xff]  ;;  %v2091_v13 = vld [vmem:[#allocation8 + $0x788] sm:$0xff] }
 0x246   : > { %v1841_v40 = vmul.f32 %v1829_v34, %v1793_v33  ;;  %4642 = vmatprep.subr.bf16.mxu1 %v4641_v22  ;;  %v4359_v22 = vpack.c.bf16 %v2063_v15, %v2060_v11  ;;  %v4361_v27 = vpack.c.bf16 %v2070_v19, %v2067_v18  ;;  %v4659_v33 = vpack.c.bf16 %v1987_v55, %v1984_v25  ;;  %v1990_v37 = vld [vmem:[#allocation8 + $0x460] sm:$0xff]  ;;  %v2104_v11 = vld [vmem:[#allocation8 + $0x7f0] sm:$0xff]  ;;  %v2113_v55 = vld [vmem:[#allocation8 + $0x838] sm:$0xff] }
 0x247   : > { %v4363_v34 = vpack.c.bf16 %v2069_v28, %v2066_v23  ;;  %v5530_v15 = vld [vmem:[#allocation7] sm:$0xff]  ;;  %v4673_v19 = vpack.c.bf16 %v2107_v12, %v2104_v11  ;;  %v2110_v25 = vld [vmem:[#allocation8 + $0x820] sm:$0xff] }
 0x248   : > { %2578 = vmatprep.mubr.f32.mxu0 %v1841_v40  ;;  %3003 = vmatprep.mubr.f32.mxu1 %v1841_v40  ;;  %v4365_v40 = vpack.c.bf16 %v2076_v32, %v2073_v31  ;;  %v2100_v28 = vld [vmem:[#allocation8 + $0x7d0] sm:$0xff]  ;;  %v4677_v31 = vpack.c.bf16 %v2113_v55, %v2110_v25 }
 0x249   : > { %2579 = vmatmul.mubr.f32.vlgmr.msra.gmra.mrb[4].mxu0 %v5518_v44  ;;  %4644 = vmatpush3.bf16.msra.mxu1 %v4643_v39  ;;  %v1993_v39 = vld [vmem:[#allocation8 + $0x478] sm:$0xff]  ;;  %v2096_v32 = vld [vmem:[#allocation8 + $0x7b0] sm:$0xff] }
 0x24a   : > { %4348 = vmatpush1.bf16.msra.mxu0 %v4347_v26  ;;  %2649 = vmatprep.mubr.f32.mxu0 %v5520_v52  ;;  %v2075_v26 = vld [vmem:[#allocation8 + $0x708] sm:$0xff]  ;;  %v2120_v55 = vld [vmem:[#allocation8 + $0x870] sm:$0xff] }
 0x24b   : > { %4350 = vmatprep.subr.bf16.mxu0 %v4349_v45  ;;  %4646 = vmatprep.subr.bf16.mxu1 %v4645_v46  ;;  %v2082_v45 = vld [vmem:[#allocation8 + $0x740] sm:$0xff]  ;;  %v4663_v46 = vpack.c.bf16 %v1993_v39, %v1990_v37  ;;  %v4367_v47 = vpack.c.bf16 %v2075_v26, %v2072_v51  ;;  %v2099_v51 = vld [vmem:[#allocation8 + $0x7c8] sm:$0xff]  ;;  %v2116_v37 = vld [vmem:[#allocation8 + $0x850] sm:$0xff] }
 0x24c   : > { %v2119_v39 = vld [vmem:[#allocation8 + $0x868] sm:$0xff]  ;;  %v2106_v26 = vld [vmem:[#allocation8 + $0x800] sm:$0xff]  ;;  %v4383_v43 = vpack.c.bf16 %v2099_v51, %v2096_v32  ;;  %v2188_v32 = vld [vmem:[#allocation8 + $0xa90] sm:$0xff] }
 0x24d   : > { %4648 = vmatpush3.bf16.msra.mxu1 %v4647_v8  ;;  %v4369_v8 = vpack.c.bf16 %v2082_v45, %v2079_v1  ;;  %v4681_v1 = vpack.c.bf16 %v2119_v39, %v2116_v37  ;;  %v2102_v45 = vld [vmem:[#allocation8 + $0x7e0] sm:$0xff] }
 0x24e   : > { %4352 = vmatpush1.bf16.msra.mxu0 %v4351_v58  ;;  %4650 = vmatprep.subr.bf16.mxu1 %v4649_v50  ;;  %v2081_v58 = vld [vmem:[#allocation8 + $0x738] sm:$0xff]  ;;  %v2098_v50 = vld [vmem:[#allocation8 + $0x7c0] sm:$0xff] }
 0x24f   : > { %4354 = vmatprep.subr.bf16.mxu0 %v4353_v0  ;;  %v896_v0 = vsub.s32 4, %v5477_v49  ;;  %v4371_v2 = vpack.c.bf16 %v2081_v58, %v2078_v48  ;;  %v4669_v3 = vpack.c.bf16 %v2101_v61, %v2098_v50  ;;  %v2105_v48 = vld [vmem:[#allocation8 + $0x7f8] sm:$0xff]  ;;  %v2112_v58 = vld [vmem:[#allocation8 + $0x830] sm:$0xff] }
 0x250   : > { %v4387_v61 = vpack.c.bf16 %v2105_v48, %v2102_v45  ;;  %v2129_v45 = vld [vmem:[#allocation8 + $0x8b8] sm:$0xff]  ;;  %v2136_v48 = vld [vmem:[#allocation8 + $0x8f0] sm:$0xff] }
 0x251   : > { %4652 = vmatpush3.bf16.msra.mxu1 %v4651_v7  ;;  %v2053_v7 = vld [vmem:[#allocation8 + $0x658] sm:$0xff]  ;;  %v897_v16 = vrot.slane %v5530_v15, %v896_v0  ;;  %v2074_v0 = vld [vmem:[#allocation8 + $0x700] sm:$0xff] }
 0x252   : > { %4356 = vmatpush1.bf16.msra.mxu0 %v4355_v9  ;;  %4654 = vmatprep.subr.bf16.mxu1 %v4653_v10  ;;  %v4373_v9 = vpack.c.bf16 %v2088_v63, %v2085_v62  ;;  %v2087_v10 = vld [vmem:[#allocation8 + $0x768] sm:$0xff]  ;;  %v4671_v17 = vpack.c.bf16 %v2053_v7, %v2050_v6  ;;  %v4685_v62 = vpack.c.bf16 %v2125_v53, %v2122_v20  ;;  %v2108_v63 = vld [vmem:[#allocation8 + $0x810] sm:$0xff] }
 0x253   : > { %4358 = vmatprep.subr.bf16.mxu0 %v4357_v14  ;;  %v2094_v14 = vld [vmem:[#allocation8 + $0x7a0] sm:$0xff]  ;;  %v4375_v18 = vpack.c.bf16 %v2087_v10, %v2084_v5  ;;  %v5535_v29 = vadd.f32 %v5496_v4, %v897_v16  ;;  %v2128_v5 = vld [vmem:[#allocation8 + $0x8b0] sm:$0xff]  ;;  %v2131_v6 = vld [vmem:[#allocation8 + $0x8c8] sm:$0xff] }
 0x254   : > { %v4377_v23 = vpack.c.bf16 %v2094_v14, %v2091_v13  ;;  %v2115_v7 = vld [vmem:[#allocation8 + $0x848] sm:$0xff]  ;;  %v4689_v12 = vpack.c.bf16 %v2131_v6, %v2128_v5  ;;  %v2114_v13 = vld [vmem:[#allocation8 + $0x840] sm:$0xff]  ;;  %v2080_v14 = vld [vmem:[#allocation8 + $0x730] sm:$0xff] }
 0x255   : > { %4656 = vmatpush3.bf16.msra.mxu1 %v4655_v21  ;;  %v2090_v21 = vld [vmem:[#allocation8 + $0x780] sm:$0xff]  ;;  %v1806_v42 = vmul.f32 0.70710677, %v5535_v29  ;;  %v2083_v16 = vld [vmem:[#allocation8 + $0x748] sm:$0xff]  ;;  %v1794_v37 = vmul.f32 0.5, %v5535_v29 }
 0x256   : > { %4360 = vmatpush1.bf16.msra.mxu0 %v4359_v22  ;;  %4658 = vmatprep.subr.bf16.mxu1 %v4657_v35  ;;  %v2056_v22 = vld [vmem:[#allocation8 + $0x670] sm:$0xff]  ;;  %v2059_v35 = vld [vmem:[#allocation8 + $0x688] sm:$0xff] }
 0x257   : > { %4362 = vmatprep.subr.bf16.mxu0 %v4361_v27  ;;  %v2097_v27 = vld [vmem:[#allocation8 + $0x7b8] sm:$0xff]  ;;  %4935 = verf.f32 %v1806_v42 }
 0x259   : > { %4660 = vmatpush3.bf16.msra.mxu1 %v4659_v33  ;;  %v2062_v33 = vld [vmem:[#allocation8 + $0x6a0] sm:$0xff] }
 0x25a   : > { %4364 = vmatpush1.bf16.msra.mxu0 %v4363_v34  ;;  %4662 = vmatprep.subr.bf16.mxu1 %v4661_v24  ;;  %v2065_v34 = vld [vmem:[#allocation8 + $0x6b8] sm:$0xff]  ;;  %v4381_v24 = vpack.c.bf16 %v2100_v28, %v2097_v27  ;;  %v2086_v27 = vld [vmem:[#allocation8 + $0x760] sm:$0xff] }
 0x25b   : > { %4366 = vmatprep.subr.bf16.mxu0 %v4365_v40  ;;  %v2103_v40 = vld [vmem:[#allocation8 + $0x7e8] sm:$0xff]  ;;  %v4679_v4 = vpack.c.bf16 %v2065_v34, %v2062_v33  ;;  %v2089_v28 = vld [vmem:[#allocation8 + $0x778] sm:$0xff] }
 0x25c   : > { %v2191_v33 = vld [vmem:[#allocation8 + $0xaa8] sm:$0xff]  ;;  %v4695_v51 = vpack.c.bf16 %v2089_v28, %v2086_v27  ;;  %v2212_v27 = vld [vmem:[#allocation8 + $0xb50] sm:$0xff] }
 0x25d   : > { %4664 = vmatpush3.bf16.msra.mxu1 %v4663_v46  ;;  %v2068_v46 = vld [vmem:[#allocation8 + $0x6d0] sm:$0xff]  ;;  %v2127_v34 = vld [vmem:[#allocation8 + $0x8a8] sm:$0xff]  ;;  %v4697_v42 = vpack.c.bf16 %v2191_v33, %v2188_v32 }
 0x25e   : > { %4368 = vmatpush1.bf16.msra.mxu0 %v4367_v47  ;;  %4666 = vmatprep.subr.bf16.mxu1 %v4665_v41  ;;  %v2071_v47 = vld [vmem:[#allocation8 + $0x6e8] sm:$0xff]  ;;  %v4385_v41 = vpack.c.bf16 %v2106_v26, %v2103_v40  ;;  %v2126_v26 = vld [vmem:[#allocation8 + $0x8a0] sm:$0xff] }
 0x25f   : > { %4370 = vmatprep.subr.bf16.mxu0 %v4369_v8  ;;  %v2109_v8 = vld [vmem:[#allocation8 + $0x818] sm:$0xff]  ;;  %v4683_v50 = vpack.c.bf16 %v2071_v47, %v2068_v46  ;;  %v2194_v46 = vld [vmem:[#allocation8 + $0xac0] sm:$0xff]  ;;  %v4403_v29 = vpack.c.bf16 %v2129_v45, %v2126_v26  ;;  %v2215_v28 = vld [vmem:[#allocation8 + $0xb68] sm:$0xff] }
 0x260   : > { %3004 = vmatmul.mubr.f32.vlgmr.msra.gmra.mrb[10].mxu1 %v5518_v44  ;;  %v2093_v44 = vld [vmem:[#allocation8 + $0x798] sm:$0xff]  ;;  %v2160_v45 = vld [vmem:[#allocation8 + $0x9b0] sm:$0xff] }
 0x261   : > { %4668 = vmatpush3.bf16.msra.mxu1 %v4667_v59  ;;  %3073 = vmatprep.mubr.f32.mxu1 %v5520_v52  ;;  %v4675_v52 = vpack.c.bf16 %v2059_v35, %v2056_v22  ;;  %v4379_v30 = vpack.c.bf16 %v2093_v44, %v2090_v21  ;;  %v2077_v59 = vld [vmem:[#allocation8 + $0x718] sm:$0xff]  ;;  %v2124_v35 = vld [vmem:[#allocation8 + $0x890] sm:$0xff] }
 0x262   : > { %4372 = vmatpush1.bf16.msra.mxu0 %v4371_v2  ;;  %4670 = vmatprep.subr.bf16.mxu1 %v4669_v3  ;;  %v4389_v2 = vpack.c.bf16 %v2112_v58, %v2109_v8  ;;  %v2111_v3 = vld [vmem:[#allocation8 + $0x828] sm:$0xff]  ;;  %v4687_v10 = vpack.c.bf16 %v2077_v59, %v2074_v0  ;;  %v2137_v21 = vld [vmem:[#allocation8 + $0x8f8] sm:$0xff]  ;;  %v2132_v8 = vld [vmem:[#allocation8 + $0x8d0] sm:$0xff] }
 0x263   : > { %4374 = vmatprep.subr.bf16.mxu0 %v4373_v9  ;;  %v2118_v9 = vld [vmem:[#allocation8 + $0x860] sm:$0xff]  ;;  %v4391_v11 = vpack.c.bf16 %v2111_v3, %v2108_v63  ;;  %v2121_v22 = vld [vmem:[#allocation8 + $0x878] sm:$0xff]  ;;  %v2135_v63 = vld [vmem:[#allocation8 + $0x8e8] sm:$0xff] }
 0x264   : > { %v2197_v47 = vld [vmem:[#allocation8 + $0xad8] sm:$0xff]  ;;  %v2200_v0 = vld [vmem:[#allocation8 + $0xaf0] sm:$0xff]  ;;  %v2203_v59 = vld [vmem:[#allocation8 + $0xb08] sm:$0xff]  ;;  %v4407_v6 = vpack.c.bf16 %v2135_v63, %v2132_v8 }
 0x265   : > { %4672 = vmatpush3.bf16.msra.mxu1 %v4671_v17  ;;  %v4393_v17 = vpack.c.bf16 %v2118_v9, %v2115_v7  ;;  %v4701_v58 = vpack.c.bf16 %v2197_v47, %v2194_v46  ;;  %v2142_v3 = vld [vmem:[#allocation8 + $0x920] sm:$0xff]  ;;  %v4705_v9 = vpack.c.bf16 %v2203_v59, %v2200_v0  ;;  %v2153_v26 = vld [vmem:[#allocation8 + $0x978] sm:$0xff]  ;;  %v908_v46 = vsub.s32 7, %v5477_v49  ;;  %v2163_v0 = vld [vmem:[#allocation8 + $0x9c8] sm:$0xff] }
 0x266   : > { %4376 = vmatpush1.bf16.msra.mxu0 %v4375_v18  ;;  %4674 = vmatprep.subr.bf16.mxu1 %v4673_v19  ;;  %v2117_v18 = vld [vmem:[#allocation8 + $0x858] sm:$0xff]  ;;  %v2134_v19 = vld [vmem:[#allocation8 + $0x8e0] sm:$0xff] }
 0x267   : > { %4378 = vmatprep.subr.bf16.mxu0 %v4377_v23  ;;  %v4691_v23 = vpack.c.bf16 %v2083_v16, %v2080_v14  ;;  %v4395_v44 = vpack.c.bf16 %v2117_v18, %v2114_v13  ;;  %v4693_v25 = vpack.c.bf16 %v2137_v21, %v2134_v19  ;;  %v2138_v7 = vld [vmem:[#allocation8 + $0x900] sm:$0xff]  ;;  %v2141_v13 = vld [vmem:[#allocation8 + $0x918] sm:$0xff]  ;;  %v2148_v18 = vld [vmem:[#allocation8 + $0x950] sm:$0xff] }
 0x268   : > { %v2206_v14 = vld [vmem:[#allocation8 + $0xb20] sm:$0xff]  ;;  %v2209_v16 = vld [vmem:[#allocation8 + $0xb38] sm:$0xff]  ;;  %v4411_v21 = vpack.c.bf16 %v2141_v13, %v2138_v7 }
 0x269   : > { %4676 = vmatpush3.bf16.msra.mxu1 %v4675_v52  ;;  %v4936_v52 = vpop.eup %4935  ;;  %v2166_v59 = vld [vmem:[#allocation8 + $0x9e0] sm:$0xff]  ;;  %v2165_v13 = vld [vmem:[#allocation8 + $0x9d8] sm:$0xff] }
 0x26a   : > { %4380 = vmatpush1.bf16.msra.mxu0 %v4379_v30  ;;  %4678 = vmatprep.subr.bf16.mxu1 %v4677_v31  ;;  %v4397_v30 = vpack.c.bf16 %v2124_v35, %v2121_v22  ;;  %v2123_v31 = vld [vmem:[#allocation8 + $0x888] sm:$0xff]  ;;  %v1830_v39 = vadd.f32 1.0, %v4936_v52  ;;  %v2144_v22 = vld [vmem:[#allocation8 + $0x930] sm:$0xff]  ;;  %v4709_v35 = vpack.c.bf16 %v2209_v16, %v2206_v14  ;;  %v5539_v52 = vld [vmem:[#allocation7 + $0x8] sm:$0xf] }
 0x26b   : > { %4382 = vmatprep.subr.bf16.mxu0 %v4381_v24  ;;  %v2130_v24 = vld [vmem:[#allocation8 + $0x8c0] sm:$0xff]  ;;  %v4399_v40 = vpack.c.bf16 %v2123_v31, %v2120_v55  ;;  %v2147_v55 = vld [vmem:[#allocation8 + $0x948] sm:$0xff]  ;;  %v2233_v16 = vld [vmem:[#allocation8 + $0xbf8] sm:$0xff] }
 0x26c   : > { %v1842_v53 = vmul.f32 %v1830_v39, %v1794_v37  ;;  %v2154_v31 = vld [vmem:[#allocation8 + $0x980] sm:$0xff]  ;;  %v4415_v33 = vpack.c.bf16 %v2147_v55, %v2144_v22  ;;  %v2167_v37 = vld [vmem:[#allocation8 + $0x9e8] sm:$0xff]  ;;  %v917_v39 = vrot.slane %v5539_v52, %v5485_v60 }
 0x26d   : > { %4680 = vmatpush3.bf16.msra.mxu1 %v4679_v4  ;;  %v2140_v4 = vld [vmem:[#allocation8 + $0x910] sm:$0xff]  ;;  %v2230_v14 = vld [vmem:[#allocation8 + $0xbe0] sm:$0xff] }
 0x26e   : > { %4384 = vmatpush1.bf16.msra.mxu0 %v4383_v43  ;;  %4682 = vmatprep.subr.bf16.mxu1 %v4681_v1  ;;  %v2143_v43 = vld [vmem:[#allocation8 + $0x928] sm:$0xff]  ;;  %v4401_v1 = vpack.c.bf16 %v2130_v24, %v2127_v34  ;;  %v2150_v34 = vld [vmem:[#allocation8 + $0x960] sm:$0xff]  ;;  %v4713_v24 = vpack.c.bf16 %v2215_v28, %v2212_v27  ;;  %v5546_v8 = vadd.f32 %v5525_v56, %v917_v39  ;;  %v2176_v56 = vld [vmem:[#allocation8 + $0xa30] sm:$0xff] }
 0x26f   : > { %4386 = vmatprep.subr.bf16.mxu0 %v4385_v41  ;;  %v2133_v41 = vld [vmem:[#allocation8 + $0x8d8] sm:$0xff]  ;;  %v4699_v20 = vpack.c.bf16 %v2143_v43, %v2140_v4  ;;  %v904_v43 = vsub.s32 6, %v5477_v49  ;;  %v2182_v55 = vld [vmem:[#allocation8 + $0xa60] sm:$0xff] }
 0x270   : > { %v2221_v4 = vld [vmem:[#allocation8 + $0xb98] sm:$0xff] }
 0x271   : > { %4684 = vmatpush3.bf16.msra.mxu1 %v4683_v50  ;;  %v2146_v50 = vld [vmem:[#allocation8 + $0x940] sm:$0xff]  ;;  %v905_v63 = vrot.slane %v5530_v15, %v904_v43  ;;  %v2185_v27 = vld [vmem:[#allocation8 + $0xa78] sm:$0xff]  ;;  %v2184_v43 = vld [vmem:[#allocation8 + $0xa70] sm:$0xff] }
 0x272   : > { %4388 = vmatpush1.bf16.msra.mxu0 %v4387_v61  ;;  %4686 = vmatprep.subr.bf16.mxu1 %v4685_v62  ;;  %v2149_v61 = vld [vmem:[#allocation8 + $0x958] sm:$0xff]  ;;  %v4405_v62 = vpack.c.bf16 %v2136_v48, %v2133_v41  ;;  %v4419_v41 = vpack.c.bf16 %v2153_v26, %v2150_v34  ;;  %v2156_v48 = vld [vmem:[#allocation8 + $0x990] sm:$0xff]  ;;  %v2175_v34 = vld [vmem:[#allocation8 + $0xa28] sm:$0xff] }
 0x273   : > { %4390 = vmatprep.subr.bf16.mxu0 %v4389_v2  ;;  %v2139_v2 = vld [vmem:[#allocation8 + $0x908] sm:$0xff]  ;;  %v4703_v5 = vpack.c.bf16 %v2149_v61, %v2146_v50  ;;  %v2224_v61 = vld [vmem:[#allocation8 + $0xbb0] sm:$0xff]  ;;  %v2174_v26 = vld [vmem:[#allocation8 + $0xa20] sm:$0xff] }
 0x274   : > { %v2159_v50 = vld [vmem:[#allocation8 + $0x9a8] sm:$0xff] }
 0x275   : > { %4688 = vmatpush3.bf16.msra.mxu1 %v4687_v10  ;;  %v2152_v10 = vld [vmem:[#allocation8 + $0x970] sm:$0xff] }
 0x276   : > { %4392 = vmatpush1.bf16.msra.mxu0 %v4391_v11  ;;  %4690 = vmatprep.subr.bf16.mxu1 %v4689_v12  ;;  %v2155_v11 = vld [vmem:[#allocation8 + $0x988] sm:$0xff]  ;;  %v4409_v12 = vpack.c.bf16 %v2142_v3, %v2139_v2  ;;  %v909_v2 = vrot.slane %v5530_v15, %v908_v46  ;;  %v2180_v46 = vld [vmem:[#allocation8 + $0xa50] sm:$0xff] }
 0x277   : > { %4394 = vmatprep.subr.bf16.mxu0 %v4393_v17  ;;  %v2145_v17 = vld [vmem:[#allocation8 + $0x938] sm:$0xff]  ;;  %v4707_v19 = vpack.c.bf16 %v2155_v11, %v2152_v10  ;;  %v1811_v10 = vmul.f32 0.70710677, %v5546_v8 }
 0x279   : > { %4692 = vmatpush3.bf16.msra.mxu1 %v4691_v23  ;;  %v2158_v23 = vld [vmem:[#allocation8 + $0x9a0] sm:$0xff]  ;;  %4937 = verf.f32 %v1811_v10 }
 0x27a   : > { %4396 = vmatpush1.bf16.msra.mxu0 %v4395_v44  ;;  %4694 = vmatprep.subr.bf16.mxu1 %v4693_v25  ;;  %v2161_v44 = vld [vmem:[#allocation8 + $0x9b8] sm:$0xff]  ;;  %v4413_v25 = vpack.c.bf16 %v2148_v18, %v2145_v17  ;;  %v2290_v10 = vld [vmem:[#allocation8 + $0xdc0] sm:$0xff] }
 0x27b   : > { %4398 = vmatprep.subr.bf16.mxu0 %v4397_v30  ;;  %v2151_v30 = vld [vmem:[#allocation8 + $0x968] sm:$0xff]  ;;  %v4711_v32 = vpack.c.bf16 %v2161_v44, %v2158_v23  ;;  %v2169_v18 = vld [vmem:[#allocation8 + $0x9f8] sm:$0xff]  ;;  %v2168_v44 = vld [vmem:[#allocation8 + $0x9f0] sm:$0xff] }
 0x27d   : > { %4696 = vmatpush3.bf16.msra.mxu1 %v4695_v51  ;;  %v2164_v51 = vld [vmem:[#allocation8 + $0x9d0] sm:$0xff] }
 0x27e   : > { %4400 = vmatpush1.bf16.msra.mxu0 %v4399_v40  ;;  %4698 = vmatprep.subr.bf16.mxu1 %v4697_v42  ;;  %v4417_v40 = vpack.c.bf16 %v2154_v31, %v2151_v30  ;;  %v2218_v42 = vld [vmem:[#allocation8 + $0xb80] sm:$0xff]  ;;  %v4715_v47 = vpack.c.bf16 %v2167_v37, %v2164_v51  ;;  %v2171_v31 = vld [vmem:[#allocation8 + $0xa08] sm:$0xff]  ;;  %v4727_v51 = vpack.c.bf16 %v2185_v27, %v2182_v55 }
 0x27f   : > { %4402 = vmatprep.subr.bf16.mxu0 %v4401_v1  ;;  %v2157_v1 = vld [vmem:[#allocation8 + $0x998] sm:$0xff]  ;;  %v4431_v37 = vpack.c.bf16 %v2171_v31, %v2168_v44  ;;  %v2299_v44 = vld [vmem:[#allocation8 + $0xe08] sm:$0xff]  ;;  %v913_v55 = vrot.slane %v5539_v52, %v5480_v57 }
 0x280   : > { %3074 = vmatmul.mubr.f32.vlgmr.msra.gmra.mrb[12].mxu1 %v1842_v53  ;;  %v2201_v31 = vld [vmem:[#allocation8 + $0xaf8] sm:$0xff] }
 0x281   : > { %4700 = vmatpush3.bf16.msra.mxu1 %v4699_v20  ;;  %v4717_v20 = vpack.c.bf16 %v2221_v4, %v2218_v42  ;;  %v2177_v42 = vld [vmem:[#allocation8 + $0xa38] sm:$0xff] }
 0x282   : > { %4404 = vmatpush1.bf16.msra.mxu0 %v4403_v29  ;;  %4702 = vmatprep.subr.bf16.mxu1 %v4701_v58  ;;  %v2173_v29 = vld [vmem:[#allocation8 + $0xa18] sm:$0xff]  ;;  %v4421_v58 = vpack.c.bf16 %v2160_v45, %v2157_v1  ;;  %v4435_v1 = vpack.c.bf16 %v2177_v42, %v2174_v26  ;;  %v5565_v26 = vadd.f32 %v5522_v54, %v913_v55 }
 0x283   : > { %4406 = vmatprep.subr.bf16.mxu0 %v4405_v62  ;;  %v2227_v62 = vld [vmem:[#allocation8 + $0xbc8] sm:$0xff]  ;;  %v2181_v4 = vld [vmem:[#allocation8 + $0xa58] sm:$0xff] }
 0x284   : > { %v4721_v7 = vpack.c.bf16 %v2227_v62, %v2224_v61  ;;  %v4437_v45 = vpack.c.bf16 %v2184_v43, %v2181_v4  ;;  %v2204_v43 = vld [vmem:[#allocation8 + $0xb10] sm:$0xff] }
 0x285   : > { %4704 = vmatpush3.bf16.msra.mxu1 %v4703_v5  ;;  %v4423_v5 = vpack.c.bf16 %v2159_v50, %v2156_v48  ;;  %v2190_v48 = vld [vmem:[#allocation8 + $0xaa0] sm:$0xff] }
 0x286   : > { %4408 = vmatpush1.bf16.msra.mxu0 %v4407_v6  ;;  %4706 = vmatprep.subr.bf16.mxu1 %v4705_v9  ;;  %v2162_v6 = vld [vmem:[#allocation8 + $0x9c0] sm:$0xff]  ;;  %v2179_v9 = vld [vmem:[#allocation8 + $0xa48] sm:$0xff] }
 0x287   : > { %4410 = vmatprep.subr.bf16.mxu0 %v4409_v12  ;;  %v4425_v12 = vpack.c.bf16 %v2166_v59, %v2163_v0  ;;  %v4723_v22 = vpack.c.bf16 %v2179_v9, %v2176_v56  ;;  %v4427_v23 = vpack.c.bf16 %v2165_v13, %v2162_v6  ;;  %v2236_v0 = vld [vmem:[#allocation8 + $0xc10] sm:$0xff]  ;;  %v2239_v59 = vld [vmem:[#allocation8 + $0xc28] sm:$0xff] }
 0x288   : > { %v2196_v6 = vld [vmem:[#allocation8 + $0xad0] sm:$0xff] }
 0x289   : > { %2650 = vmatmul.mubr.f32.vlgmr.msra.gmra.mrb[4].mxu0 %v1842_v53  ;;  %4708 = vmatpush3.bf16.msra.mxu1 %v4707_v19  ;;  %v2170_v53 = vld [vmem:[#allocation8 + $0xa00] sm:$0xff]  ;;  %v2172_v19 = vld [vmem:[#allocation8 + $0xa10] sm:$0xff] }
 0x28a   : > { %4412 = vmatpush1.bf16.msra.mxu0 %v4411_v21  ;;  %4710 = vmatprep.subr.bf16.mxu1 %v4709_v35  ;;  %v4719_v3 = vpack.c.bf16 %v2173_v29, %v2170_v53  ;;  %v4429_v30 = vpack.c.bf16 %v2172_v19, %v2169_v18 }
 0x28b   : > { %4414 = vmatprep.subr.bf16.mxu0 %v4413_v25  ;;  %v4725_v25 = vpack.c.bf16 %v2233_v16, %v2230_v14  ;;  %v4731_v14 = vpack.c.bf16 %v2239_v59, %v2236_v0  ;;  %v2192_v16 = vld [vmem:[#allocation8 + $0xab0] sm:$0xff] }
 0x28c   : > { %v2260_v59 = vld [vmem:[#allocation8 + $0xcd0] sm:$0xff] }
 0x28d   : > { %4712 = vmatpush3.bf16.msra.mxu1 %v4711_v32  ;;  %v2284_v32 = vld [vmem:[#allocation8 + $0xd90] sm:$0xff] }
 0x28e   : > { %4416 = vmatpush1.bf16.msra.mxu0 %v4415_v33  ;;  %4714 = vmatprep.subr.bf16.mxu1 %v4713_v24  ;;  %v2287_v33 = vld [vmem:[#allocation8 + $0xda8] sm:$0xff]  ;;  %v2178_v24 = vld [vmem:[#allocation8 + $0xa40] sm:$0xff] }
 0x28f   : > { %4418 = vmatprep.subr.bf16.mxu0 %v4417_v40  ;;  %v4729_v39 = vpack.c.bf16 %v2287_v33, %v2284_v32  ;;  %v4433_v40 = vpack.c.bf16 %v2178_v24, %v2175_v34  ;;  %v2248_v34 = vld [vmem:[#allocation8 + $0xc70] sm:$0xff]  ;;  %v2251_v24 = vld [vmem:[#allocation8 + $0xc88] sm:$0xff] }
 0x290   : > { %v4739_v4 = vpack.c.bf16 %v2251_v24, %v2248_v34 }
 0x291   : > { %4716 = vmatpush3.bf16.msra.mxu1 %v4715_v47  ;;  %v2183_v47 = vld [vmem:[#allocation8 + $0xa68] sm:$0xff] }
 0x292   : > { %4420 = vmatpush1.bf16.msra.mxu0 %v4419_v41  ;;  %4718 = vmatprep.subr.bf16.mxu1 %v4717_v20  ;;  %v2187_v41 = vld [vmem:[#allocation8 + $0xa88] sm:$0xff]  ;;  %v4938_v20 = vpop.eup %4937  ;;  %v4439_v29 = vpack.c.bf16 %v2183_v47, %v2180_v46  ;;  %v2254_v47 = vld [vmem:[#allocation8 + $0xca0] sm:$0xff] }
 0x293   : > { %v1501_v11 = vpop.f32.mrb[4].mxu1  ;;  %4422 = vmatprep.subr.bf16.mxu0 %v4421_v58  ;;  %v2186_v58 = vld [vmem:[#allocation8 + $0xa80] sm:$0xff]  ;;  %v4441_v62 = vpack.c.bf16 %v2190_v48, %v2187_v41  ;;  %v1835_v56 = vadd.f32 1.0, %v4938_v20  ;;  %v2257_v41 = vld [vmem:[#allocation8 + $0xcb8] sm:$0xff]  ;;  %v2211_v48 = vld [vmem:[#allocation8 + $0xb48] sm:$0xff] }
 0x294   : > { %v5551_v17 = vadd.f32 %v1501_v11, %v905_v63  ;;  %v1503_v15 = vpop.f32.mrb[5].mxu1  ;;  %v2189_v63 = vld [vmem:[#allocation8 + $0xa98] sm:$0xff]  ;;  %v2214_v20 = vld [vmem:[#allocation8 + $0xb60] sm:$0xff] }
 0x295   : > { %v4800_v21 = vadd.f32 %v1503_v15, %v909_v2  ;;  %4720 = vmatpush3.bf16.msra.mxu1 %v4719_v3  ;;  %v2293_v11 = vld [vmem:[#allocation8 + $0xdd8] sm:$0xff]  ;;  %v4443_v13 = vpack.c.bf16 %v2189_v63, %v2186_v58  ;;  %v2195_v15 = vld [vmem:[#allocation8 + $0xac8] sm:$0xff]  ;;  %v1810_v58 = vmul.f32 0.70710677, %v5565_v26  ;;  %v4457_v63 = vpack.c.bf16 %v2214_v20, %v2211_v48 }
 0x296   : > { %v1808_v35 = vmul.f32 0.70710677, %v5551_v17  ;;  %4424 = vmatpush1.bf16.msra.mxu0 %v4423_v5  ;;  %4722 = vmatprep.subr.bf16.mxu1 %v4721_v7  ;;  %v2193_v5 = vld [vmem:[#allocation8 + $0xab8] sm:$0xff]  ;;  %v1799_v7 = vmul.f32 0.5, %v5546_v8  ;;  %v1796_v9 = vmul.f32 0.5, %v5551_v17  ;;  %v4733_v8 = vpack.c.bf16 %v2293_v11, %v2290_v10  ;;  %v2296_v17 = vld [vmem:[#allocation8 + $0xdf0] sm:$0xff] }
 0x297   : > { %v1809_v28 = vmul.f32 0.70710677, %v4800_v21  ;;  %4426 = vmatprep.subr.bf16.mxu0 %v4425_v12  ;;  %v1797_v2 = vmul.f32 0.5, %v4800_v21  ;;  %v4445_v19 = vpack.c.bf16 %v2196_v6, %v2193_v5  ;;  %v2242_v21 = vld [vmem:[#allocation8 + $0xc40] sm:$0xff]  ;;  %v4447_v27 = vpack.c.bf16 %v2195_v15, %v2192_v16  ;;  %v2220_v5 = vld [vmem:[#allocation8 + $0xb90] sm:$0xff]  ;;  %v2219_v11 = vld [vmem:[#allocation8 + $0xb88] sm:$0xff] }
 0x298   : > { %4939 = verf.f32 %v1808_v35  ;;  %v2199_v35 = vld [vmem:[#allocation8 + $0xae8] sm:$0xff]  ;;  %v4737_v33 = vpack.c.bf16 %v2299_v44, %v2296_v17  ;;  %v2314_v6 = vld [vmem:[#allocation8 + $0xe80] sm:$0xff]  ;;  %v2216_v10 = vld [vmem:[#allocation8 + $0xb70] sm:$0xff]  ;;  %v1798_v20 = vmul.f32 0.5, %v5565_v26 }
 0x299   : > { %4941 = verf.f32 %v1809_v28  ;;  %4724 = vmatpush3.bf16.msra.mxu1 %v4723_v22  ;;  %v2245_v22 = vld [vmem:[#allocation8 + $0xc58] sm:$0xff]  ;;  %v2223_v15 = vld [vmem:[#allocation8 + $0xba8] sm:$0xff] }
 0x29a   : > { %4428 = vmatpush1.bf16.msra.mxu0 %v4427_v23  ;;  %4726 = vmatprep.subr.bf16.mxu1 %v4725_v25  ;;  %v2202_v23 = vld [vmem:[#allocation8 + $0xb00] sm:$0xff]  ;;  %v5559_v25 = vmul.f32 %v1835_v56, %v1799_v7  ;;  %v4735_v28 = vpack.c.bf16 %v2245_v22, %v2242_v21  ;;  %v2317_v7 = vld [vmem:[#allocation8 + $0xe98] sm:$0xff]  ;;  %4943 = verf.f32 %v1810_v58  ;;  %v2320_v21 = vld [vmem:[#allocation8 + $0xeb0] sm:$0xff] }
 0x29b   : > { %4430 = vmatprep.subr.bf16.mxu0 %v4429_v30  ;;  %v2198_v30 = vld [vmem:[#allocation8 + $0xae0] sm:$0xff]  ;;  %v4449_v32 = vpack.c.bf16 %v2202_v23, %v2199_v35  ;;  %v2269_v16 = vld [vmem:[#allocation8 + $0xd18] sm:$0xff]  ;;  %v2323_v22 = vld [vmem:[#allocation8 + $0xec8] sm:$0xff]  ;;  %v4463_v35 = vpack.c.bf16 %v2219_v11, %v2216_v10 }
 0x29c   : > { %v4451_v42 = vpack.c.bf16 %v2201_v31, %v2198_v30  ;;  %v2222_v23 = vld [vmem:[#allocation8 + $0xba0] sm:$0xff]  ;;  %v2225_v17 = vld [vmem:[#allocation8 + $0xbb8] sm:$0xff]  ;;  %v4753_v55 = vpack.c.bf16 %v2323_v22, %v2320_v21  ;;  %v2232_v31 = vld [vmem:[#allocation8 + $0xbf0] sm:$0xff] }
 0x29d   : > { %4728 = vmatpush3.bf16.msra.mxu1 %v4727_v51  ;;  %v2205_v51 = vld [vmem:[#allocation8 + $0xb18] sm:$0xff]  ;;  %v4467_v34 = vpack.c.bf16 %v2225_v17, %v2222_v23  ;;  %v2234_v58 = vld [vmem:[#allocation8 + $0xc00] sm:$0xff]  ;;  %v2256_v23 = vld [vmem:[#allocation8 + $0xcb0] sm:$0xff] }
 0x29e   : > { %4432 = vmatpush1.bf16.msra.mxu0 %v4431_v37  ;;  %4730 = vmatprep.subr.bf16.mxu1 %v4729_v39  ;;  %v2208_v37 = vld [vmem:[#allocation8 + $0xb30] sm:$0xff]  ;;  %v2302_v39 = vld [vmem:[#allocation8 + $0xe20] sm:$0xff]  ;;  %v2229_v30 = vld [vmem:[#allocation8 + $0xbd8] sm:$0xff] }
 0x29f   : > { %4434 = vmatprep.subr.bf16.mxu0 %v4433_v40  ;;  %v2305_v40 = vld [vmem:[#allocation8 + $0xe38] sm:$0xff]  ;;  %v2250_v10 = vld [vmem:[#allocation8 + $0xc80] sm:$0xff] }
 0x2a0   : > { %v4741_v46 = vpack.c.bf16 %v2305_v40, %v2302_v39  ;;  %v4469_v39 = vpack.c.bf16 %v2232_v31, %v2229_v30  ;;  %v2246_v21 = vld [vmem:[#allocation8 + $0xc60] sm:$0xff]  ;;  %v2249_v22 = vld [vmem:[#allocation8 + $0xc78] sm:$0xff]  ;;  %v2255_v31 = vld [vmem:[#allocation8 + $0xca8] sm:$0xff] }
 0x2a2   : > { %v4940_v53 = vpop.eup %4939  ;;  %4436 = vmatpush1.bf16.msra.mxu0 %v4435_v1  ;;  %v2207_v1 = vld [vmem:[#allocation8 + $0xb28] sm:$0xff] }
 0x2a3   : > { %v4942_v50 = vpop.eup %4941  ;;  %v1832_v61 = vadd.f32 1.0, %v4940_v53  ;;  %4438 = vmatprep.subr.bf16.mxu0 %v4437_v45  ;;  %v4453_v45 = vpack.c.bf16 %v2208_v37, %v2205_v51  ;;  %v2308_v53 = vld [vmem:[#allocation8 + $0xe50] sm:$0xff]  ;;  %v4455_v54 = vpack.c.bf16 %v2207_v1, %v2204_v43  ;;  %v2231_v37 = vld [vmem:[#allocation8 + $0xbe8] sm:$0xff] }
 0x2a4   : > { %v1833_v3 = vadd.f32 1.0, %v4942_v50  ;;  %v4743_v50 = vpack.c.bf16 %v2257_v41, %v2254_v47  ;;  %v2228_v51 = vld [vmem:[#allocation8 + $0xbd0] sm:$0xff]  ;;  %v2235_v43 = vld [vmem:[#allocation8 + $0xc08] sm:$0xff]  ;;  %v4944_v1 = vpop.eup %4943 }
 0x2a5   : > { %v5556_v18 = vmul.f32 %v1832_v61, %v1796_v9  ;;  %v2210_v61 = vld [vmem:[#allocation8 + $0xb40] sm:$0xff]  ;;  %v2383_v47 = vld [vmem:[#allocation8 + $0x10a8] sm:$0xff]  ;;  %v4471_v41 = vpack.c.bf16 %v2231_v37, %v2228_v51  ;;  %v2353_v37 = vld [vmem:[#allocation8 + $0xfb8] sm:$0xff] }
 0x2a6   : > { %4440 = vmatpush1.bf16.msra.mxu0 %v4439_v29  ;;  %v1845_v12 = vmul.f32 %v1833_v3, %v1797_v2  ;;  %v2311_v29 = vld [vmem:[#allocation8 + $0xe68] sm:$0xff]  ;;  %v2217_v3 = vld [vmem:[#allocation8 + $0xb78] sm:$0xff]  ;;  %v2350_v51 = vld [vmem:[#allocation8 + $0xfa0] sm:$0xff] }
 0x2a7   : > { %4442 = vmatprep.subr.bf16.mxu0 %v4441_v62  ;;  %v2213_v62 = vld [vmem:[#allocation8 + $0xb58] sm:$0xff]  ;;  %v4745_v0 = vpack.c.bf16 %v2311_v29, %v2308_v53  ;;  %v2263_v2 = vld [vmem:[#allocation8 + $0xce8] sm:$0xff]  ;;  %v1834_v53 = vadd.f32 1.0, %v4944_v1 }
 0x2a8   : > { %2720 = vmatprep.mubr.f32.mxu0 %v1845_v12  ;;  %3143 = vmatprep.mubr.f32.mxu1 %v1845_v12  ;;  %v4459_v56 = vpack.c.bf16 %v2213_v62, %v2210_v61  ;;  %v4747_v9 = vpack.c.bf16 %v2263_v2, %v2260_v59  ;;  %v4461_v12 = vpack.c.bf16 %v2220_v5, %v2217_v3  ;;  %v2244_v62 = vld [vmem:[#allocation8 + $0xc50] sm:$0xff]  ;;  %v2386_v59 = vld [vmem:[#allocation8 + $0x10c0] sm:$0xff]  ;;  %v2389_v2 = vld [vmem:[#allocation8 + $0x10d8] sm:$0xff] }
 0x2a9   : > { %3144 = vmatmul.mubr.f32.vlgmr.msra.gmra.mrb[14].mxu1 %v5556_v18  ;;  %v5569_v5 = vmul.f32 %v1834_v53, %v1798_v20  ;;  %v4765_v11 = vpack.c.bf16 %v2389_v2, %v2386_v59  ;;  %v2261_v1 = vld [vmem:[#allocation8 + $0xcd8] sm:$0xff]  ;;  %v2359_v20 = vld [vmem:[#allocation8 + $0xfe8] sm:$0xff]  ;;  %v2410_v53 = vld [vmem:[#allocation8 + $0x1180] sm:$0xff] }
 0x2aa   : > { %4444 = vmatpush1.bf16.msra.mxu0 %v4443_v13  ;;  %4732 = vmatpush3.bf16.msra.mxu1 %v4731_v14  ;;  %v4749_v13 = vpack.c.bf16 %v2317_v7, %v2314_v6  ;;  %v2266_v14 = vld [vmem:[#allocation8 + $0xd00] sm:$0xff]  ;;  %v2240_v6 = vld [vmem:[#allocation8 + $0xc30] sm:$0xff]  ;;  %v2243_v7 = vld [vmem:[#allocation8 + $0xc48] sm:$0xff] }
 0x2ab   : > { %3213 = vmatprep.mubr.f32.mxu1 %v5559_v25  ;;  %4446 = vmatprep.subr.bf16.mxu0 %v4445_v19  ;;  %v2226_v19 = vld [vmem:[#allocation8 + $0xbc0] sm:$0xff] }
 0x2ac   : > { %4734 = vmatprep.subr.bf16.mxu1 %v4733_v8  ;;  %v4751_v8 = vpack.c.bf16 %v2269_v16, %v2266_v14  ;;  %v4465_v44 = vpack.c.bf16 %v2226_v19, %v2223_v15  ;;  %v2392_v14 = vld [vmem:[#allocation8 + $0x10f0] sm:$0xff]  ;;  %v2395_v16 = vld [vmem:[#allocation8 + $0x1108] sm:$0xff]  ;;  %v4479_v15 = vpack.c.bf16 %v2243_v7, %v2240_v6  ;;  %v2362_v2 = vld [vmem:[#allocation8 + $0x1000] sm:$0xff] }
 0x2ad   : > { %v4769_v17 = vpack.c.bf16 %v2395_v16, %v2392_v14  ;;  %v2419_v6 = vld [vmem:[#allocation8 + $0x11c8] sm:$0xff]  ;;  %v2368_v16 = vld [vmem:[#allocation8 + $0x1030] sm:$0xff] }
 0x2ae   : > { %4448 = vmatpush1.bf16.msra.mxu0 %v4447_v27  ;;  %4736 = vmatpush3.bf16.msra.mxu1 %v4735_v28  ;;  %v2272_v27 = vld [vmem:[#allocation8 + $0xd30] sm:$0xff]  ;;  %v2275_v28 = vld [vmem:[#allocation8 + $0xd48] sm:$0xff] }
 0x2af   : > { %4450 = vmatprep.subr.bf16.mxu0 %v4449_v32  ;;  %4738 = vmatprep.subr.bf16.mxu1 %v4737_v33  ;;  %v2326_v32 = vld [vmem:[#allocation8 + $0xee0] sm:$0xff]  ;;  %v2329_v33 = vld [vmem:[#allocation8 + $0xef8] sm:$0xff]  ;;  %v4755_v24 = vpack.c.bf16 %v2275_v28, %v2272_v27  ;;  %v4483_v28 = vpack.c.bf16 %v2249_v22, %v2246_v21 }
 0x2b0   : > { %v4757_v40 = vpack.c.bf16 %v2329_v33, %v2326_v32  ;;  %v2401_v27 = vld [vmem:[#allocation8 + $0x1138] sm:$0xff]  ;;  %v2259_v32 = vld [vmem:[#allocation8 + $0xcc8] sm:$0xff] }
 0x2b1   : > { %v2425_v21 = vld [vmem:[#allocation8 + $0x11f8] sm:$0xff] }
 0x2b2   : > { %4452 = vmatpush1.bf16.msra.mxu0 %v4451_v42  ;;  %4740 = vmatpush3.bf16.msra.mxu1 %v4739_v4  ;;  %v2278_v42 = vld [vmem:[#allocation8 + $0xd60] sm:$0xff]  ;;  %v2281_v4 = vld [vmem:[#allocation8 + $0xd78] sm:$0xff] }
 0x2b3   : > { %4454 = vmatprep.subr.bf16.mxu0 %v4453_v45  ;;  %4742 = vmatprep.subr.bf16.mxu1 %v4741_v46  ;;  %v2238_v45 = vld [vmem:[#allocation8 + $0xc20] sm:$0xff]  ;;  %v2380_v46 = vld [vmem:[#allocation8 + $0x1090] sm:$0xff]  ;;  %v4759_v48 = vpack.c.bf16 %v2281_v4, %v2278_v42 }
 0x2b4   : > { %v4473_v29 = vpack.c.bf16 %v2238_v45, %v2235_v43  ;;  %v4761_v61 = vpack.c.bf16 %v2383_v47, %v2380_v46  ;;  %v2258_v43 = vld [vmem:[#allocation8 + $0xcc0] sm:$0xff]  ;;  %v2265_v45 = vld [vmem:[#allocation8 + $0xcf8] sm:$0xff]  ;;  %v4775_v46 = vpack.c.bf16 %v2353_v37, %v2350_v51  ;;  %v2268_v47 = vld [vmem:[#allocation8 + $0xd10] sm:$0xff] }
 0x2b6   : > { %4456 = vmatpush1.bf16.msra.mxu0 %v4455_v54  ;;  %4744 = vmatpush3.bf16.msra.mxu1 %v4743_v50  ;;  %v2237_v54 = vld [vmem:[#allocation8 + $0xc18] sm:$0xff] }
 0x2b7   : > { %4458 = vmatprep.subr.bf16.mxu0 %v4457_v63  ;;  %4746 = vmatprep.subr.bf16.mxu1 %v4745_v0  ;;  %v2241_v50 = vld [vmem:[#allocation8 + $0xc38] sm:$0xff]  ;;  %v2332_v63 = vld [vmem:[#allocation8 + $0xf10] sm:$0xff]  ;;  %v2335_v0 = vld [vmem:[#allocation8 + $0xf28] sm:$0xff]  ;;  %v4475_v3 = vpack.c.bf16 %v2237_v54, %v2234_v58  ;;  %v4491_v58 = vpack.c.bf16 %v2261_v1, %v2258_v43  ;;  %v4493_v54 = vpack.c.bf16 %v2268_v47, %v2265_v45 }
 0x2b8   : > { %v4477_v26 = vpack.c.bf16 %v2244_v62, %v2241_v50  ;;  %v2264_v50 = vld [vmem:[#allocation8 + $0xcf0] sm:$0xff]  ;;  %v2271_v62 = vld [vmem:[#allocation8 + $0xd28] sm:$0xff]  ;;  %v2294_v45 = vld [vmem:[#allocation8 + $0xde0] sm:$0xff] }
 0x2b9   : > { %v2301_v47 = vld [vmem:[#allocation8 + $0xe18] sm:$0xff] }
 0x2ba   : > { %4460 = vmatpush1.bf16.msra.mxu0 %v4459_v56  ;;  %4748 = vmatpush3.bf16.msra.mxu1 %v4747_v9  ;;  %v2247_v56 = vld [vmem:[#allocation8 + $0xc68] sm:$0xff]  ;;  %v4763_v9 = vpack.c.bf16 %v2335_v0, %v2332_v63  ;;  %v2274_v0 = vld [vmem:[#allocation8 + $0xd40] sm:$0xff] }
 0x2bb   : > { %4462 = vmatprep.subr.bf16.mxu0 %v4461_v12  ;;  %4750 = vmatprep.subr.bf16.mxu1 %v4749_v13  ;;  %v2338_v12 = vld [vmem:[#allocation8 + $0xf40] sm:$0xff]  ;;  %v2341_v13 = vld [vmem:[#allocation8 + $0xf58] sm:$0xff]  ;;  %v4481_v19 = vpack.c.bf16 %v2250_v10, %v2247_v56  ;;  %v4497_v56 = vpack.c.bf16 %v2274_v0, %v2271_v62 }
 0x2bc   : > { %v2273_v10 = vld [vmem:[#allocation8 + $0xd38] sm:$0xff] }
 0x2be   : > { %4464 = vmatpush1.bf16.msra.mxu0 %v4463_v35  ;;  %4752 = vmatpush3.bf16.msra.mxu1 %v4751_v8  ;;  %v2253_v35 = vld [vmem:[#allocation8 + $0xc98] sm:$0xff]  ;;  %v4767_v8 = vpack.c.bf16 %v2341_v13, %v2338_v12  ;;  %v2280_v13 = vld [vmem:[#allocation8 + $0xd70] sm:$0xff] }
 0x2bf   : > { %4466 = vmatprep.subr.bf16.mxu0 %v4465_v44  ;;  %4754 = vmatprep.subr.bf16.mxu1 %v4753_v55  ;;  %v2344_v44 = vld [vmem:[#allocation8 + $0xf70] sm:$0xff]  ;;  %v2398_v55 = vld [vmem:[#allocation8 + $0x1120] sm:$0xff]  ;;  %v4485_v30 = vpack.c.bf16 %v2256_v23, %v2253_v35  ;;  %v2279_v23 = vld [vmem:[#allocation8 + $0xd68] sm:$0xff] }
 0x2c2   : > { %4468 = vmatpush1.bf16.msra.mxu0 %v4467_v34  ;;  %4756 = vmatpush3.bf16.msra.mxu1 %v4755_v24  ;;  %v2262_v34 = vld [vmem:[#allocation8 + $0xce0] sm:$0xff]  ;;  %v4773_v24 = vpack.c.bf16 %v2401_v27, %v2398_v55 }
 0x2c3   : > { %4470 = vmatprep.subr.bf16.mxu0 %v4469_v39  ;;  %4758 = vmatprep.subr.bf16.mxu1 %v4757_v40  ;;  %v2404_v39 = vld [vmem:[#allocation8 + $0x1150] sm:$0xff]  ;;  %v2407_v40 = vld [vmem:[#allocation8 + $0x1168] sm:$0xff]  ;;  %v4489_v4 = vpack.c.bf16 %v2262_v34, %v2259_v32  ;;  %v2374_v27 = vld [vmem:[#allocation8 + $0x1060] sm:$0xff] }
 0x2c4   : > { %v2285_v32 = vld [vmem:[#allocation8 + $0xd98] sm:$0xff] }
 0x2c5   : > { %v2289_v34 = vld [vmem:[#allocation8 + $0xdb8] sm:$0xff] }
 0x2c6   : > { %4472 = vmatpush1.bf16.msra.mxu0 %v4471_v41  ;;  %4760 = vmatpush3.bf16.msra.mxu1 %v4759_v48  ;;  %v4777_v41 = vpack.c.bf16 %v2407_v40, %v2404_v39  ;;  %v2356_v48 = vld [vmem:[#allocation8 + $0xfd0] sm:$0xff]  ;;  %v2291_v40 = vld [vmem:[#allocation8 + $0xdc8] sm:$0xff] }
 0x2c7   : > { %4474 = vmatprep.subr.bf16.mxu0 %v4473_v29  ;;  %4762 = vmatprep.subr.bf16.mxu1 %v4761_v61  ;;  %v2413_v29 = vld [vmem:[#allocation8 + $0x1198] sm:$0xff]  ;;  %v2267_v61 = vld [vmem:[#allocation8 + $0xd08] sm:$0xff]  ;;  %v4779_v63 = vpack.c.bf16 %v2359_v20, %v2356_v48  ;;  %v2288_v39 = vld [vmem:[#allocation8 + $0xdb0] sm:$0xff] }
 0x2c8   : > { %v4781_v59 = vpack.c.bf16 %v2413_v29, %v2410_v53  ;;  %v4495_v7 = vpack.c.bf16 %v2267_v61, %v2264_v50  ;;  %v4511_v43 = vpack.c.bf16 %v2291_v40, %v2288_v39  ;;  %v2300_v53 = vld [vmem:[#allocation8 + $0xe10] sm:$0xff]  ;;  %v2303_v29 = vld [vmem:[#allocation8 + $0xe28] sm:$0xff]  ;;  %v2310_v50 = vld [vmem:[#allocation8 + $0xe60] sm:$0xff]  ;;  %v925_v61 = vrot.slane %v5539_v52, %v892_v38 }
 0x2c9   : > { %2721 = vmatmul.mubr.f32.vlgmr.msra.gmra.mrb[4].mxu0 %v5556_v18  ;;  %3214 = vmatmul.mubr.f32.vlgmr.msra.gmra.mrb[16].mxu1 %v5569_v5  ;;  %v2347_v18 = vld [vmem:[#allocation8 + $0xf88] sm:$0xff]  ;;  %v4519_v62 = vpack.c.bf16 %v2303_v29, %v2300_v53  ;;  %v2349_v53 = vld [vmem:[#allocation8 + $0xf98] sm:$0xff]  ;;  %v2352_v29 = vld [vmem:[#allocation8 + $0xfb0] sm:$0xff] }
 0x2ca   : > { %4476 = vmatpush1.bf16.msra.mxu0 %v4475_v3  ;;  %2791 = vmatprep.mubr.f32.mxu0 %v5559_v25  ;;  %v2252_v25 = vld [vmem:[#allocation8 + $0xc90] sm:$0xff]  ;;  %v4771_v33 = vpack.c.bf16 %v2347_v18, %v2344_v44  ;;  %v2365_v3 = vld [vmem:[#allocation8 + $0x1018] sm:$0xff]  ;;  %v2286_v18 = vld [vmem:[#allocation8 + $0xda0] sm:$0xff] }
 0x2cb   : > { %4478 = vmatprep.subr.bf16.mxu0 %v4477_v26  ;;  %4764 = vmatpush3.bf16.msra.mxu1 %v4763_v9  ;;  %v4487_v42 = vpack.c.bf16 %v2255_v31, %v2252_v25  ;;  %v2416_v26 = vld [vmem:[#allocation8 + $0x11b0] sm:$0xff]  ;;  %v2270_v9 = vld [vmem:[#allocation8 + $0xd20] sm:$0xff]  ;;  %v4783_v12 = vpack.c.bf16 %v2365_v3, %v2362_v2  ;;  %v2309_v2 = vld [vmem:[#allocation8 + $0xe58] sm:$0xff] }
 0x2cc   : > { %4766 = vmatprep.subr.bf16.mxu1 %v4765_v11  ;;  %v2277_v11 = vld [vmem:[#allocation8 + $0xd58] sm:$0xff]  ;;  %v4785_v14 = vpack.c.bf16 %v2419_v6, %v2416_v26  ;;  %v4499_v22 = vpack.c.bf16 %v2273_v10, %v2270_v9  ;;  %v2282_v31 = vld [vmem:[#allocation8 + $0xd80] sm:$0xff]  ;;  %v2315_v38 = vld [vmem:[#allocation8 + $0xe88] sm:$0xff] }
 0x2cd   : > { %v4501_v35 = vpack.c.bf16 %v2280_v13, %v2277_v11  ;;  %v4507_v51 = vpack.c.bf16 %v2285_v32, %v2282_v31  ;;  %v2313_v6 = vld [vmem:[#allocation8 + $0xe78] sm:$0xff]  ;;  %v2322_v13 = vld [vmem:[#allocation8 + $0xec0] sm:$0xff] }
 0x2ce   : > { %4480 = vmatpush1.bf16.msra.mxu0 %v4479_v15  ;;  %v2371_v15 = vld [vmem:[#allocation8 + $0x1048] sm:$0xff] }
 0x2cf   : > { %4482 = vmatprep.subr.bf16.mxu0 %v4481_v19  ;;  %4768 = vmatpush3.bf16.msra.mxu1 %v4767_v8  ;;  %v2422_v19 = vld [vmem:[#allocation8 + $0x11e0] sm:$0xff]  ;;  %v2276_v8 = vld [vmem:[#allocation8 + $0xd50] sm:$0xff]  ;;  %v4787_v44 = vpack.c.bf16 %v2371_v15, %v2368_v16 }
 0x2d0   : > { %4770 = vmatprep.subr.bf16.mxu1 %v4769_v17  ;;  %v2283_v17 = vld [vmem:[#allocation8 + $0xd88] sm:$0xff]  ;;  %v4789_v55 = vpack.c.bf16 %v2425_v21, %v2422_v19  ;;  %v2318_v15 = vld [vmem:[#allocation8 + $0xea0] sm:$0xff]  ;;  %v2321_v19 = vld [vmem:[#allocation8 + $0xeb8] sm:$0xff] }
 0x2d1   : > { %v4505_v25 = vpack.c.bf16 %v2286_v18, %v2283_v17  ;;  %v2325_v21 = vld [vmem:[#allocation8 + $0xed8] sm:$0xff]  ;;  %v2327_v17 = vld [vmem:[#allocation8 + $0xee8] sm:$0xff]  ;;  %v2334_v18 = vld [vmem:[#allocation8 + $0xf20] sm:$0xff] }
 0x2d2   : > { %4484 = vmatpush1.bf16.msra.mxu0 %v4483_v28  ;;  %v2377_v28 = vld [vmem:[#allocation8 + $0x1078] sm:$0xff] }
 0x2d3   : > { %4486 = vmatprep.subr.bf16.mxu0 %v4485_v30  ;;  %4772 = vmatpush3.bf16.msra.mxu1 %v4771_v33  ;;  %v4503_v30 = vpack.c.bf16 %v2279_v23, %v2276_v8  ;;  %v4791_v33 = vpack.c.bf16 %v2377_v28, %v2374_v27  ;;  %v2324_v23 = vld [vmem:[#allocation8 + $0xed0] sm:$0xff] }
 0x2d4   : > { %4774 = vmatprep.subr.bf16.mxu1 %v4773_v24  ;;  %v2292_v24 = vld [vmem:[#allocation8 + $0xdd0] sm:$0xff] }
 0x2d5   : > { %v4509_v37 = vpack.c.bf16 %v2292_v24, %v2289_v34  ;;  %v2333_v34 = vld [vmem:[#allocation8 + $0xf18] sm:$0xff] }
 0x2d6   : > { %4488 = vmatpush1.bf16.msra.mxu0 %v4487_v42  ;;  %v2295_v42 = vld [vmem:[#allocation8 + $0xde8] sm:$0xff] }
 0x2d7   : > { %4490 = vmatprep.subr.bf16.mxu0 %v4489_v4  ;;  %4776 = vmatpush3.bf16.msra.mxu1 %v4775_v46  ;;  %v2298_v4 = vld [vmem:[#allocation8 + $0xe00] sm:$0xff]  ;;  %v2297_v46 = vld [vmem:[#allocation8 + $0xdf8] sm:$0xff] }
 0x2d8   : > { %4778 = vmatprep.subr.bf16.mxu1 %v4777_v41  ;;  %v4513_v1 = vpack.c.bf16 %v2298_v4, %v2295_v42  ;;  %v2304_v41 = vld [vmem:[#allocation8 + $0xe30] sm:$0xff]  ;;  %v4515_v48 = vpack.c.bf16 %v2297_v46, %v2294_v45  ;;  %v2343_v45 = vld [vmem:[#allocation8 + $0xf68] sm:$0xff]  ;;  %v2346_v46 = vld [vmem:[#allocation8 + $0xf80] sm:$0xff] }
 0x2d9   : > { %v4517_v20 = vpack.c.bf16 %v2304_v41, %v2301_v47  ;;  %v4545_v41 = vpack.c.bf16 %v2346_v46, %v2343_v45 }
 0x2da   : > { %4492 = vmatpush1.bf16.msra.mxu0 %v4491_v58  ;;  %v921_v58 = vrot.slane %v5539_v52, %v5508_v36  ;;  %v2319_v52 = vld [vmem:[#allocation8 + $0xea8] sm:$0xff] }
 0x2db   : > { %4494 = vmatprep.subr.bf16.mxu0 %v4493_v54  ;;  %4780 = vmatpush3.bf16.msra.mxu1 %v4779_v63  ;;  %v2307_v54 = vld [vmem:[#allocation8 + $0xe48] sm:$0xff]  ;;  %v4529_v16 = vpack.c.bf16 %v2322_v13, %v2319_v52 }
 0x2dc   : > { %4782 = vmatprep.subr.bf16.mxu1 %v4781_v59  ;;  %v4521_v0 = vpack.c.bf16 %v2310_v50, %v2307_v54  ;;  %v2306_v59 = vld [vmem:[#allocation8 + $0xe40] sm:$0xff]  ;;  %v4549_v54 = vpack.c.bf16 %v2352_v29, %v2349_v53  ;;  %v2348_v50 = vld [vmem:[#allocation8 + $0xf90] sm:$0xff] }
 0x2dd   : > { %v4523_v10 = vpack.c.bf16 %v2309_v2, %v2306_v59  ;;  %v2354_v2 = vld [vmem:[#allocation8 + $0xfc0] sm:$0xff] }
 0x2de   : > { %4496 = vmatpush1.bf16.msra.mxu0 %v4495_v7  ;;  %v2316_v7 = vld [vmem:[#allocation8 + $0xe90] sm:$0xff] }
 0x2df   : > { %4498 = vmatprep.subr.bf16.mxu0 %v4497_v56  ;;  %4784 = vmatpush3.bf16.msra.mxu1 %v4783_v12  ;;  %v4525_v49 = vpack.c.bf16 %v2316_v7, %v2313_v6  ;;  %v2312_v12 = vld [vmem:[#allocation8 + $0xe70] sm:$0xff]  ;;  %v2361_v6 = vld [vmem:[#allocation8 + $0xff8] sm:$0xff] }
 0x2e0   : > { %4786 = vmatprep.subr.bf16.mxu1 %v4785_v14  ;;  %v4527_v14 = vpack.c.bf16 %v2315_v38, %v2312_v12  ;;  %v2364_v7 = vld [vmem:[#allocation8 + $0x1010] sm:$0xff]  ;;  %v2367_v12 = vld [vmem:[#allocation8 + $0x1028] sm:$0xff]  ;;  %v2370_v38 = vld [vmem:[#allocation8 + $0x1040] sm:$0xff] }
 0x2e1   : > { %v4561_v13 = vpack.c.bf16 %v2370_v38, %v2367_v12  ;;  %v2417_v12 = vld [vmem:[#allocation8 + $0x11b8] sm:$0xff] }
 0x2e2   : > { %4500 = vmatpush1.bf16.msra.mxu0 %v4499_v22  ;;  %v2328_v22 = vld [vmem:[#allocation8 + $0xef0] sm:$0xff]  ;;  %v2421_v38 = vld [vmem:[#allocation8 + $0x11d8] sm:$0xff] }
 0x2e3   : > { %4502 = vmatprep.subr.bf16.mxu0 %v4501_v35  ;;  %4788 = vmatpush3.bf16.msra.mxu1 %v4787_v44  ;;  %v4531_v35 = vpack.c.bf16 %v2321_v19, %v2318_v15  ;;  %v4533_v8 = vpack.c.bf16 %v2328_v22, %v2325_v21  ;;  %v2331_v44 = vld [vmem:[#allocation8 + $0xf08] sm:$0xff]  ;;  %v2373_v15 = vld [vmem:[#allocation8 + $0x1058] sm:$0xff]  ;;  %v2376_v19 = vld [vmem:[#allocation8 + $0x1070] sm:$0xff] }
 0x2e4   : > { %4790 = vmatprep.subr.bf16.mxu1 %v4789_v55  ;;  %v4537_v32 = vpack.c.bf16 %v2334_v18, %v2331_v44  ;;  %v4565_v22 = vpack.c.bf16 %v2376_v19, %v2373_v15 }
 0x2e6   : > { %4504 = vmatpush1.bf16.msra.mxu0 %v4503_v30  ;;  %v4535_v30 = vpack.c.bf16 %v2327_v17, %v2324_v23  ;;  %v2379_v23 = vld [vmem:[#allocation8 + $0x1088] sm:$0xff]  ;;  %v2382_v17 = vld [vmem:[#allocation8 + $0x10a0] sm:$0xff] }
 0x2e7   : > { %4506 = vmatprep.subr.bf16.mxu0 %v4505_v25  ;;  %4792 = vmatpush3.bf16.msra.mxu1 %v4791_v33  ;;  %v2330_v33 = vld [vmem:[#allocation8 + $0xf00] sm:$0xff]  ;;  %v4569_v18 = vpack.c.bf16 %v2382_v17, %v2379_v23 }
 0x2e8   : > { %v4539_v42 = vpack.c.bf16 %v2333_v34, %v2330_v33  ;;  %v2387_v33 = vld [vmem:[#allocation8 + $0x10c8] sm:$0xff] }
 0x2e9   : > { %v2391_v34 = vld [vmem:[#allocation8 + $0x10e8] sm:$0xff] }
 0x2ea   : > { %4508 = vmatpush1.bf16.msra.mxu0 %v4507_v51  ;;  %v2337_v51 = vld [vmem:[#allocation8 + $0xf38] sm:$0xff] }
 0x2eb   : > { %4510 = vmatprep.subr.bf16.mxu0 %v4509_v37  ;;  %v2340_v37 = vld [vmem:[#allocation8 + $0xf50] sm:$0xff] }
 0x2ec   : > { %v4541_v4 = vpack.c.bf16 %v2340_v37, %v2337_v51 }
 0x2ee   : > { %4512 = vmatpush1.bf16.msra.mxu0 %v4511_v43  ;;  %v2336_v43 = vld [vmem:[#allocation8 + $0xf30] sm:$0xff] }
 0x2ef   : > { %4514 = vmatprep.subr.bf16.mxu0 %v4513_v1  ;;  %v2339_v1 = vld [vmem:[#allocation8 + $0xf48] sm:$0xff] }
 0x2f0   : > { %v4543_v47 = vpack.c.bf16 %v2339_v1, %v2336_v43  ;;  %v2400_v43 = vld [vmem:[#allocation8 + $0x1130] sm:$0xff]  ;;  %v5585_v1 = vld [vmem:[#allocation10] sm:$0x7] }
 0x2f1   : > { %v2439_v53 = vrot.slane %v5585_v1, %v5508_v36  ;;  %v2411_v36 = vld [vmem:[#allocation8 + $0x1188] sm:$0xff] }
 0x2f2   : > { %4516 = vmatpush1.bf16.msra.mxu0 %v4515_v48  ;;  %v2342_v48 = vld [vmem:[#allocation8 + $0xf60] sm:$0xff] }
 0x2f3   : > { %v1785_v63 = vpop.f32.mrb[6].mxu1  ;;  %4518 = vmatprep.subr.bf16.mxu0 %v4517_v20  ;;  %v2345_v20 = vld [vmem:[#allocation8 + $0xf78] sm:$0xff] }
 0x2f4   : > { %v4803_v3 = vadd.f32 %v1785_v63, %v921_v58  ;;  %v1787_v26 = vpop.f32.mrb[7].mxu1  ;;  %v4547_v58 = vpack.c.bf16 %v2345_v20, %v2342_v48  ;;  %v2358_v63 = vld [vmem:[#allocation8 + $0xfe0] sm:$0xff]  ;;  %v2403_v48 = vld [vmem:[#allocation8 + $0x1148] sm:$0xff] }
 0x2f5   : > { %v4804_v56 = vadd.f32 %v1787_v26, %v925_v61  ;;  %v2351_v61 = vld [vmem:[#allocation8 + $0xfa8] sm:$0xff]  ;;  %v2406_v20 = vld [vmem:[#allocation8 + $0x1160] sm:$0xff] }
 0x2f6   : > { %v1812_v9 = vmul.f32 0.70710677, %v4803_v3  ;;  %4520 = vmatpush1.bf16.msra.mxu0 %v4519_v62  ;;  %v1800_v55 = vmul.f32 0.5, %v4803_v3  ;;  %v2355_v62 = vld [vmem:[#allocation8 + $0xfc8] sm:$0xff]  ;;  %v2357_v3 = vld [vmem:[#allocation8 + $0xfd8] sm:$0xff] }
 0x2f7   : > { %v1813_v11 = vmul.f32 0.70710677, %v4804_v56  ;;  %4522 = vmatprep.subr.bf16.mxu0 %v4521_v0  ;;  %v1801_v28 = vmul.f32 0.5, %v4804_v56  ;;  %v4553_v59 = vpack.c.bf16 %v2358_v63, %v2355_v62  ;;  %v2409_v63 = vld [vmem:[#allocation8 + $0x1178] sm:$0xff] }
 0x2f8   : > { %4945 = verf.f32 %v1812_v9  ;;  %v4555_v9 = vpack.c.bf16 %v2357_v3, %v2354_v2 }
 0x2f9   : > { %4947 = verf.f32 %v1813_v11  ;;  %v2360_v11 = vld [vmem:[#allocation8 + $0xff0] sm:$0xff] }
 0x2fa   : > { %4524 = vmatpush1.bf16.msra.mxu0 %v4523_v10  ;;  %v4557_v10 = vpack.c.bf16 %v2364_v7, %v2361_v6  ;;  %v2408_v6 = vld [vmem:[#allocation8 + $0x1170] sm:$0xff]  ;;  %v2415_v7 = vld [vmem:[#allocation8 + $0x11a8] sm:$0xff] }
 0x2fb   : > { %4526 = vmatprep.subr.bf16.mxu0 %v4525_v49  ;;  %v2363_v49 = vld [vmem:[#allocation8 + $0x1008] sm:$0xff] }
 0x2fc   : > { %v4559_v52 = vpack.c.bf16 %v2363_v49, %v2360_v11  ;;  %v2414_v49 = vld [vmem:[#allocation8 + $0x11a0] sm:$0xff] }
 0x2fe   : > { %4528 = vmatpush1.bf16.msra.mxu0 %v4527_v14  ;;  %v2366_v14 = vld [vmem:[#allocation8 + $0x1020] sm:$0xff] }
 0x2ff   : > { %4530 = vmatprep.subr.bf16.mxu0 %v4529_v16  ;;  %v2369_v16 = vld [vmem:[#allocation8 + $0x1038] sm:$0xff] }
 0x300   : > { %v4563_v21 = vpack.c.bf16 %v2369_v16, %v2366_v14  ;;  %v2420_v14 = vld [vmem:[#allocation8 + $0x11d0] sm:$0xff]  ;;  %v2423_v16 = vld [vmem:[#allocation8 + $0x11e8] sm:$0xff] }
 0x301   : > { %v4599_v15 = vpack.c.bf16 %v2423_v16, %v2420_v14 }
 0x302   : > { %v4946_v27 = vpop.eup %4945  ;;  %4532 = vmatpush1.bf16.msra.mxu0 %v4531_v35  ;;  %v2372_v35 = vld [vmem:[#allocation8 + $0x1050] sm:$0xff] }
 0x303   : > { %v4948_v25 = vpop.eup %4947  ;;  %v1836_v31 = vadd.f32 1.0, %v4946_v27  ;;  %4534 = vmatprep.subr.bf16.mxu0 %v4533_v8  ;;  %v2375_v8 = vld [vmem:[#allocation8 + $0x1068] sm:$0xff]  ;;  %v2381_v27 = vld [vmem:[#allocation8 + $0x1098] sm:$0xff] }
 0x304   : > { %v1837_v24 = vadd.f32 1.0, %v4948_v25  ;;  %v4567_v44 = vpack.c.bf16 %v2375_v8, %v2372_v35 }
 0x305   : > { %v5579_v39 = vmul.f32 %v1836_v31, %v1800_v55  ;;  %v2378_v55 = vld [vmem:[#allocation8 + $0x1080] sm:$0xff] }
 0x306   : > { %4536 = vmatpush1.bf16.msra.mxu0 %v4535_v30  ;;  %v1849_v40 = vmul.f32 %v1837_v24, %v1801_v28  ;;  %v2385_v28 = vld [vmem:[#allocation8 + $0x10b8] sm:$0xff]  ;;  %v2388_v30 = vld [vmem:[#allocation8 + $0x10d0] sm:$0xff]  ;;  %v4571_v25 = vpack.c.bf16 %v2381_v27, %v2378_v55  ;;  %v2394_v24 = vld [vmem:[#allocation8 + $0x1100] sm:$0xff] }
 0x307   : > { %4538 = vmatprep.subr.bf16.mxu0 %v4537_v32  ;;  %v4573_v31 = vpack.c.bf16 %v2388_v30, %v2385_v28  ;;  %v2384_v32 = vld [vmem:[#allocation8 + $0x10b0] sm:$0xff]  ;;  %v4577_v37 = vpack.c.bf16 %v2394_v24, %v2391_v34 }
 0x308   : > { %3283 = vmatprep.mubr.f32.mxu1 %v1849_v40  ;;  %v4575_v51 = vpack.c.bf16 %v2387_v33, %v2384_v32  ;;  %v2435_v33 = vrot.slane %v5585_v1, %v5485_v60 }
 0x309   : > { %2792 = vmatmul.mubr.f32.vlgmr.msra.gmra.mrb[4].mxu0 %v5569_v5  ;;  %3284 = vmatmul.mubr.f32.vlgmr.msra.gmra.mrb[18].mxu1 %v5579_v39  ;;  %v4551_v5 = vpack.c.bf16 %v2351_v61, %v2348_v50  ;;  %v2402_v50 = vld [vmem:[#allocation8 + $0x1140] sm:$0xff]  ;;  %v2405_v61 = vld [vmem:[#allocation8 + $0x1158] sm:$0xff] }
 0x30a   : > { %4540 = vmatpush1.bf16.msra.mxu0 %v4539_v42  ;;  %2862 = vmatprep.mubr.f32.mxu0 %v1849_v40  ;;  %v2390_v40 = vld [vmem:[#allocation8 + $0x10e0] sm:$0xff]  ;;  %v2393_v42 = vld [vmem:[#allocation8 + $0x10f8] sm:$0xff]  ;;  %v4587_v2 = vpack.c.bf16 %v2405_v61, %v2402_v50 }
 0x30b   : > { %4542 = vmatprep.subr.bf16.mxu0 %v4541_v4  ;;  %v2397_v4 = vld [vmem:[#allocation8 + $0x1118] sm:$0xff]  ;;  %v4579_v45 = vpack.c.bf16 %v2393_v42, %v2390_v40 }
 0x30c   : > { %v4581_v46 = vpack.c.bf16 %v2400_v43, %v2397_v4 }
 0x30e   : > { %4544 = vmatpush1.bf16.msra.mxu0 %v4543_v47  ;;  %v2396_v47 = vld [vmem:[#allocation8 + $0x1110] sm:$0xff] }
 0x30f   : > { %4546 = vmatprep.subr.bf16.mxu0 %v4545_v41  ;;  %v2399_v41 = vld [vmem:[#allocation8 + $0x1128] sm:$0xff] }
 0x310   : > { %v4583_v29 = vpack.c.bf16 %v2399_v41, %v2396_v47 }
 0x312   : > { %4548 = vmatpush1.bf16.msra.mxu0 %v4547_v58 }
 0x313   : > { %v3463_v0 = vpop.f32.mrb[8].mxu1  ;;  %4550 = vmatprep.subr.bf16.mxu0 %v4549_v54  ;;  %v4585_v54 = vpack.c.bf16 %v2406_v20, %v2403_v48 }
 0x314   : > { %v3464_v26 = vpop.f32.mrb[9].mxu1 }
 0x315   : > { %v5583_v56 = vadd.f32 %v3464_v26, %v3463_v0 }
 0x316   : > { %4552 = vmatpush1.bf16.msra.mxu0 %v4551_v5  ;;  %v2412_v5 = vld [vmem:[#allocation8 + $0x1190] sm:$0xff] }
 0x317   : > { %4554 = vmatprep.subr.bf16.mxu0 %v4553_v59  ;;  %v2936_v0 = vadd.f32 %v5583_v56, %v2439_v53  ;;  %v4589_v26 = vpack.c.bf16 %v2412_v5, %v2409_v63  ;;  %v4595_v56 = vpack.c.bf16 %v2417_v12, %v2414_v49 }
 0x31a   : > { %4556 = vmatpush1.bf16.msra.mxu0 %v4555_v9  ;;  %v2418_v9 = vld [vmem:[#allocation8 + $0x11c0] sm:$0xff] }
 0x31b   : > { %4558 = vmatprep.subr.bf16.mxu0 %v4557_v10  ;;  %v4591_v10 = vpack.c.bf16 %v2411_v36, %v2408_v6  ;;  %v4593_v11 = vpack.c.bf16 %v2418_v9, %v2415_v7 }
 0x31e   : > { %4560 = vmatpush1.bf16.msra.mxu0 %v4559_v52  ;;  %v2424_v52 = vld [vmem:[#allocation8 + $0x11f0] sm:$0xff] }
 0x31f   : > { %4562 = vmatprep.subr.bf16.mxu0 %v4561_v13  ;;  %v4597_v13 = vpack.c.bf16 %v2424_v52, %v2421_v38 }
 0x322   : > { %4564 = vmatpush1.bf16.msra.mxu0 %v4563_v21 }
 0x323   : > { %4566 = vmatprep.subr.bf16.mxu0 %v4565_v22 }
 0x326   : > { %4568 = vmatpush1.bf16.msra.mxu0 %v4567_v44 }
 0x327   : > { %4570 = vmatprep.subr.bf16.mxu0 %v4569_v18 }
 0x32a   : > { %4572 = vmatpush1.bf16.msra.mxu0 %v4571_v25 }
 0x32b   : > { %4574 = vmatprep.subr.bf16.mxu0 %v4573_v31 }
 0x32e   : > { %4576 = vmatpush1.bf16.msra.mxu0 %v4575_v51 }
 0x32f   : > { %4578 = vmatprep.subr.bf16.mxu0 %v4577_v37 }
 0x332   : > { %4580 = vmatpush1.bf16.msra.mxu0 %v4579_v45 }
 0x333   : > { %v3498_v58 = vpop.f32.mrb[10].mxu1  ;;  %4582 = vmatprep.subr.bf16.mxu0 %v4581_v46 }
 0x334   : > { %v3499_v62 = vpop.f32.mrb[11].mxu1 }
 0x335   : > { %v3500_v59 = vadd.f32 %v3499_v62, %v3498_v58 }
 0x336   : > { %4584 = vmatpush1.bf16.msra.mxu0 %v4583_v29 }
 0x337   : > { %v3006_v3 = vadd.f32 %v3500_v59, %v2936_v0  ;;  %4586 = vmatprep.subr.bf16.mxu0 %v4585_v54 }
 0x33a   : > { %4588 = vmatpush1.bf16.msra.mxu0 %v4587_v2 }
 0x33b   : > { %4590 = vmatprep.subr.bf16.mxu0 %v4589_v26 }
 0x33e   : > { %4592 = vmatpush1.bf16.msra.mxu0 %v4591_v10 }
 0x33f   : > { %4594 = vmatprep.subr.bf16.mxu0 %v4593_v11 }
 0x342   : > { %4596 = vmatpush1.bf16.msra.mxu0 %v4595_v56 }
 0x343   : > { %4598 = vmatprep.subr.bf16.mxu0 %v4597_v13 }
 0x346   : > { %4600 = vmatpush1.bf16.msra.mxu0 %v4599_v15 }
 0x349   : > { %2863 = vmatmul.mubr.f32.vlgmr.msra.gmra.mrb[4].mxu0 %v5579_v39  ;;  %v2431_v39 = vrot.slane %v5585_v1, %v5480_v57 }
 0x353   : > { %v3533_v19 = vpop.f32.mrb[12].mxu1 }
 0x354   : > { %v3534_v21 = vpop.f32.mrb[13].mxu1 }
 0x355   : > { %v3535_v22 = vadd.f32 %v3534_v21, %v3533_v19 }
 0x357   : > { %v3076_v35 = vadd.f32 %v3535_v22, %v3006_v3 }
 0x37c   : > { %v3568_v8 = vpop.f32.mrb[14].mxu1 }
 0x37d   : > { %v3569_v23 = vpop.f32.mrb[15].mxu1 }
 0x37e   : > { %v3570_v17 = vadd.f32 %v3569_v23, %v3568_v8 }
 0x380   : > { %v3146_v44 = vadd.f32 %v3570_v17, %v3076_v35 }
 0x39c   : > { %v3603_v18 = vpop.f32.mrb[16].mxu1 }
 0x39d   : > { %v3604_v55 = vpop.f32.mrb[17].mxu1 }
 0x39e   : > { %v3605_v27 = vadd.f32 %v3604_v55, %v3603_v18 }
 0x3a0   : > { %v3216_v28 = vadd.f32 %v3605_v27, %v3146_v44 }
 0x3dc   : > { %v3638_v30 = vpop.f32.mrb[18].mxu1 }
 0x3dd   : > { %v3639_v25 = vpop.f32.mrb[19].mxu1 }
 0x3de   : > { %v3640_v31 = vadd.f32 %v3639_v25, %v3638_v30 }
 0x3e0   : > { %v3286_v32 = vadd.f32 %v3640_v31, %v3216_v28 }
 0x3e2   : > { %3291 = vst [vmem:[%s294_s25 + $0x10] sm:$0xff] %v3286_v32 }
 0x41c   : > { %v2864_v34 = vpop.f32.mrb[4].mxu0 }
 0x41d   : > { %v4805_v24 = vadd.f32 %v2864_v34, %v2431_v39  ;;  %v2866_v51 = vpop.f32.mrb[5].mxu0 }
 0x41e   : > { %v4806_v37 = vadd.f32 %v2866_v51, %v2435_v33 }
 0x41f   : > { %3289 = vst [vmem:[%s294_s25] sm:$0xff] %v4805_v24 }
 0x420   : > { %3290 = vst [vmem:[%s294_s25 + $0x8] sm:$0xff] %v4806_v37 }
 0x421   : > { %5108 = shalt.err (!%p5105_p12)
}
 0x422   : > { %s5109_s17 = scalar_lea.hbm %s5601_s29, 384  ;;  %s5113_s11 = scalar_lea.hbm %s5650_s5, 768 }
 0x423   : > { %p5110_p13 = scmp.ne.s32.totalorder %s5601_s29, %s5109_s17  ;;  %p5114_p9 = scmp.lt.u32.totalorder %s5601_s29, %s5650_s5 }
 0x424   : > { %p5115_p4 = scmp.lt.u32.totalorder %s5113_s11, %s5109_s17  ;;  %p5117_p0 = scmp.lt.u32.totalorder %s5109_s17, %s5601_s29 }
 0x425   : > { %p5111_p1 = pnand %p5110_p13, %p5667_p6 }
 0x426   : > { %p5116_p8 = por %p5115_p4, %p5114_p9 }
 0x427   : > { %p5112_p7 = pneg %p5111_p1 }
 0x428   : > { %p5118_p2 = por %p5117_p0, %p5116_p8 }
 0x42a   : > { %p5119_p5 = pnand %p5118_p2, %p5112_p7 }
 0x42c   : > { %5122 = shalt.err (!%p5119_p5)
}
 0x42d   : > { %4851 = dma.vmem_to_hbm [thread:$0]  (%p5667_p6), %s5603_s15, 384, %s5601_s29, %s3293_s14  }
 0x42e PF: > { %s3319_s25 = sand.u32 1, %s5157_s18   ;;  %p5668_p10 = scmp.ne.s32.totalorder %s5660_s12, 0 }
 0x42f   : > { %p5669_p11 = scmp.ge.s32.totalorder %s5169_s21, 2  ;;  %s3320_s9 = scalar_lea.sflag [#allocation4], %s3319_s25 }
 0x431   : > { %p4871_p3 = pnand %p5669_p11, %p5668_p10 }
 0x433   : > { %5152 = dma.done.wait (!%p4871_p3), %s3320_s9, 384  }
 0x434   : > { %5154 = vsyncadd (!%p4871_p3), %s3320_s9, 4294966912  ;;  %p20_p12 = scmp.ge.s32.totalorder %s5348_s28, 4   ;;  %s5670_s18 = smov %s5161_s19 }
 0x435   : > { %s5671_s19 = smov %s5165_s20  ;;  %s5672_s20 = smov %s5359_s27 }
 0x436   : > { %s5673_s21 = smov %s5348_s28  ;;  %22 = sbr.rel (!%p20_p12) target bundleno = 7 (0x7), region = 101 }
 0x43d   :  { %3325 = vsyncpa [#allocation3], 1 }
 0x43e   :  { %3327 = vsyncpa [#allocation3 + $0x1], 1 }
 0x43f   :  { %3328 = vsyncpa [#allocation6], 1 }
 0x440   :  { %3329 = vsyncpa [#allocation9], 1 }
 0x441   :  { %3330 = vsyncpa [#allocation4], 1 }
 0x442   :  { %3332 = vsyncpa [#allocation4 + $0x1], 1 }

</bundles_post_ra>
